<compile_context>
chip_gen: v6e
topology: v6e:2x2x1
jax: 0.10.0
libtpu: 0.0.40
codegen_flags: <defaults>
</compile_context>

<pallas_src>
import jax
import jax.numpy as jnp
from jax import lax
from jax.experimental import pallas as pl
from jax.experimental.pallas import tpu as pltpu


def _vmem_spec():
    return pl.BlockSpec(memory_space=pltpu.MemorySpace.VMEM)


def lenet_kernel(xq_ref, w1_ref, b1_ref, w2_ref, b2_ref,
                 wf1_ref, bf1_ref, wf2_ref, bf2_ref, wf3_ref, bf3_ref,
                 o_ref, h1_ref, h2_ref):
    """Whole LeNet forward in one kernel.

    xq_ref : (4, 8*B, 32)   input rows split by (row mod 4): xq[q, r2*B+b, col] = x[b, 4*r2+q, col]
    w1_ref : (6, 32, 128)   conv1 structured weight, index kh*2+d; out lane = col*8 + cout
    w2_ref : (6, 128, 128)  conv2 structured weight, index kh*2+beta; in lane = col*8+cin,
                            out lane = pooled_col*16 + cout (kw folded into the matrix)
    wf1_ref: (6, 128, 128)  fc1 weight per pooled row r; in lane = c*16+co, out lane = o
    wf2/wf3: (128, 128)     zero-padded fc2 / fc3 weights
    b*_ref : (1, 128)       biases broadcast to the packed lane layouts
    o_ref  : (B, 128)       logits (first 10 lanes valid)
    h1_ref : (2, 8*B, 128)  conv1 pooled output, split by pooled-row parity, lane = col*8+ch
    h2_ref : (6*B, 128)     conv2 pooled output, row = r*B+b, lane = c*16+ch
    """
    B = o_ref.shape[0]
    f32 = jnp.float32

    # ---------------- conv1 + ReLU + 2x2 max-pool (structured MXU matmuls) ----------
    # Contraction is over the 32 input columns; the 3 kw taps and the pooled-column
    # packing live inside w1.  One dot per (pooled-row parity, pool row offset a,
    # pool col offset d, kh) = 24 dots of (<=8*B, 32) x (32, 128).
    b1v = b1_ref[...]
    for p in range(2):                      # parity of the pooled output row
        nrow = 8 - p                        # 8 even pooled rows, 7 odd ones
        m = None
        for a in range(2):                  # row offset inside the 2x2 pool window
            for d in range(2):              # col offset inside the 2x2 pool window
                acc = jnp.zeros((nrow * B, 128), f32)
                for kh in range(3):
                    t = 2 * p + a + kh      # input row = 4*r2 + t
                    q, roff = t % 4, t // 4
                    lhs = xq_ref[q, roff * B:(roff + nrow) * B, :]      # (nrow*B, 32)
                    acc = acc + jnp.dot(lhs, w1_ref[kh * 2 + d],
                                        preferred_element_type=f32)
                m = acc if m is None else jnp.maximum(m, acc)
        # bias + ReLU after the pool max (both monotone, bias constant per window).
        h1_ref[p, 0:nrow * B, :] = jnp.maximum(m + b1v, 0.0)

    # ---------------- conv2 + ReLU + 2x2 max-pool (structured MXU matmuls) ----------
    # Contraction is over the 128 lanes of an h1 row (col*8 + cin); kw, cin and the
    # pooled-column mapping are folded into w2.  12 dots of (6*B, 128) x (128, 128).
    b2v = b2_ref[...]
    m = None
    for a in range(2):                      # row offset inside the 2x2 pool window
        for d in range(2):                  # col offset inside the 2x2 pool window
            acc = jnp.zeros((6 * B, 128), f32)
            for kh in range(3):
                pr, roff = (a + kh) % 2, (a + kh) // 2
                lhs = h1_ref[pr, roff * B:(roff + 6) * B, :]            # (6*B, 128)
                acc = acc + jnp.dot(lhs, w2_ref[kh * 2 + d],
                                    preferred_element_type=f32)
            m = acc if m is None else jnp.maximum(m, acc)
    h2_ref[...] = jnp.maximum(m + b2v, 0.0)

    # ---------------- fc1 -> ReLU -> fc2 -> ReLU -> fc3 (MXU) -----------------------
    # fc1 contracts the packed (c,co) lanes per pooled row r: 6 dots instead of 36.
    acc = jnp.zeros((B, 128), f32)
    for r in range(6):
        acc = acc + jnp.dot(h2_ref[r * B:(r + 1) * B, :], wf1_ref[r],
                            preferred_element_type=f32)
    h = jnp.maximum(acc + bf1_ref[...], 0.0)
    h = jnp.maximum(jnp.dot(h, wf2_ref[...], preferred_element_type=f32)
                    + bf2_ref[...], 0.0)
    o_ref[...] = jnp.dot(h, wf3_ref[...], preferred_element_type=f32) + bf3_ref[...]


def init_params(key):
    """Deterministic synthetic init, PyTorch-layout parameter shapes."""
    def uniform(k, shape, fan_in):
        bound = 1.0 / (fan_in ** 0.5)
        return jax.random.uniform(k, shape, jnp.float32, -bound, bound)

    ks = jax.random.split(key, 10)
    return {
        "conv1_w": uniform(ks[0], (6, 1, 3, 3), 1 * 3 * 3),    # OIHW
        "conv1_b": uniform(ks[1], (6,), 1 * 3 * 3),
        "conv2_w": uniform(ks[2], (16, 6, 3, 3), 6 * 3 * 3),
        "conv2_b": uniform(ks[3], (16,), 6 * 3 * 3),
        "fc1_w": uniform(ks[4], (120, 576), 576),              # (out, in)
        "fc1_b": uniform(ks[5], (120,), 576),
        "fc2_w": uniform(ks[6], (84, 120), 120),
        "fc2_b": uniform(ks[7], (84,), 120),
        "fc3_w": uniform(ks[8], (10, 84), 84),
        "fc3_b": uniform(ks[9], (10,), 84),
    }


def prepare_params(p):
    """One-time re-layout of the PyTorch params into the structured matmul weights."""
    f32 = jnp.float32
    w1 = p["conv1_w"].astype(f32)                              # (6,1,3,3)
    w2 = p["conv2_w"].astype(f32)                              # (16,6,3,3)

    # conv1: W1c[kh, d][in_col = 2*col+d+kw, out = col*8+cout] = w1[cout, 0, kh, kw]
    kh, d, kw, col, ci = jnp.meshgrid(jnp.arange(3), jnp.arange(2), jnp.arange(3),
                                      jnp.arange(15), jnp.arange(6), indexing="ij")
    w1c = jnp.zeros((3, 2, 32, 128), f32).at[
        kh, d, 2 * col + d + kw, col * 8 + ci].set(w1[ci, 0, kh, kw]).reshape(6, 32, 128)
    b1big = jnp.tile(jnp.pad(p["conv1_b"].astype(f32), (0, 2)), 16)
    b1big = b1big.at[120:].set(0.0).reshape(1, 128)

    # conv2: W2c[kh, beta][in = (2c+beta+kw)*8+cin, out = c*16+cout] = w2[cout, cin, kh, kw]
    kh, bt, kw, c, ci, co = jnp.meshgrid(jnp.arange(3), jnp.arange(2), jnp.arange(3),
                                         jnp.arange(6), jnp.arange(6), jnp.arange(16),
                                         indexing="ij")
    w2c = jnp.zeros((3, 2, 128, 128), f32).at[
        kh, bt, (2 * c + bt + kw) * 8 + ci, c * 16 + co].set(
        w2[co, ci, kh, kw]).reshape(6, 128, 128)
    b2big = jnp.tile(p["conv2_b"].astype(f32), 8).at[96:].set(0.0).reshape(1, 128)

    # fc1: fold PyTorch's (C,H,W) flatten order; Wf1c[r][c*16+co, o] = fc1_w[o, co*36+r*6+c]
    r, c, co, o = jnp.meshgrid(jnp.arange(6), jnp.arange(6), jnp.arange(16),
                               jnp.arange(120), indexing="ij")
    wf1c = jnp.zeros((6, 128, 128), f32).at[
        r, c * 16 + co, o].set(p["fc1_w"].astype(f32)[o, co * 36 + r * 6 + c])
    bf1 = jnp.pad(p["fc1_b"].astype(f32), (0, 8)).reshape(1, 128)

    wf2c = jnp.zeros((128, 128), f32).at[:120, :84].set(p["fc2_w"].astype(f32).T)
    bf2 = jnp.pad(p["fc2_b"].astype(f32), (0, 44)).reshape(1, 128)
    wf3c = jnp.zeros((128, 128), f32).at[:84, :10].set(p["fc3_w"].astype(f32).T)
    bf3 = jnp.pad(p["fc3_b"].astype(f32), (0, 118)).reshape(1, 128)

    return {"w1": w1c, "b1": b1big, "w2": w2c, "b2": b2big,
            "wf1": wf1c, "bf1": bf1, "wf2": wf2c, "bf2": bf2,
            "wf3": wf3c, "bf3": bf3}


@jax.jit
def net_forward(x_nchw, kp):
    B, C, H, W = x_nchw.shape
    assert (C, H, W) == (1, 32, 32), "Net expects (B, 1, 32, 32) inputs"
    # Split input rows by (row mod 4) so every conv1 dot reads one contiguous row slab:
    #   xq[q, r2*B + b, col] = x[b, 4*r2 + q, col]
    x = x_nchw.reshape(B, 32, 32).astype(jnp.float32)
    xq = x.reshape(B, 8, 4, 32).transpose(2, 1, 0, 3).reshape(4, 8 * B, 32)

    out = pl.pallas_call(
        lenet_kernel,
        out_shape=jax.ShapeDtypeStruct((B, 128), jnp.float32),
        in_specs=[_vmem_spec()] * 11,
        out_specs=_vmem_spec(),
        scratch_shapes=[
            pltpu.VMEM((2, 8 * B, 128), jnp.float32),   # conv1 pooled (row-parity split)
            pltpu.VMEM((6 * B, 128), jnp.float32),      # conv2 pooled
        ],
    )(xq, kp["w1"], kp["b1"], kp["w2"], kp["b2"],
      kp["wf1"], kp["bf1"], kp["wf2"], kp["bf2"], kp["wf3"], kp["bf3"])
    return out[:, :10]


def reference_forward(x_nchw, params):
    """Pure-JAX (non-Pallas) reference for correctness checking."""
    x = jnp.transpose(x_nchw, (0, 2, 3, 1))

    def conv_block(x, w_oihw, b):
        w = jnp.transpose(w_oihw, (2, 3, 1, 0))
        y = lax.conv_general_dilated(
            x, w, window_strides=(1, 1), padding="VALID",
            dimension_numbers=("NHWC", "HWIO", "NHWC"))
        y = jnp.maximum(y + b, 0.0)
        return lax.reduce_window(y, -jnp.inf, lax.max,
                                 (1, 2, 2, 1), (1, 2, 2, 1), "VALID")

    h = conv_block(x, params["conv1_w"], params["conv1_b"])
    h = conv_block(h, params["conv2_w"], params["conv2_b"])
    h = jnp.transpose(h, (0, 3, 1, 2)).reshape(h.shape[0], -1)
    h = jnp.maximum(h @ params["fc1_w"].T + params["fc1_b"], 0.0)
    h = jnp.maximum(h @ params["fc2_w"].T + params["fc2_b"], 0.0)
    return h @ params["fc3_w"].T + params["fc3_b"]


if __name__ == "__main__":
    key = jax.random.PRNGKey(0)
    k_x, k_p = jax.random.split(key)
    # fc1 expects 16*6*6 features => single-channel 32x32 input, NCHW.
    x = jax.random.normal(k_x, (2, 1, 32, 32), jnp.float32)
    params = init_params(k_p)
    kparams = prepare_params(params)      # one-time structured weight re-layout

    out = jax.block_until_ready(net_forward(x, kparams))
    assert out.shape == (2, 10), out.shape

    ref = reference_forward(x, params)
    err = float(jnp.max(jnp.abs(out - ref)))
    assert err < 1e-3, f"max abs error {err}"

    print("KERNEL_OK")
</pallas_src>

<mosaic_0001>
module attributes {stable_mosaic.version = 11 : i64} {
  func.func @lenet_kernel(%arg0: memref<4x16x32xf32, #tpu.memory_space<vmem>>, %arg1: memref<6x32x128xf32, #tpu.memory_space<vmem>>, %arg2: memref<1x128xf32, #tpu.memory_space<vmem>>, %arg3: memref<6x128x128xf32, #tpu.memory_space<vmem>>, %arg4: memref<1x128xf32, #tpu.memory_space<vmem>>, %arg5: memref<6x128x128xf32, #tpu.memory_space<vmem>>, %arg6: memref<1x128xf32, #tpu.memory_space<vmem>>, %arg7: memref<128x128xf32, #tpu.memory_space<vmem>>, %arg8: memref<1x128xf32, #tpu.memory_space<vmem>>, %arg9: memref<128x128xf32, #tpu.memory_space<vmem>>, %arg10: memref<1x128xf32, #tpu.memory_space<vmem>>, %arg11: memref<2x128xf32, #tpu.memory_space<vmem>>, %arg12: memref<2x16x128xf32, #tpu.memory_space<vmem>>, %arg13: memref<12x128xf32, #tpu.memory_space<vmem>>) attributes {dimension_semantics = [], scalar_prefetch = 0 : i64, scratch_operands = 2 : i64, tpu.core_type = #tpu.core_type<tc>} {
    %c0 = arith.constant 0 : index
    %c0_0 = arith.constant 0 : index
    %0 = vector.load %arg2[%c0, %c0_0] : memref<1x128xf32, #tpu.memory_space<vmem>>, vector<1x128xf32>
    %cst = arith.constant 0.000000e+00 : f32
    %1 = vector.broadcast %cst : f32 to vector<16x128xf32>
    %c0_1 = arith.constant 0 : index
    %c0_2 = arith.constant 0 : index
    %c0_3 = arith.constant 0 : index
    %2 = vector.load %arg0[%c0_1, %c0_2, %c0_3] : memref<4x16x32xf32, #tpu.memory_space<vmem>>, vector<1x16x32xf32>
    %3 = vector.shape_cast %2 : vector<1x16x32xf32> to vector<16x32xf32>
    %c0_4 = arith.constant 0 : index
    %c0_5 = arith.constant 0 : index
    %c0_6 = arith.constant 0 : index
    %4 = vector.load %arg1[%c0_4, %c0_5, %c0_6] : memref<6x32x128xf32, #tpu.memory_space<vmem>>, vector<1x32x128xf32>
    %5 = vector.shape_cast %4 : vector<1x32x128xf32> to vector<32x128xf32>
    %cst_7 = arith.constant dense<0.000000e+00> : vector<16x128xf32>
    %6 = tpu.matmul %3, %5, %cst_7 {dimension_numbers = #tpu.dot_dimension_numbers<[1], [0], [0], [1], [0, 0, 1, 1], [], []>} : vector<16x32xf32>, vector<32x128xf32>, vector<16x128xf32> -> vector<16x128xf32>
    %7 = arith.addf %1, %6 : vector<16x128xf32>
    %c1 = arith.constant 1 : index
    %c0_8 = arith.constant 0 : index
    %c0_9 = arith.constant 0 : index
    %8 = vector.load %arg0[%c1, %c0_8, %c0_9] : memref<4x16x32xf32, #tpu.memory_space<vmem>>, vector<1x16x32xf32>
    %9 = vector.shape_cast %8 : vector<1x16x32xf32> to vector<16x32xf32>
    %c2 = arith.constant 2 : index
    %c0_10 = arith.constant 0 : index
    %c0_11 = arith.constant 0 : index
    %10 = vector.load %arg1[%c2, %c0_10, %c0_11] : memref<6x32x128xf32, #tpu.memory_space<vmem>>, vector<1x32x128xf32>
    %11 = vector.shape_cast %10 : vector<1x32x128xf32> to vector<32x128xf32>
    %cst_12 = arith.constant dense<0.000000e+00> : vector<16x128xf32>
    %12 = tpu.matmul %9, %11, %cst_12 {dimension_numbers = #tpu.dot_dimension_numbers<[1], [0], [0], [1], [0, 0, 1, 1], [], []>} : vector<16x32xf32>, vector<32x128xf32>, vector<16x128xf32> -> vector<16x128xf32>
    %13 = arith.addf %7, %12 : vector<16x128xf32>
    %c2_13 = arith.constant 2 : index
    %c0_14 = arith.constant 0 : index
    %c0_15 = arith.constant 0 : index
    %14 = vector.load %arg0[%c2_13, %c0_14, %c0_15] : memref<4x16x32xf32, #tpu.memory_space<vmem>>, vector<1x16x32xf32>
    %15 = vector.shape_cast %14 : vector<1x16x32xf32> to vector<16x32xf32>
    %c4 = arith.constant 4 : index
    %c0_16 = arith.constant 0 : index
    %c0_17 = arith.constant 0 : index
    %16 = vector.load %arg1[%c4, %c0_16, %c0_17] : memref<6x32x128xf32, #tpu.memory_space<vmem>>, vector<1x32x128xf32>
    %17 = vector.shape_cast %16 : vector<1x32x128xf32> to vector<32x128xf32>
    %cst_18 = arith.constant dense<0.000000e+00> : vector<16x128xf32>
    %18 = tpu.matmul %15, %17, %cst_18 {dimension_numbers = #tpu.dot_dimension_numbers<[1], [0], [0], [1], [0, 0, 1, 1], [], []>} : vector<16x32xf32>, vector<32x128xf32>, vector<16x128xf32> -> vector<16x128xf32>
    %19 = arith.addf %13, %18 : vector<16x128xf32>
    %cst_19 = arith.constant 0.000000e+00 : f32
    %20 = vector.broadcast %cst_19 : f32 to vector<16x128xf32>
    %c0_20 = arith.constant 0 : index
    %c0_21 = arith.constant 0 : index
    %c0_22 = arith.constant 0 : index
    %21 = vector.load %arg0[%c0_20, %c0_21, %c0_22] : memref<4x16x32xf32, #tpu.memory_space<vmem>>, vector<1x16x32xf32>
    %22 = vector.shape_cast %21 : vector<1x16x32xf32> to vector<16x32xf32>
    %c1_23 = arith.constant 1 : index
    %c0_24 = arith.constant 0 : index
    %c0_25 = arith.constant 0 : index
    %23 = vector.load %arg1[%c1_23, %c0_24, %c0_25] : memref<6x32x128xf32, #tpu.memory_space<vmem>>, vector<1x32x128xf32>
    %24 = vector.shape_cast %23 : vector<1x32x128xf32> to vector<32x128xf32>
    %cst_26 = arith.constant dense<0.000000e+00> : vector<16x128xf32>
    %25 = tpu.matmul %22, %24, %cst_26 {dimension_numbers = #tpu.dot_dimension_numbers<[1], [0], [0], [1], [0, 0, 1, 1], [], []>} : vector<16x32xf32>, vector<32x128xf32>, vector<16x128xf32> -> vector<16x128xf32>
    %26 = arith.addf %20, %25 : vector<16x128xf32>
    %c1_27 = arith.constant 1 : index
    %c0_28 = arith.constant 0 : index
    %c0_29 = arith.constant 0 : index
    %27 = vector.load %arg0[%c1_27, %c0_28, %c0_29] : memref<4x16x32xf32, #tpu.memory_space<vmem>>, vector<1x16x32xf32>
    %28 = vector.shape_cast %27 : vector<1x16x32xf32> to vector<16x32xf32>
    %c3 = arith.constant 3 : index
    %c0_30 = arith.constant 0 : index
    %c0_31 = arith.constant 0 : index
    %29 = vector.load %arg1[%c3, %c0_30, %c0_31] : memref<6x32x128xf32, #tpu.memory_space<vmem>>, vector<1x32x128xf32>
    %30 = vector.shape_cast %29 : vector<1x32x128xf32> to vector<32x128xf32>
    %cst_32 = arith.constant dense<0.000000e+00> : vector<16x128xf32>
    %31 = tpu.matmul %28, %30, %cst_32 {dimension_numbers = #tpu.dot_dimension_numbers<[1], [0], [0], [1], [0, 0, 1, 1], [], []>} : vector<16x32xf32>, vector<32x128xf32>, vector<16x128xf32> -> vector<16x128xf32>
    %32 = arith.addf %26, %31 : vector<16x128xf32>
    %c2_33 = arith.constant 2 : index
    %c0_34 = arith.constant 0 : index
    %c0_35 = arith.constant 0 : index
    %33 = vector.load %arg0[%c2_33, %c0_34, %c0_35] : memref<4x16x32xf32, #tpu.memory_space<vmem>>, vector<1x16x32xf32>
    %34 = vector.shape_cast %33 : vector<1x16x32xf32> to vector<16x32xf32>
    %c5 = arith.constant 5 : index
    %c0_36 = arith.constant 0 : index
    %c0_37 = arith.constant 0 : index
    %35 = vector.load %arg1[%c5, %c0_36, %c0_37] : memref<6x32x128xf32, #tpu.memory_space<vmem>>, vector<1x32x128xf32>
    %36 = vector.shape_cast %35 : vector<1x32x128xf32> to vector<32x128xf32>
    %cst_38 = arith.constant dense<0.000000e+00> : vector<16x128xf32>
    %37 = tpu.matmul %34, %36, %cst_38 {dimension_numbers = #tpu.dot_dimension_numbers<[1], [0], [0], [1], [0, 0, 1, 1], [], []>} : vector<16x32xf32>, vector<32x128xf32>, vector<16x128xf32> -> vector<16x128xf32>
    %38 = arith.addf %32, %37 : vector<16x128xf32>
    %39 = arith.maximumf %19, %38 : vector<16x128xf32>
    %cst_39 = arith.constant 0.000000e+00 : f32
    %40 = vector.broadcast %cst_39 : f32 to vector<16x128xf32>
    %c1_40 = arith.constant 1 : index
    %c0_41 = arith.constant 0 : index
    %c0_42 = arith.constant 0 : index
    %41 = vector.load %arg0[%c1_40, %c0_41, %c0_42] : memref<4x16x32xf32, #tpu.memory_space<vmem>>, vector<1x16x32xf32>
    %42 = vector.shape_cast %41 : vector<1x16x32xf32> to vector<16x32xf32>
    %c0_43 = arith.constant 0 : index
    %c0_44 = arith.constant 0 : index
    %c0_45 = arith.constant 0 : index
    %43 = vector.load %arg1[%c0_43, %c0_44, %c0_45] : memref<6x32x128xf32, #tpu.memory_space<vmem>>, vector<1x32x128xf32>
    %44 = vector.shape_cast %43 : vector<1x32x128xf32> to vector<32x128xf32>
    %cst_46 = arith.constant dense<0.000000e+00> : vector<16x128xf32>
    %45 = tpu.matmul %42, %44, %cst_46 {dimension_numbers = #tpu.dot_dimension_numbers<[1], [0], [0], [1], [0, 0, 1, 1], [], []>} : vector<16x32xf32>, vector<32x128xf32>, vector<16x128xf32> -> vector<16x128xf32>
    %46 = arith.addf %40, %45 : vector<16x128xf32>
    %c2_47 = arith.constant 2 : index
    %c0_48 = arith.constant 0 : index
    %c0_49 = arith.constant 0 : index
    %47 = vector.load %arg0[%c2_47, %c0_48, %c0_49] : memref<4x16x32xf32, #tpu.memory_space<vmem>>, vector<1x16x32xf32>
    %48 = vector.shape_cast %47 : vector<1x16x32xf32> to vector<16x32xf32>
    %c2_50 = arith.constant 2 : index
    %c0_51 = arith.constant 0 : index
    %c0_52 = arith.constant 0 : index
    %49 = vector.load %arg1[%c2_50, %c0_51, %c0_52] : memref<6x32x128xf32, #tpu.memory_space<vmem>>, vector<1x32x128xf32>
    %50 = vector.shape_cast %49 : vector<1x32x128xf32> to vector<32x128xf32>
    %cst_53 = arith.constant dense<0.000000e+00> : vector<16x128xf32>
    %51 = tpu.matmul %48, %50, %cst_53 {dimension_numbers = #tpu.dot_dimension_numbers<[1], [0], [0], [1], [0, 0, 1, 1], [], []>} : vector<16x32xf32>, vector<32x128xf32>, vector<16x128xf32> -> vector<16x128xf32>
    %52 = arith.addf %46, %51 : vector<16x128xf32>
    %c3_54 = arith.constant 3 : index
    %c0_55 = arith.constant 0 : index
    %c0_56 = arith.constant 0 : index
    %53 = vector.load %arg0[%c3_54, %c0_55, %c0_56] : memref<4x16x32xf32, #tpu.memory_space<vmem>>, vector<1x16x32xf32>
    %54 = vector.shape_cast %53 : vector<1x16x32xf32> to vector<16x32xf32>
    %c4_57 = arith.constant 4 : index
    %c0_58 = arith.constant 0 : index
    %c0_59 = arith.constant 0 : index
    %55 = vector.load %arg1[%c4_57, %c0_58, %c0_59] : memref<6x32x128xf32, #tpu.memory_space<vmem>>, vector<1x32x128xf32>
    %56 = vector.shape_cast %55 : vector<1x32x128xf32> to vector<32x128xf32>
    %cst_60 = arith.constant dense<0.000000e+00> : vector<16x128xf32>
    %57 = tpu.matmul %54, %56, %cst_60 {dimension_numbers = #tpu.dot_dimension_numbers<[1], [0], [0], [1], [0, 0, 1, 1], [], []>} : vector<16x32xf32>, vector<32x128xf32>, vector<16x128xf32> -> vector<16x128xf32>
    %58 = arith.addf %52, %57 : vector<16x128xf32>
    %59 = arith.maximumf %39, %58 : vector<16x128xf32>
    %cst_61 = arith.constant 0.000000e+00 : f32
    %60 = vector.broadcast %cst_61 : f32 to vector<16x128xf32>
    %c1_62 = arith.constant 1 : index
    %c0_63 = arith.constant 0 : index
    %c0_64 = arith.constant 0 : index
    %61 = vector.load %arg0[%c1_62, %c0_63, %c0_64] : memref<4x16x32xf32, #tpu.memory_space<vmem>>, vector<1x16x32xf32>
    %62 = vector.shape_cast %61 : vector<1x16x32xf32> to vector<16x32xf32>
    %c1_65 = arith.constant 1 : index
    %c0_66 = arith.constant 0 : index
    %c0_67 = arith.constant 0 : index
    %63 = vector.load %arg1[%c1_65, %c0_66, %c0_67] : memref<6x32x128xf32, #tpu.memory_space<vmem>>, vector<1x32x128xf32>
    %64 = vector.shape_cast %63 : vector<1x32x128xf32> to vector<32x128xf32>
    %cst_68 = arith.constant dense<0.000000e+00> : vector<16x128xf32>
    %65 = tpu.matmul %62, %64, %cst_68 {dimension_numbers = #tpu.dot_dimension_numbers<[1], [0], [0], [1], [0, 0, 1, 1], [], []>} : vector<16x32xf32>, vector<32x128xf32>, vector<16x128xf32> -> vector<16x128xf32>
    %66 = arith.addf %60, %65 : vector<16x128xf32>
    %c2_69 = arith.constant 2 : index
    %c0_70 = arith.constant 0 : index
    %c0_71 = arith.constant 0 : index
    %67 = vector.load %arg0[%c2_69, %c0_70, %c0_71] : memref<4x16x32xf32, #tpu.memory_space<vmem>>, vector<1x16x32xf32>
    %68 = vector.shape_cast %67 : vector<1x16x32xf32> to vector<16x32xf32>
    %c3_72 = arith.constant 3 : index
    %c0_73 = arith.constant 0 : index
    %c0_74 = arith.constant 0 : index
    %69 = vector.load %arg1[%c3_72, %c0_73, %c0_74] : memref<6x32x128xf32, #tpu.memory_space<vmem>>, vector<1x32x128xf32>
    %70 = vector.shape_cast %69 : vector<1x32x128xf32> to vector<32x128xf32>
    %cst_75 = arith.constant dense<0.000000e+00> : vector<16x128xf32>
    %71 = tpu.matmul %68, %70, %cst_75 {dimension_numbers = #tpu.dot_dimension_numbers<[1], [0], [0], [1], [0, 0, 1, 1], [], []>} : vector<16x32xf32>, vector<32x128xf32>, vector<16x128xf32> -> vector<16x128xf32>
    %72 = arith.addf %66, %71 : vector<16x128xf32>
    %c3_76 = arith.constant 3 : index
    %c0_77 = arith.constant 0 : index
    %c0_78 = arith.constant 0 : index
    %73 = vector.load %arg0[%c3_76, %c0_77, %c0_78] : memref<4x16x32xf32, #tpu.memory_space<vmem>>, vector<1x16x32xf32>
    %74 = vector.shape_cast %73 : vector<1x16x32xf32> to vector<16x32xf32>
    %c5_79 = arith.constant 5 : index
    %c0_80 = arith.constant 0 : index
    %c0_81 = arith.constant 0 : index
    %75 = vector.load %arg1[%c5_79, %c0_80, %c0_81] : memref<6x32x128xf32, #tpu.memory_space<vmem>>, vector<1x32x128xf32>
    %76 = vector.shape_cast %75 : vector<1x32x128xf32> to vector<32x128xf32>
    %cst_82 = arith.constant dense<0.000000e+00> : vector<16x128xf32>
    %77 = tpu.matmul %74, %76, %cst_82 {dimension_numbers = #tpu.dot_dimension_numbers<[1], [0], [0], [1], [0, 0, 1, 1], [], []>} : vector<16x32xf32>, vector<32x128xf32>, vector<16x128xf32> -> vector<16x128xf32>
    %78 = arith.addf %72, %77 : vector<16x128xf32>
    %79 = arith.maximumf %59, %78 : vector<16x128xf32>
    %80 = vector.broadcast %0 : vector<1x128xf32> to vector<16x128xf32>
    %81 = arith.addf %79, %80 : vector<16x128xf32>
    %cst_83 = arith.constant 0.000000e+00 : f32
    %82 = vector.broadcast %cst_83 : f32 to vector<16x128xf32>
    %83 = arith.maximumf %81, %82 : vector<16x128xf32>
    %c0_84 = arith.constant 0 : index
    %c0_85 = arith.constant 0 : index
    %c0_86 = arith.constant 0 : index
    %84 = vector.load %arg12[%c0_84, %c0_85, %c0_86] : memref<2x16x128xf32, #tpu.memory_space<vmem>>, vector<1x16x128xf32>
    %85 = vector.shape_cast %84 : vector<1x16x128xf32> to vector<16x128xf32>
    %86 = vector.shape_cast %83 : vector<16x128xf32> to vector<1x16x128xf32>
    tpu.vector_store %arg12[%c0_84, %c0_85, %c0_86], %86 {strides = array<i32>} : memref<2x16x128xf32, #tpu.memory_space<vmem>>, vector<1x16x128xf32>,
    %cst_87 = arith.constant 0.000000e+00 : f32
    %87 = vector.broadcast %cst_87 : f32 to vector<14x128xf32>
    %c2_88 = arith.constant 2 : index
    %c0_89 = arith.constant 0 : index
    %c0_90 = arith.constant 0 : index
    %88 = vector.load %arg0[%c2_88, %c0_89, %c0_90] : memref<4x16x32xf32, #tpu.memory_space<vmem>>, vector<1x14x32xf32>
    %89 = vector.shape_cast %88 : vector<1x14x32xf32> to vector<14x32xf32>
    %c0_91 = arith.constant 0 : index
    %c0_92 = arith.constant 0 : index
    %c0_93 = arith.constant 0 : index
    %90 = vector.load %arg1[%c0_91, %c0_92, %c0_93] : memref<6x32x128xf32, #tpu.memory_space<vmem>>, vector<1x32x128xf32>
    %91 = vector.shape_cast %90 : vector<1x32x128xf32> to vector<32x128xf32>
    %cst_94 = arith.constant dense<0.000000e+00> : vector<14x128xf32>
    %92 = tpu.matmul %89, %91, %cst_94 {dimension_numbers = #tpu.dot_dimension_numbers<[1], [0], [0], [1], [0, 0, 1, 1], [], []>} : vector<14x32xf32>, vector<32x128xf32>, vector<14x128xf32> -> vector<14x128xf32>
    %93 = arith.addf %87, %92 : vector<14x128xf32>
    %c3_95 = arith.constant 3 : index
    %c0_96 = arith.constant 0 : index
    %c0_97 = arith.constant 0 : index
    %94 = vector.load %arg0[%c3_95, %c0_96, %c0_97] : memref<4x16x32xf32, #tpu.memory_space<vmem>>, vector<1x14x32xf32>
    %95 = vector.shape_cast %94 : vector<1x14x32xf32> to vector<14x32xf32>
    %c2_98 = arith.constant 2 : index
    %c0_99 = arith.constant 0 : index
    %c0_100 = arith.constant 0 : index
    %96 = vector.load %arg1[%c2_98, %c0_99, %c0_100] : memref<6x32x128xf32, #tpu.memory_space<vmem>>, vector<1x32x128xf32>
    %97 = vector.shape_cast %96 : vector<1x32x128xf32> to vector<32x128xf32>
    %cst_101 = arith.constant dense<0.000000e+00> : vector<14x128xf32>
    %98 = tpu.matmul %95, %97, %cst_101 {dimension_numbers = #tpu.dot_dimension_numbers<[1], [0], [0], [1], [0, 0, 1, 1], [], []>} : vector<14x32xf32>, vector<32x128xf32>, vector<14x128xf32> -> vector<14x128xf32>
    %99 = arith.addf %93, %98 : vector<14x128xf32>
    %c0_102 = arith.constant 0 : index
    %c2_103 = arith.constant 2 : index
    %c0_104 = arith.constant 0 : index
    %100 = vector.load %arg0[%c0_102, %c2_103, %c0_104] : memref<4x16x32xf32, #tpu.memory_space<vmem>>, vector<1x14x32xf32>
    %101 = vector.shape_cast %100 : vector<1x14x32xf32> to vector<14x32xf32>
    %c4_105 = arith.constant 4 : index
    %c0_106 = arith.constant 0 : index
    %c0_107 = arith.constant 0 : index
    %102 = vector.load %arg1[%c4_105, %c0_106, %c0_107] : memref<6x32x128xf32, #tpu.memory_space<vmem>>, vector<1x32x128xf32>
    %103 = vector.shape_cast %102 : vector<1x32x128xf32> to vector<32x128xf32>
    %cst_108 = arith.constant dense<0.000000e+00> : vector<14x128xf32>
    %104 = tpu.matmul %101, %103, %cst_108 {dimension_numbers = #tpu.dot_dimension_numbers<[1], [0], [0], [1], [0, 0, 1, 1], [], []>} : vector<14x32xf32>, vector<32x128xf32>, vector<14x128xf32> -> vector<14x128xf32>
    %105 = arith.addf %99, %104 : vector<14x128xf32>
    %cst_109 = arith.constant 0.000000e+00 : f32
    %106 = vector.broadcast %cst_109 : f32 to vector<14x128xf32>
    %c2_110 = arith.constant 2 : index
    %c0_111 = arith.constant 0 : index
    %c0_112 = arith.constant 0 : index
    %107 = vector.load %arg0[%c2_110, %c0_111, %c0_112] : memref<4x16x32xf32, #tpu.memory_space<vmem>>, vector<1x14x32xf32>
    %108 = vector.shape_cast %107 : vector<1x14x32xf32> to vector<14x32xf32>
    %c1_113 = arith.constant 1 : index
    %c0_114 = arith.constant 0 : index
    %c0_115 = arith.constant 0 : index
    %109 = vector.load %arg1[%c1_113, %c0_114, %c0_115] : memref<6x32x128xf32, #tpu.memory_space<vmem>>, vector<1x32x128xf32>
    %110 = vector.shape_cast %109 : vector<1x32x128xf32> to vector<32x128xf32>
    %cst_116 = arith.constant dense<0.000000e+00> : vector<14x128xf32>
    %111 = tpu.matmul %108, %110, %cst_116 {dimension_numbers = #tpu.dot_dimension_numbers<[1], [0], [0], [1], [0, 0, 1, 1], [], []>} : vector<14x32xf32>, vector<32x128xf32>, vector<14x128xf32> -> vector<14x128xf32>
    %112 = arith.addf %106, %111 : vector<14x128xf32>
    %c3_117 = arith.constant 3 : index
    %c0_118 = arith.constant 0 : index
    %c0_119 = arith.constant 0 : index
    %113 = vector.load %arg0[%c3_117, %c0_118, %c0_119] : memref<4x16x32xf32, #tpu.memory_space<vmem>>, vector<1x14x32xf32>
    %114 = vector.shape_cast %113 : vector<1x14x32xf32> to vector<14x32xf32>
    %c3_120 = arith.constant 3 : index
    %c0_121 = arith.constant 0 : index
    %c0_122 = arith.constant 0 : index
    %115 = vector.load %arg1[%c3_120, %c0_121, %c0_122] : memref<6x32x128xf32, #tpu.memory_space<vmem>>, vector<1x32x128xf32>
    %116 = vector.shape_cast %115 : vector<1x32x128xf32> to vector<32x128xf32>
    %cst_123 = arith.constant dense<0.000000e+00> : vector<14x128xf32>
    %117 = tpu.matmul %114, %116, %cst_123 {dimension_numbers = #tpu.dot_dimension_numbers<[1], [0], [0], [1], [0, 0, 1, 1], [], []>} : vector<14x32xf32>, vector<32x128xf32>, vector<14x128xf32> -> vector<14x128xf32>
    %118 = arith.addf %112, %117 : vector<14x128xf32>
    %c0_124 = arith.constant 0 : index
    %c2_125 = arith.constant 2 : index
    %c0_126 = arith.constant 0 : index
    %119 = vector.load %arg0[%c0_124, %c2_125, %c0_126] : memref<4x16x32xf32, #tpu.memory_space<vmem>>, vector<1x14x32xf32>
    %120 = vector.shape_cast %119 : vector<1x14x32xf32> to vector<14x32xf32>
    %c5_127 = arith.constant 5 : index
    %c0_128 = arith.constant 0 : index
    %c0_129 = arith.constant 0 : index
    %121 = vector.load %arg1[%c5_127, %c0_128, %c0_129] : memref<6x32x128xf32, #tpu.memory_space<vmem>>, vector<1x32x128xf32>
    %122 = vector.shape_cast %121 : vector<1x32x128xf32> to vector<32x128xf32>
    %cst_130 = arith.constant dense<0.000000e+00> : vector<14x128xf32>
    %123 = tpu.matmul %120, %122, %cst_130 {dimension_numbers = #tpu.dot_dimension_numbers<[1], [0], [0], [1], [0, 0, 1, 1], [], []>} : vector<14x32xf32>, vector<32x128xf32>, vector<14x128xf32> -> vector<14x128xf32>
    %124 = arith.addf %118, %123 : vector<14x128xf32>
    %125 = arith.maximumf %105, %124 : vector<14x128xf32>
    %cst_131 = arith.constant 0.000000e+00 : f32
    %126 = vector.broadcast %cst_131 : f32 to vector<14x128xf32>
    %c3_132 = arith.constant 3 : index
    %c0_133 = arith.constant 0 : index
    %c0_134 = arith.constant 0 : index
    %127 = vector.load %arg0[%c3_132, %c0_133, %c0_134] : memref<4x16x32xf32, #tpu.memory_space<vmem>>, vector<1x14x32xf32>
    %128 = vector.shape_cast %127 : vector<1x14x32xf32> to vector<14x32xf32>
    %c0_135 = arith.constant 0 : index
    %c0_136 = arith.constant 0 : index
    %c0_137 = arith.constant 0 : index
    %129 = vector.load %arg1[%c0_135, %c0_136, %c0_137] : memref<6x32x128xf32, #tpu.memory_space<vmem>>, vector<1x32x128xf32>
    %130 = vector.shape_cast %129 : vector<1x32x128xf32> to vector<32x128xf32>
    %cst_138 = arith.constant dense<0.000000e+00> : vector<14x128xf32>
    %131 = tpu.matmul %128, %130, %cst_138 {dimension_numbers = #tpu.dot_dimension_numbers<[1], [0], [0], [1], [0, 0, 1, 1], [], []>} : vector<14x32xf32>, vector<32x128xf32>, vector<14x128xf32> -> vector<14x128xf32>
    %132 = arith.addf %126, %131 : vector<14x128xf32>
    %c0_139 = arith.constant 0 : index
    %c2_140 = arith.constant 2 : index
    %c0_141 = arith.constant 0 : index
    %133 = vector.load %arg0[%c0_139, %c2_140, %c0_141] : memref<4x16x32xf32, #tpu.memory_space<vmem>>, vector<1x14x32xf32>
    %134 = vector.shape_cast %133 : vector<1x14x32xf32> to vector<14x32xf32>
    %c2_142 = arith.constant 2 : index
    %c0_143 = arith.constant 0 : index
    %c0_144 = arith.constant 0 : index
    %135 = vector.load %arg1[%c2_142, %c0_143, %c0_144] : memref<6x32x128xf32, #tpu.memory_space<vmem>>, vector<1x32x128xf32>
    %136 = vector.shape_cast %135 : vector<1x32x128xf32> to vector<32x128xf32>
    %cst_145 = arith.constant dense<0.000000e+00> : vector<14x128xf32>
    %137 = tpu.matmul %134, %136, %cst_145 {dimension_numbers = #tpu.dot_dimension_numbers<[1], [0], [0], [1], [0, 0, 1, 1], [], []>} : vector<14x32xf32>, vector<32x128xf32>, vector<14x128xf32> -> vector<14x128xf32>
    %138 = arith.addf %132, %137 : vector<14x128xf32>
    %c1_146 = arith.constant 1 : index
    %c2_147 = arith.constant 2 : index
    %c0_148 = arith.constant 0 : index
    %139 = vector.load %arg0[%c1_146, %c2_147, %c0_148] : memref<4x16x32xf32, #tpu.memory_space<vmem>>, vector<1x14x32xf32>
    %140 = vector.shape_cast %139 : vector<1x14x32xf32> to vector<14x32xf32>
    %c4_149 = arith.constant 4 : index
    %c0_150 = arith.constant 0 : index
    %c0_151 = arith.constant 0 : index
    %141 = vector.load %arg1[%c4_149, %c0_150, %c0_151] : memref<6x32x128xf32, #tpu.memory_space<vmem>>, vector<1x32x128xf32>
    %142 = vector.shape_cast %141 : vector<1x32x128xf32> to vector<32x128xf32>
    %cst_152 = arith.constant dense<0.000000e+00> : vector<14x128xf32>
    %143 = tpu.matmul %140, %142, %cst_152 {dimension_numbers = #tpu.dot_dimension_numbers<[1], [0], [0], [1], [0, 0, 1, 1], [], []>} : vector<14x32xf32>, vector<32x128xf32>, vector<14x128xf32> -> vector<14x128xf32>
    %144 = arith.addf %138, %143 : vector<14x128xf32>
    %145 = arith.maximumf %125, %144 : vector<14x128xf32>
    %cst_153 = arith.constant 0.000000e+00 : f32
    %146 = vector.broadcast %cst_153 : f32 to vector<14x128xf32>
    %c3_154 = arith.constant 3 : index
    %c0_155 = arith.constant 0 : index
    %c0_156 = arith.constant 0 : index
    %147 = vector.load %arg0[%c3_154, %c0_155, %c0_156] : memref<4x16x32xf32, #tpu.memory_space<vmem>>, vector<1x14x32xf32>
    %148 = vector.shape_cast %147 : vector<1x14x32xf32> to vector<14x32xf32>
    %c1_157 = arith.constant 1 : index
    %c0_158 = arith.constant 0 : index
    %c0_159 = arith.constant 0 : index
    %149 = vector.load %arg1[%c1_157, %c0_158, %c0_159] : memref<6x32x128xf32, #tpu.memory_space<vmem>>, vector<1x32x128xf32>
    %150 = vector.shape_cast %149 : vector<1x32x128xf32> to vector<32x128xf32>
    %cst_160 = arith.constant dense<0.000000e+00> : vector<14x128xf32>
    %151 = tpu.matmul %148, %150, %cst_160 {dimension_numbers = #tpu.dot_dimension_numbers<[1], [0], [0], [1], [0, 0, 1, 1], [], []>} : vector<14x32xf32>, vector<32x128xf32>, vector<14x128xf32> -> vector<14x128xf32>
    %152 = arith.addf %146, %151 : vector<14x128xf32>
    %c0_161 = arith.constant 0 : index
    %c2_162 = arith.constant 2 : index
    %c0_163 = arith.constant 0 : index
    %153 = vector.load %arg0[%c0_161, %c2_162, %c0_163] : memref<4x16x32xf32, #tpu.memory_space<vmem>>, vector<1x14x32xf32>
    %154 = vector.shape_cast %153 : vector<1x14x32xf32> to vector<14x32xf32>
    %c3_164 = arith.constant 3 : index
    %c0_165 = arith.constant 0 : index
    %c0_166 = arith.constant 0 : index
    %155 = vector.load %arg1[%c3_164, %c0_165, %c0_166] : memref<6x32x128xf32, #tpu.memory_space<vmem>>, vector<1x32x128xf32>
    %156 = vector.shape_cast %155 : vector<1x32x128xf32> to vector<32x128xf32>
    %cst_167 = arith.constant dense<0.000000e+00> : vector<14x128xf32>
    %157 = tpu.matmul %154, %156, %cst_167 {dimension_numbers = #tpu.dot_dimension_numbers<[1], [0], [0], [1], [0, 0, 1, 1], [], []>} : vector<14x32xf32>, vector<32x128xf32>, vector<14x128xf32> -> vector<14x128xf32>
    %158 = arith.addf %152, %157 : vector<14x128xf32>
    %c1_168 = arith.constant 1 : index
    %c2_169 = arith.constant 2 : index
    %c0_170 = arith.constant 0 : index
    %159 = vector.load %arg0[%c1_168, %c2_169, %c0_170] : memref<4x16x32xf32, #tpu.memory_space<vmem>>, vector<1x14x32xf32>
    %160 = vector.shape_cast %159 : vector<1x14x32xf32> to vector<14x32xf32>
    %c5_171 = arith.constant 5 : index
    %c0_172 = arith.constant 0 : index
    %c0_173 = arith.constant 0 : index
    %161 = vector.load %arg1[%c5_171, %c0_172, %c0_173] : memref<6x32x128xf32, #tpu.memory_space<vmem>>, vector<1x32x128xf32>
    %162 = vector.shape_cast %161 : vector<1x32x128xf32> to vector<32x128xf32>
    %cst_174 = arith.constant dense<0.000000e+00> : vector<14x128xf32>
    %163 = tpu.matmul %160, %162, %cst_174 {dimension_numbers = #tpu.dot_dimension_numbers<[1], [0], [0], [1], [0, 0, 1, 1], [], []>} : vector<14x32xf32>, vector<32x128xf32>, vector<14x128xf32> -> vector<14x128xf32>
    %164 = arith.addf %158, %163 : vector<14x128xf32>
    %165 = arith.maximumf %145, %164 : vector<14x128xf32>
    %166 = vector.broadcast %0 : vector<1x128xf32> to vector<14x128xf32>
    %167 = arith.addf %165, %166 : vector<14x128xf32>
    %cst_175 = arith.constant 0.000000e+00 : f32
    %168 = vector.broadcast %cst_175 : f32 to vector<14x128xf32>
    %169 = arith.maximumf %167, %168 : vector<14x128xf32>
    %c1_176 = arith.constant 1 : index
    %c0_177 = arith.constant 0 : index
    %c0_178 = arith.constant 0 : index
    %170 = vector.load %arg12[%c1_176, %c0_177, %c0_178] : memref<2x16x128xf32, #tpu.memory_space<vmem>>, vector<1x14x128xf32>
    %171 = vector.shape_cast %170 : vector<1x14x128xf32> to vector<14x128xf32>
    %172 = vector.shape_cast %169 : vector<14x128xf32> to vector<1x14x128xf32>
    tpu.vector_store %arg12[%c1_176, %c0_177, %c0_178], %172 {strides = array<i32>} : memref<2x16x128xf32, #tpu.memory_space<vmem>>, vector<1x14x128xf32>,
    %c0_179 = arith.constant 0 : index
    %c0_180 = arith.constant 0 : index
    %173 = vector.load %arg4[%c0_179, %c0_180] : memref<1x128xf32, #tpu.memory_space<vmem>>, vector<1x128xf32>
    %cst_181 = arith.constant 0.000000e+00 : f32
    %174 = vector.broadcast %cst_181 : f32 to vector<12x128xf32>
    %c0_182 = arith.constant 0 : index
    %c0_183 = arith.constant 0 : index
    %c0_184 = arith.constant 0 : index
    %175 = vector.load %arg12[%c0_182, %c0_183, %c0_184] : memref<2x16x128xf32, #tpu.memory_space<vmem>>, vector<1x12x128xf32>
    %176 = vector.shape_cast %175 : vector<1x12x128xf32> to vector<12x128xf32>
    %c0_185 = arith.constant 0 : index
    %c0_186 = arith.constant 0 : index
    %c0_187 = arith.constant 0 : index
    %177 = vector.load %arg3[%c0_185, %c0_186, %c0_187] : memref<6x128x128xf32, #tpu.memory_space<vmem>>, vector<1x128x128xf32>
    %178 = vector.shape_cast %177 : vector<1x128x128xf32> to vector<128x128xf32>
    %cst_188 = arith.constant dense<0.000000e+00> : vector<12x128xf32>
    %179 = tpu.matmul %176, %178, %cst_188 {dimension_numbers = #tpu.dot_dimension_numbers<[1], [0], [0], [1], [0, 0, 1, 1], [], []>} : vector<12x128xf32>, vector<128x128xf32>, vector<12x128xf32> -> vector<12x128xf32>
    %180 = arith.addf %174, %179 : vector<12x128xf32>
    %c1_189 = arith.constant 1 : index
    %c0_190 = arith.constant 0 : index
    %c0_191 = arith.constant 0 : index
    %181 = vector.load %arg12[%c1_189, %c0_190, %c0_191] : memref<2x16x128xf32, #tpu.memory_space<vmem>>, vector<1x12x128xf32>
    %182 = vector.shape_cast %181 : vector<1x12x128xf32> to vector<12x128xf32>
    %c2_192 = arith.constant 2 : index
    %c0_193 = arith.constant 0 : index
    %c0_194 = arith.constant 0 : index
    %183 = vector.load %arg3[%c2_192, %c0_193, %c0_194] : memref<6x128x128xf32, #tpu.memory_space<vmem>>, vector<1x128x128xf32>
    %184 = vector.shape_cast %183 : vector<1x128x128xf32> to vector<128x128xf32>
    %cst_195 = arith.constant dense<0.000000e+00> : vector<12x128xf32>
    %185 = tpu.matmul %182, %184, %cst_195 {dimension_numbers = #tpu.dot_dimension_numbers<[1], [0], [0], [1], [0, 0, 1, 1], [], []>} : vector<12x128xf32>, vector<128x128xf32>, vector<12x128xf32> -> vector<12x128xf32>
    %186 = arith.addf %180, %185 : vector<12x128xf32>
    %c0_196 = arith.constant 0 : index
    %c2_197 = arith.constant 2 : index
    %c0_198 = arith.constant 0 : index
    %187 = vector.load %arg12[%c0_196, %c2_197, %c0_198] : memref<2x16x128xf32, #tpu.memory_space<vmem>>, vector<1x12x128xf32>
    %188 = vector.shape_cast %187 : vector<1x12x128xf32> to vector<12x128xf32>
    %c4_199 = arith.constant 4 : index
    %c0_200 = arith.constant 0 : index
    %c0_201 = arith.constant 0 : index
    %189 = vector.load %arg3[%c4_199, %c0_200, %c0_201] : memref<6x128x128xf32, #tpu.memory_space<vmem>>, vector<1x128x128xf32>
    %190 = vector.shape_cast %189 : vector<1x128x128xf32> to vector<128x128xf32>
    %cst_202 = arith.constant dense<0.000000e+00> : vector<12x128xf32>
    %191 = tpu.matmul %188, %190, %cst_202 {dimension_numbers = #tpu.dot_dimension_numbers<[1], [0], [0], [1], [0, 0, 1, 1], [], []>} : vector<12x128xf32>, vector<128x128xf32>, vector<12x128xf32> -> vector<12x128xf32>
    %192 = arith.addf %186, %191 : vector<12x128xf32>
    %cst_203 = arith.constant 0.000000e+00 : f32
    %193 = vector.broadcast %cst_203 : f32 to vector<12x128xf32>
    %c0_204 = arith.constant 0 : index
    %c0_205 = arith.constant 0 : index
    %c0_206 = arith.constant 0 : index
    %194 = vector.load %arg12[%c0_204, %c0_205, %c0_206] : memref<2x16x128xf32, #tpu.memory_space<vmem>>, vector<1x12x128xf32>
    %195 = vector.shape_cast %194 : vector<1x12x128xf32> to vector<12x128xf32>
    %c1_207 = arith.constant 1 : index
    %c0_208 = arith.constant 0 : index
    %c0_209 = arith.constant 0 : index
    %196 = vector.load %arg3[%c1_207, %c0_208, %c0_209] : memref<6x128x128xf32, #tpu.memory_space<vmem>>, vector<1x128x128xf32>
    %197 = vector.shape_cast %196 : vector<1x128x128xf32> to vector<128x128xf32>
    %cst_210 = arith.constant dense<0.000000e+00> : vector<12x128xf32>
    %198 = tpu.matmul %195, %197, %cst_210 {dimension_numbers = #tpu.dot_dimension_numbers<[1], [0], [0], [1], [0, 0, 1, 1], [], []>} : vector<12x128xf32>, vector<128x128xf32>, vector<12x128xf32> -> vector<12x128xf32>
    %199 = arith.addf %193, %198 : vector<12x128xf32>
    %c1_211 = arith.constant 1 : index
    %c0_212 = arith.constant 0 : index
    %c0_213 = arith.constant 0 : index
    %200 = vector.load %arg12[%c1_211, %c0_212, %c0_213] : memref<2x16x128xf32, #tpu.memory_space<vmem>>, vector<1x12x128xf32>
    %201 = vector.shape_cast %200 : vector<1x12x128xf32> to vector<12x128xf32>
    %c3_214 = arith.constant 3 : index
    %c0_215 = arith.constant 0 : index
    %c0_216 = arith.constant 0 : index
    %202 = vector.load %arg3[%c3_214, %c0_215, %c0_216] : memref<6x128x128xf32, #tpu.memory_space<vmem>>, vector<1x128x128xf32>
    %203 = vector.shape_cast %202 : vector<1x128x128xf32> to vector<128x128xf32>
    %cst_217 = arith.constant dense<0.000000e+00> : vector<12x128xf32>
    %204 = tpu.matmul %201, %203, %cst_217 {dimension_numbers = #tpu.dot_dimension_numbers<[1], [0], [0], [1], [0, 0, 1, 1], [], []>} : vector<12x128xf32>, vector<128x128xf32>, vector<12x128xf32> -> vector<12x128xf32>
    %205 = arith.addf %199, %204 : vector<12x128xf32>
    %c0_218 = arith.constant 0 : index
    %c2_219 = arith.constant 2 : index
    %c0_220 = arith.constant 0 : index
    %206 = vector.load %arg12[%c0_218, %c2_219, %c0_220] : memref<2x16x128xf32, #tpu.memory_space<vmem>>, vector<1x12x128xf32>
    %207 = vector.shape_cast %206 : vector<1x12x128xf32> to vector<12x128xf32>
    %c5_221 = arith.constant 5 : index
    %c0_222 = arith.constant 0 : index
    %c0_223 = arith.constant 0 : index
    %208 = vector.load %arg3[%c5_221, %c0_222, %c0_223] : memref<6x128x128xf32, #tpu.memory_space<vmem>>, vector<1x128x128xf32>
    %209 = vector.shape_cast %208 : vector<1x128x128xf32> to vector<128x128xf32>
    %cst_224 = arith.constant dense<0.000000e+00> : vector<12x128xf32>
    %210 = tpu.matmul %207, %209, %cst_224 {dimension_numbers = #tpu.dot_dimension_numbers<[1], [0], [0], [1], [0, 0, 1, 1], [], []>} : vector<12x128xf32>, vector<128x128xf32>, vector<12x128xf32> -> vector<12x128xf32>
    %211 = arith.addf %205, %210 : vector<12x128xf32>
    %212 = arith.maximumf %192, %211 : vector<12x128xf32>
    %cst_225 = arith.constant 0.000000e+00 : f32
    %213 = vector.broadcast %cst_225 : f32 to vector<12x128xf32>
    %c1_226 = arith.constant 1 : index
    %c0_227 = arith.constant 0 : index
    %c0_228 = arith.constant 0 : index
    %214 = vector.load %arg12[%c1_226, %c0_227, %c0_228] : memref<2x16x128xf32, #tpu.memory_space<vmem>>, vector<1x12x128xf32>
    %215 = vector.shape_cast %214 : vector<1x12x128xf32> to vector<12x128xf32>
    %c0_229 = arith.constant 0 : index
    %c0_230 = arith.constant 0 : index
    %c0_231 = arith.constant 0 : index
    %216 = vector.load %arg3[%c0_229, %c0_230, %c0_231] : memref<6x128x128xf32, #tpu.memory_space<vmem>>, vector<1x128x128xf32>
    %217 = vector.shape_cast %216 : vector<1x128x128xf32> to vector<128x128xf32>
    %cst_232 = arith.constant dense<0.000000e+00> : vector<12x128xf32>
    %218 = tpu.matmul %215, %217, %cst_232 {dimension_numbers = #tpu.dot_dimension_numbers<[1], [0], [0], [1], [0, 0, 1, 1], [], []>} : vector<12x128xf32>, vector<128x128xf32>, vector<12x128xf32> -> vector<12x128xf32>
    %219 = arith.addf %213, %218 : vector<12x128xf32>
    %c0_233 = arith.constant 0 : index
    %c2_234 = arith.constant 2 : index
    %c0_235 = arith.constant 0 : index
    %220 = vector.load %arg12[%c0_233, %c2_234, %c0_235] : memref<2x16x128xf32, #tpu.memory_space<vmem>>, vector<1x12x128xf32>
    %221 = vector.shape_cast %220 : vector<1x12x128xf32> to vector<12x128xf32>
    %c2_236 = arith.constant 2 : index
    %c0_237 = arith.constant 0 : index
    %c0_238 = arith.constant 0 : index
    %222 = vector.load %arg3[%c2_236, %c0_237, %c0_238] : memref<6x128x128xf32, #tpu.memory_space<vmem>>, vector<1x128x128xf32>
    %223 = vector.shape_cast %222 : vector<1x128x128xf32> to vector<128x128xf32>
    %cst_239 = arith.constant dense<0.000000e+00> : vector<12x128xf32>
    %224 = tpu.matmul %221, %223, %cst_239 {dimension_numbers = #tpu.dot_dimension_numbers<[1], [0], [0], [1], [0, 0, 1, 1], [], []>} : vector<12x128xf32>, vector<128x128xf32>, vector<12x128xf32> -> vector<12x128xf32>
    %225 = arith.addf %219, %224 : vector<12x128xf32>
    %c1_240 = arith.constant 1 : index
    %c2_241 = arith.constant 2 : index
    %c0_242 = arith.constant 0 : index
    %226 = vector.load %arg12[%c1_240, %c2_241, %c0_242] : memref<2x16x128xf32, #tpu.memory_space<vmem>>, vector<1x12x128xf32>
    %227 = vector.shape_cast %226 : vector<1x12x128xf32> to vector<12x128xf32>
    %c4_243 = arith.constant 4 : index
    %c0_244 = arith.constant 0 : index
    %c0_245 = arith.constant 0 : index
    %228 = vector.load %arg3[%c4_243, %c0_244, %c0_245] : memref<6x128x128xf32, #tpu.memory_space<vmem>>, vector<1x128x128xf32>
    %229 = vector.shape_cast %228 : vector<1x128x128xf32> to vector<128x128xf32>
    %cst_246 = arith.constant dense<0.000000e+00> : vector<12x128xf32>
    %230 = tpu.matmul %227, %229, %cst_246 {dimension_numbers = #tpu.dot_dimension_numbers<[1], [0], [0], [1], [0, 0, 1, 1], [], []>} : vector<12x128xf32>, vector<128x128xf32>, vector<12x128xf32> -> vector<12x128xf32>
    %231 = arith.addf %225, %230 : vector<12x128xf32>
    %232 = arith.maximumf %212, %231 : vector<12x128xf32>
    %cst_247 = arith.constant 0.000000e+00 : f32
    %233 = vector.broadcast %cst_247 : f32 to vector<12x128xf32>
    %c1_248 = arith.constant 1 : index
    %c0_249 = arith.constant 0 : index
    %c0_250 = arith.constant 0 : index
    %234 = vector.load %arg12[%c1_248, %c0_249, %c0_250] : memref<2x16x128xf32, #tpu.memory_space<vmem>>, vector<1x12x128xf32>
    %235 = vector.shape_cast %234 : vector<1x12x128xf32> to vector<12x128xf32>
    %c1_251 = arith.constant 1 : index
    %c0_252 = arith.constant 0 : index
    %c0_253 = arith.constant 0 : index
    %236 = vector.load %arg3[%c1_251, %c0_252, %c0_253] : memref<6x128x128xf32, #tpu.memory_space<vmem>>, vector<1x128x128xf32>
    %237 = vector.shape_cast %236 : vector<1x128x128xf32> to vector<128x128xf32>
    %cst_254 = arith.constant dense<0.000000e+00> : vector<12x128xf32>
    %238 = tpu.matmul %235, %237, %cst_254 {dimension_numbers = #tpu.dot_dimension_numbers<[1], [0], [0], [1], [0, 0, 1, 1], [], []>} : vector<12x128xf32>, vector<128x128xf32>, vector<12x128xf32> -> vector<12x128xf32>
    %239 = arith.addf %233, %238 : vector<12x128xf32>
    %c0_255 = arith.constant 0 : index
    %c2_256 = arith.constant 2 : index
    %c0_257 = arith.constant 0 : index
    %240 = vector.load %arg12[%c0_255, %c2_256, %c0_257] : memref<2x16x128xf32, #tpu.memory_space<vmem>>, vector<1x12x128xf32>
    %241 = vector.shape_cast %240 : vector<1x12x128xf32> to vector<12x128xf32>
    %c3_258 = arith.constant 3 : index
    %c0_259 = arith.constant 0 : index
    %c0_260 = arith.constant 0 : index
    %242 = vector.load %arg3[%c3_258, %c0_259, %c0_260] : memref<6x128x128xf32, #tpu.memory_space<vmem>>, vector<1x128x128xf32>
    %243 = vector.shape_cast %242 : vector<1x128x128xf32> to vector<128x128xf32>
    %cst_261 = arith.constant dense<0.000000e+00> : vector<12x128xf32>
    %244 = tpu.matmul %241, %243, %cst_261 {dimension_numbers = #tpu.dot_dimension_numbers<[1], [0], [0], [1], [0, 0, 1, 1], [], []>} : vector<12x128xf32>, vector<128x128xf32>, vector<12x128xf32> -> vector<12x128xf32>
    %245 = arith.addf %239, %244 : vector<12x128xf32>
    %c1_262 = arith.constant 1 : index
    %c2_263 = arith.constant 2 : index
    %c0_264 = arith.constant 0 : index
    %246 = vector.load %arg12[%c1_262, %c2_263, %c0_264] : memref<2x16x128xf32, #tpu.memory_space<vmem>>, vector<1x12x128xf32>
    %247 = vector.shape_cast %246 : vector<1x12x128xf32> to vector<12x128xf32>
    %c5_265 = arith.constant 5 : index
    %c0_266 = arith.constant 0 : index
    %c0_267 = arith.constant 0 : index
    %248 = vector.load %arg3[%c5_265, %c0_266, %c0_267] : memref<6x128x128xf32, #tpu.memory_space<vmem>>, vector<1x128x128xf32>
    %249 = vector.shape_cast %248 : vector<1x128x128xf32> to vector<128x128xf32>
    %cst_268 = arith.constant dense<0.000000e+00> : vector<12x128xf32>
    %250 = tpu.matmul %247, %249, %cst_268 {dimension_numbers = #tpu.dot_dimension_numbers<[1], [0], [0], [1], [0, 0, 1, 1], [], []>} : vector<12x128xf32>, vector<128x128xf32>, vector<12x128xf32> -> vector<12x128xf32>
    %251 = arith.addf %245, %250 : vector<12x128xf32>
    %252 = arith.maximumf %232, %251 : vector<12x128xf32>
    %253 = vector.broadcast %173 : vector<1x128xf32> to vector<12x128xf32>
    %254 = arith.addf %252, %253 : vector<12x128xf32>
    %cst_269 = arith.constant 0.000000e+00 : f32
    %255 = vector.broadcast %cst_269 : f32 to vector<12x128xf32>
    %256 = arith.maximumf %254, %255 : vector<12x128xf32>
    %c0_270 = arith.constant 0 : index
    %c0_271 = arith.constant 0 : index
    %257 = vector.load %arg13[%c0_270, %c0_271] : memref<12x128xf32, #tpu.memory_space<vmem>>, vector<12x128xf32>
    tpu.vector_store %arg13[%c0_270, %c0_271], %256 {strides = array<i32>} : memref<12x128xf32, #tpu.memory_space<vmem>>, vector<12x128xf32>,
    %cst_272 = arith.constant 0.000000e+00 : f32
    %258 = vector.broadcast %cst_272 : f32 to vector<2x128xf32>
    %c0_273 = arith.constant 0 : index
    %c0_274 = arith.constant 0 : index
    %259 = vector.load %arg13[%c0_273, %c0_274] : memref<12x128xf32, #tpu.memory_space<vmem>>, vector<2x128xf32>
    %c0_275 = arith.constant 0 : index
    %c0_276 = arith.constant 0 : index
    %c0_277 = arith.constant 0 : index
    %260 = vector.load %arg5[%c0_275, %c0_276, %c0_277] : memref<6x128x128xf32, #tpu.memory_space<vmem>>, vector<1x128x128xf32>
    %261 = vector.shape_cast %260 : vector<1x128x128xf32> to vector<128x128xf32>
    %cst_278 = arith.constant dense<0.000000e+00> : vector<2x128xf32>
    %262 = tpu.matmul %259, %261, %cst_278 {dimension_numbers = #tpu.dot_dimension_numbers<[1], [0], [0], [1], [0, 0, 1, 1], [], []>} : vector<2x128xf32>, vector<128x128xf32>, vector<2x128xf32> -> vector<2x128xf32>
    %263 = arith.addf %258, %262 : vector<2x128xf32>
    %c2_279 = arith.constant 2 : index
    %c0_280 = arith.constant 0 : index
    %264 = vector.load %arg13[%c2_279, %c0_280] : memref<12x128xf32, #tpu.memory_space<vmem>>, vector<2x128xf32>
    %c1_281 = arith.constant 1 : index
    %c0_282 = arith.constant 0 : index
    %c0_283 = arith.constant 0 : index
    %265 = vector.load %arg5[%c1_281, %c0_282, %c0_283] : memref<6x128x128xf32, #tpu.memory_space<vmem>>, vector<1x128x128xf32>
    %266 = vector.shape_cast %265 : vector<1x128x128xf32> to vector<128x128xf32>
    %cst_284 = arith.constant dense<0.000000e+00> : vector<2x128xf32>
    %267 = tpu.matmul %264, %266, %cst_284 {dimension_numbers = #tpu.dot_dimension_numbers<[1], [0], [0], [1], [0, 0, 1, 1], [], []>} : vector<2x128xf32>, vector<128x128xf32>, vector<2x128xf32> -> vector<2x128xf32>
    %268 = arith.addf %263, %267 : vector<2x128xf32>
    %c4_285 = arith.constant 4 : index
    %c0_286 = arith.constant 0 : index
    %269 = vector.load %arg13[%c4_285, %c0_286] : memref<12x128xf32, #tpu.memory_space<vmem>>, vector<2x128xf32>
    %c2_287 = arith.constant 2 : index
    %c0_288 = arith.constant 0 : index
    %c0_289 = arith.constant 0 : index
    %270 = vector.load %arg5[%c2_287, %c0_288, %c0_289] : memref<6x128x128xf32, #tpu.memory_space<vmem>>, vector<1x128x128xf32>
    %271 = vector.shape_cast %270 : vector<1x128x128xf32> to vector<128x128xf32>
    %cst_290 = arith.constant dense<0.000000e+00> : vector<2x128xf32>
    %272 = tpu.matmul %269, %271, %cst_290 {dimension_numbers = #tpu.dot_dimension_numbers<[1], [0], [0], [1], [0, 0, 1, 1], [], []>} : vector<2x128xf32>, vector<128x128xf32>, vector<2x128xf32> -> vector<2x128xf32>
    %273 = arith.addf %268, %272 : vector<2x128xf32>
    %c6 = arith.constant 6 : index
    %c0_291 = arith.constant 0 : index
    %274 = vector.load %arg13[%c6, %c0_291] : memref<12x128xf32, #tpu.memory_space<vmem>>, vector<2x128xf32>
    %c3_292 = arith.constant 3 : index
    %c0_293 = arith.constant 0 : index
    %c0_294 = arith.constant 0 : index
    %275 = vector.load %arg5[%c3_292, %c0_293, %c0_294] : memref<6x128x128xf32, #tpu.memory_space<vmem>>, vector<1x128x128xf32>
    %276 = vector.shape_cast %275 : vector<1x128x128xf32> to vector<128x128xf32>
    %cst_295 = arith.constant dense<0.000000e+00> : vector<2x128xf32>
    %277 = tpu.matmul %274, %276, %cst_295 {dimension_numbers = #tpu.dot_dimension_numbers<[1], [0], [0], [1], [0, 0, 1, 1], [], []>} : vector<2x128xf32>, vector<128x128xf32>, vector<2x128xf32> -> vector<2x128xf32>
    %278 = arith.addf %273, %277 : vector<2x128xf32>
    %c8 = arith.constant 8 : index
    %c0_296 = arith.constant 0 : index
    %279 = vector.load %arg13[%c8, %c0_296] : memref<12x128xf32, #tpu.memory_space<vmem>>, vector<2x128xf32>
    %c4_297 = arith.constant 4 : index
    %c0_298 = arith.constant 0 : index
    %c0_299 = arith.constant 0 : index
    %280 = vector.load %arg5[%c4_297, %c0_298, %c0_299] : memref<6x128x128xf32, #tpu.memory_space<vmem>>, vector<1x128x128xf32>
    %281 = vector.shape_cast %280 : vector<1x128x128xf32> to vector<128x128xf32>
    %cst_300 = arith.constant dense<0.000000e+00> : vector<2x128xf32>
    %282 = tpu.matmul %279, %281, %cst_300 {dimension_numbers = #tpu.dot_dimension_numbers<[1], [0], [0], [1], [0, 0, 1, 1], [], []>} : vector<2x128xf32>, vector<128x128xf32>, vector<2x128xf32> -> vector<2x128xf32>
    %283 = arith.addf %278, %282 : vector<2x128xf32>
    %c10 = arith.constant 10 : index
    %c0_301 = arith.constant 0 : index
    %284 = vector.load %arg13[%c10, %c0_301] : memref<12x128xf32, #tpu.memory_space<vmem>>, vector<2x128xf32>
    %c5_302 = arith.constant 5 : index
    %c0_303 = arith.constant 0 : index
    %c0_304 = arith.constant 0 : index
    %285 = vector.load %arg5[%c5_302, %c0_303, %c0_304] : memref<6x128x128xf32, #tpu.memory_space<vmem>>, vector<1x128x128xf32>
    %286 = vector.shape_cast %285 : vector<1x128x128xf32> to vector<128x128xf32>
    %cst_305 = arith.constant dense<0.000000e+00> : vector<2x128xf32>
    %287 = tpu.matmul %284, %286, %cst_305 {dimension_numbers = #tpu.dot_dimension_numbers<[1], [0], [0], [1], [0, 0, 1, 1], [], []>} : vector<2x128xf32>, vector<128x128xf32>, vector<2x128xf32> -> vector<2x128xf32>
    %288 = arith.addf %283, %287 : vector<2x128xf32>
    %c0_306 = arith.constant 0 : index
    %c0_307 = arith.constant 0 : index
    %289 = vector.load %arg6[%c0_306, %c0_307] : memref<1x128xf32, #tpu.memory_space<vmem>>, vector<1x128xf32>
    %290 = vector.broadcast %289 : vector<1x128xf32> to vector<2x128xf32>
    %291 = arith.addf %288, %290 : vector<2x128xf32>
    %cst_308 = arith.constant 0.000000e+00 : f32
    %292 = vector.broadcast %cst_308 : f32 to vector<2x128xf32>
    %293 = arith.maximumf %291, %292 : vector<2x128xf32>
    %c0_309 = arith.constant 0 : index
    %c0_310 = arith.constant 0 : index
    %294 = vector.load %arg7[%c0_309, %c0_310] : memref<128x128xf32, #tpu.memory_space<vmem>>, vector<128x128xf32>
    %cst_311 = arith.constant dense<0.000000e+00> : vector<2x128xf32>
    %295 = tpu.matmul %293, %294, %cst_311 {dimension_numbers = #tpu.dot_dimension_numbers<[1], [0], [0], [1], [0, 0, 1, 1], [], []>} : vector<2x128xf32>, vector<128x128xf32>, vector<2x128xf32> -> vector<2x128xf32>
    %c0_312 = arith.constant 0 : index
    %c0_313 = arith.constant 0 : index
    %296 = vector.load %arg8[%c0_312, %c0_313] : memref<1x128xf32, #tpu.memory_space<vmem>>, vector<1x128xf32>
    %297 = vector.broadcast %296 : vector<1x128xf32> to vector<2x128xf32>
    %298 = arith.addf %295, %297 : vector<2x128xf32>
    %cst_314 = arith.constant 0.000000e+00 : f32
    %299 = vector.broadcast %cst_314 : f32 to vector<2x128xf32>
    %300 = arith.maximumf %298, %299 : vector<2x128xf32>
    %c0_315 = arith.constant 0 : index
    %c0_316 = arith.constant 0 : index
    %301 = vector.load %arg9[%c0_315, %c0_316] : memref<128x128xf32, #tpu.memory_space<vmem>>, vector<128x128xf32>
    %cst_317 = arith.constant dense<0.000000e+00> : vector<2x128xf32>
    %302 = tpu.matmul %300, %301, %cst_317 {dimension_numbers = #tpu.dot_dimension_numbers<[1], [0], [0], [1], [0, 0, 1, 1], [], []>} : vector<2x128xf32>, vector<128x128xf32>, vector<2x128xf32> -> vector<2x128xf32>
    %c0_318 = arith.constant 0 : index
    %c0_319 = arith.constant 0 : index
    %303 = vector.load %arg10[%c0_318, %c0_319] : memref<1x128xf32, #tpu.memory_space<vmem>>, vector<1x128xf32>
    %304 = vector.broadcast %303 : vector<1x128xf32> to vector<2x128xf32>
    %305 = arith.addf %302, %304 : vector<2x128xf32>
    %c0_320 = arith.constant 0 : index
    %c0_321 = arith.constant 0 : index
    %306 = vector.load %arg11[%c0_320, %c0_321] : memref<2x128xf32, #tpu.memory_space<vmem>>, vector<2x128xf32>
    tpu.vector_store %arg11[%c0_320, %c0_321], %305 {strides = array<i32>} : memref<2x128xf32, #tpu.memory_space<vmem>>, vector<2x128xf32>,
    return
  }
}

</mosaic_0001>

<bundles_post_ra>
// kernel: net_forward.1
= control target key start
LH: loop header
LB: loop body
LE: loop exit
PB: predicated region body
PF: predicated region fallthrough
CT: control target
= control target key end

     0   :  { %16 = vsyncpa [#allocation5], 0  ;;  %s6791_s0 = inlined_call_operand.vmem [shape: f32[4,16,32], index: 0, kind: input, shape index: {}]   ;;  %s6792_s1 = inlined_call_operand.hbm [shape: f32[6,32,128], index: 1, kind: input, shape index: {}]   ;;  %s6793_s2 = inlined_call_operand.vmem [shape: f32[1,128], index: 2, kind: input, shape index: {}]   ;;  %s6794_s3 = inlined_call_operand.hbm [shape: f32[6,128,128], index: 3, kind: input, shape index: {}]   ;;  %s6795_s4 = inlined_call_operand.vmem [shape: f32[1,128], index: 4, kind: input, shape index: {}]   ;;  %s6796_s5 = inlined_call_operand.hbm [shape: f32[6,128,128], index: 5, kind: input, shape index: {}]   ;;  %s6797_s6 = inlined_call_operand.vmem [shape: f32[1,128], index: 6, kind: input, shape index: {}]   ;;  %s6798_s7 = inlined_call_operand.vmem [shape: f32[128,128], index: 7, kind: input, shape index: {}]   ;;  %s6799_s8 = inlined_call_operand.vmem [shape: f32[1,128], index: 8, kind: input, shape index: {}]   ;;  %s6800_s9 = inlined_call_operand.hbm [shape: f32[128,128], index: 9, kind: input, shape index: {}]   ;;  %s6801_s10 = inlined_call_operand.vmem [shape: f32[1,128], index: 10, kind: input, shape index: {}]   ;;  %s6802_s11 = inlined_call_operand.hbm [shape: f32[2,128], index: 11, kind: output, shape index: {}]  }
   0x1   :  { %17 = vsyncpa [#allocation8], 0 }
   0x2   :  { %18 = vsyncpa [#allocation11], 0 }
   0x3   :  { %19 = vsyncpa [#allocation6], 0  ;;  %s5486_s17 = smov [#allocation7]   ;;  %s5487_s19 = smov [#allocation4]  }
   0x4   :  { %s41_s18 = sshll.u32 %s5486_s17, 4  ;;  %s27_s20 = sshll.u32 %s5487_s19, 4  ;;  %s42_s18 = int_to_ptr.vmem [resolvable:$true] %s41_s18  ;;  %s28_s20 = int_to_ptr.vmem [resolvable:$true] %s27_s20 }
   0x5   :  { %s5386_s21 = scalar_lea.vmem %s42_s18, 12288  ;;  %p5391_p1 = scmp.lt.s32.totalorder %s42_s18, %s42_s18 }
   0x6   :  { %p5387_p0 = scmp.ne.s32.totalorder %s42_s18, %s5386_s21  ;;  %p5392_p2 = scmp.lt.s32.totalorder %s5386_s21, %s5386_s21 }
   0x8   :  { %p5393_p3 = por %p5392_p2, %p5391_p1 }
   0xa   :  { %p5394_p4 = pnand %p5393_p3, %p5387_p0 }
   0xc   :  { %5397 = shalt.err (!%p5394_p4)
}
   0xd   :  { %s5488_s22 = smov 128   ;;  %s5489_s23 = smov 8  }
   0xe   :  { %47 = dma.hbm_to_vmem [thread:$0]  %s6794_s3, 12288, %s42_s18, [#allocation8], %s5488_s22, %s5488_s22, %s5489_s23  }
   0xf   :  { %s5406_s26 = scalar_lea.vmem %s28_s20, 3072  ;;  %p5411_p6 = scmp.lt.s32.totalorder %s28_s20, %s28_s20 }
  0x10   :  { %p5407_p5 = scmp.ne.s32.totalorder %s28_s20, %s5406_s26  ;;  %p5412_p7 = scmp.lt.s32.totalorder %s5406_s26, %s5406_s26 }
  0x12   :  { %p5413_p8 = por %p5412_p7, %p5411_p6 }
  0x14   :  { %p5414_p9 = pnand %p5413_p8, %p5407_p5 }
  0x16   :  { %5417 = shalt.err (!%p5414_p9)
}
  0x17   :  { %33 = dma.hbm_to_vmem [thread:$0]  %s6792_s1, 3072, %s28_s20, [#allocation5], %s5488_s22, %s5488_s22, %s5489_s23  }
  0x18   :  { %s5490_s29 = smov [#allocation9]   ;;  %s5491_s12 = smov [#allocation10]  }
  0x19   :  { %s55_s30 = sshll.u32 %s5490_s29, 4  ;;  %s73_s13 = sshll.u32 %s5491_s12, 4  ;;  %s56_s30 = int_to_ptr.vmem [resolvable:$true] %s55_s30  ;;  %s74_s13 = int_to_ptr.vmem [resolvable:$true] %s73_s13 }
  0x1a   :  { %s5426_s3 = scalar_lea.vmem %s56_s30, 12288  ;;  %p5431_p11 = scmp.lt.s32.totalorder %s56_s30, %s56_s30 }
  0x1b   :  { %p5427_p10 = scmp.ne.s32.totalorder %s56_s30, %s5426_s3  ;;  %p5432_p12 = scmp.lt.s32.totalorder %s5426_s3, %s5426_s3 }
  0x1d   :  { %p5433_p13 = por %p5432_p12, %p5431_p11 }
  0x1f   :  { %p5434_p0 = pnand %p5433_p13, %p5427_p10 }
  0x21   :  { %5437 = shalt.err (!%p5434_p0)
}
  0x22   :  { %61 = dma.hbm_to_vmem [thread:$0]  %s6796_s5, 12288, %s56_s30, [#allocation8], %s5488_s22, %s5488_s22, %s5489_s23  }
  0x23   :  { %s5446_s1 = scalar_lea.vmem %s74_s13, 2048  ;;  %p5451_p2 = scmp.lt.s32.totalorder %s74_s13, %s74_s13 }
  0x24   :  { %p5447_p1 = scmp.ne.s32.totalorder %s74_s13, %s5446_s1  ;;  %p5452_p3 = scmp.lt.s32.totalorder %s5446_s1, %s5446_s1 }
  0x26   :  { %p5453_p4 = por %p5452_p3, %p5451_p2 }
  0x28   :  { %p5454_p5 = pnand %p5453_p4, %p5447_p1 }
  0x2a   :  { %5457 = shalt.err (!%p5454_p5)
}
  0x2b   :  { %79 = dma.hbm_to_vmem [thread:$0]  %s6800_s9, 2048, %s74_s13, [#allocation11], %s5488_s22, %s5488_s22, %s5489_s23  }
  0x2c   :  { %5478 = dma.done.wait [#allocation5], 3072  }
  0x2d   :  { %5479 = vsyncadd [#allocation5], 4294964224 }
  0x2e   :  { %5480 = dma.done.wait [#allocation8], 24576  }
  0x2f   :  { %5481 = vsyncadd [#allocation8], 4294942720 }
  0x30   :  { %5482 = dma.done.wait [#allocation11], 2048  }
  0x31   :  { %5483 = vsyncadd [#allocation11], 4294965248  ;;  %v5579_v0 = vld [vmem:[#allocation4 + $0x58] sm:$0xff]  ;;  %v5583_v2 = vld [vmem:[#allocation4 + $0x50] sm:$0xff]  ;;  %vm109_vm0 = vcmask 261120   ;;  %vm5493_vm1 = vmmov 0  }
  0x32   :  { %v5581_v1 = vld [vmem:[#allocation4 + $0x18] sm:$0xff]  ;;  %4405 = vmatprep.subr.mxu0 %v5579_v0  ;;  %v5587_v3 = vld [vmem:[#allocation4 + $0x10] sm:$0xff]  ;;  %v5591_v4 = vld [vmem:[#allocation4 + $0x48] sm:$0xff]  ;;  %s5494_s13 = smov [#allocation12]  }
  0x33   :  { %4416 = vmatprep.subr.mxu1 %v5581_v1  ;;  %4406 = vmatpush3.msra.mxu0 %v5579_v0  ;;  %v5593_v5 = vld [vmem:[#allocation4 + $0x8] sm:$0xff]  ;;  %v5599_v6 = vld [vmem:[#allocation4 + $0x40] sm:$0xff]  ;;  %v5615_v9 = vld [vmem:[%s6791_s0] sm:$0xff]  ;;  %s3833_s3 = sshll.u32 %s5494_s13, 4  ;;  %s3834_s3 = int_to_ptr.vmem [resolvable:$true] %s3833_s3 }
  0x34   :  { %4417 = vmatpush3.msra.mxu1 %v5581_v1  ;;  %4407 = vmatprep.subr.mxu0 %v5583_v2  ;;  %v5601_v7 = vld [vmem:[#allocation4] sm:$0xff]  ;;  %v5622_v10 = vld [vmem:[%s6791_s0 + $0x18] sm:$0xff]  ;;  %v96_v11 = vld [vmem:[%s6791_s0 + $0x8] sm:$0xff]  ;;  %s5458_s14 = scalar_lea.vmem %s3834_s3, 32  ;;  %p5463_p7 = scmp.lt.s32.totalorder %s3834_s3, %s3834_s3 }
  0x35   :  { %4418 = vmatprep.subr.mxu1 %v5587_v3  ;;  %4408 = vmatpush3.msra.mxu0 %v5583_v2  ;;  %v5608_v8 = vld [vmem:[%s6791_s0 + $0x10] sm:$0xff]  ;;  %v5630_v12 = vld [vmem:[#allocation4 + $0x98] sm:$0xff]  ;;  %v5640_v14 = vld [vmem:[#allocation4 + $0x90] sm:$0xff]  ;;  %p5459_p6 = scmp.ne.s32.totalorder %s3834_s3, %s5458_s14  ;;  %p5464_p8 = scmp.lt.s32.totalorder %s5458_s14, %s5458_s14 }
  0x36   :  { %4419 = vmatpush3.msra.mxu1 %v5587_v3  ;;  %4409 = vmatprep.subr.mxu0 %v5591_v4  ;;  %v5632_v13 = vld [vmem:[#allocation4 + $0x78] sm:$0xff]  ;;  %v5642_v15 = vld [vmem:[#allocation4 + $0x70] sm:$0xff]  ;;  %v5648_v16 = vld [vmem:[#allocation4 + $0x88] sm:$0xff] }
  0x37   :  { %4420 = vmatprep.subr.mxu1 %v5593_v5  ;;  %4410 = vmatpush3.msra.mxu0 %v5591_v4  ;;  %v5650_v17 = vld [vmem:[#allocation4 + $0x68] sm:$0xff]  ;;  %v5656_v18 = vld [vmem:[#allocation4 + $0x80] sm:$0xff]  ;;  %v5665_v20 = vld [vmem:[%s6791_s0 + $0x20] sm:$0xff]  ;;  %p5465_p9 = por %p5464_p8, %p5463_p7 }
  0x38   :  { %4421 = vmatpush3.msra.mxu1 %v5593_v5  ;;  %4411 = vmatprep.subr.mxu0 %v5599_v6  ;;  %v5658_v19 = vld [vmem:[#allocation4 + $0x60] sm:$0xff]  ;;  %v5672_v21 = vld [vmem:[%s6791_s0 + $0x28] sm:$0xff]  ;;  %v5689_v24 = vld [vmem:[#allocation4 + $0x30] sm:$0xff] }
  0x39   :  { %4422 = vmatprep.subr.mxu1 %v5601_v7  ;;  %4412 = vmatpush3.msra.mxu0 %v5599_v6  ;;  %v5676_v22 = vld [vmem:[#allocation4 + $0x38] sm:$0xff]  ;;  %v5691_v25 = vld [vmem:[#allocation4 + $0xb0] sm:$0xff]  ;;  %v5698_v26 = vld [vmem:[#allocation4 + $0x28] sm:$0xff]  ;;  %p5466_p10 = pnand %p5465_p9, %p5459_p6 }
  0x3a   :  { %4413 = vmatprep.mubr.msk.f32.mxu0 %vm109_vm0, %v5608_v8  ;;  %4423 = vmatpush3.msra.mxu1 %v5601_v7  ;;  %v5681_v23 = vld [vmem:[#allocation4 + $0xb8] sm:$0xff]  ;;  %v5700_v27 = vld [vmem:[#allocation4 + $0xa8] sm:$0xff]  ;;  %v5706_v28 = vld [vmem:[#allocation4 + $0x20] sm:$0xff] }
  0x3b   :  { %4424 = vmatprep.mubr.msk.f32.mxu1 %vm109_vm0, %v5615_v9  ;;  %4414 = vmatmul.mubr.msk.f32.vlgmr.msra.gmra.mxu0 %vm109_vm0, %v5622_v10  ;;  %v5708_v29 = vld [vmem:[#allocation4 + $0xa0] sm:$0xff]  ;;  %v3865_v31 = vld [vmem:[%s6791_s0 + $0x38] sm:$0xff]  ;;  %v3876_v33 = vld [vmem:[%s6791_s0 + $0x28] sm:$0x3f] }
  0x3c   :  { %4425 = vmatmul.mubr.msk.f32.vlgmr.msra.gmra.mxu1 %vm109_vm0, %v96_v11  ;;  %4427 = vmatprep.subr.mxu0 %v5630_v12  ;;  %v5762_v30 = vld [vmem:[%s6791_s0 + $0x30] sm:$0xff]  ;;  %v5820_v32 = vld [vmem:[%s6791_s0 + $0x38] sm:$0x3f]  ;;  %v5847_v34 = vld [vmem:[%s6791_s0 + $0x2] sm:$0xff] }
  0x3d   :  { %4438 = vmatprep.subr.mxu1 %v5632_v13  ;;  %4428 = vmatpush3.msra.mxu0 %v5630_v12  ;;  %v5854_v35 = vld [vmem:[%s6791_s0 + $0xa] sm:$0x3f]  ;;  %v3895_v36 = vld [vmem:[%s6791_s0 + $0x12] sm:$0xff]  ;;  %v3896_v37 = vld [vmem:[%s6791_s0 + $0x1a] sm:$0x3f] }
  0x3e   :  { %4439 = vmatpush3.msra.mxu1 %v5632_v13  ;;  %4429 = vmatprep.subr.mxu0 %v5640_v14  ;;  %v5960_v38 = vld [vmem:[#allocation7 + $0x78] sm:$0xff]  ;;  %v5967_v39 = vld [vmem:[#allocation7 + $0x70] sm:$0xff]  ;;  %v5971_v40 = vld [vmem:[#allocation7 + $0x68] sm:$0xff] }
  0x3f   :  { %4440 = vmatprep.subr.mxu1 %v5642_v15  ;;  %4430 = vmatpush3.msra.mxu0 %v5640_v14  ;;  %v5975_v41 = vld [vmem:[#allocation7 + $0x60] sm:$0xff]  ;;  %v5979_v42 = vld [vmem:[#allocation7 + $0x58] sm:$0xff]  ;;  %v5983_v43 = vld [vmem:[#allocation7 + $0x50] sm:$0xff] }
  0x40   :  { %4441 = vmatpush3.msra.mxu1 %v5642_v15  ;;  %4431 = vmatprep.subr.mxu0 %v5648_v16  ;;  %v5989_v44 = vld [vmem:[#allocation7 + $0x48] sm:$0xff]  ;;  %v5993_v45 = vld [vmem:[#allocation7 + $0x40] sm:$0xff]  ;;  %v5995_v46 = vld [vmem:[#allocation7 + $0x38] sm:$0xff] }
  0x41   :  { %4442 = vmatprep.subr.mxu1 %v5650_v17  ;;  %4432 = vmatpush3.msra.mxu0 %v5648_v16  ;;  %v5999_v47 = vld [vmem:[#allocation7 + $0x30] sm:$0xff]  ;;  %v6003_v48 = vld [vmem:[#allocation7 + $0x28] sm:$0xff]  ;;  %v6007_v49 = vld [vmem:[#allocation7 + $0x20] sm:$0xff] }
  0x42   :  { %4443 = vmatpush3.msra.mxu1 %v5650_v17  ;;  %4433 = vmatprep.subr.mxu0 %v5656_v18  ;;  %v6011_v50 = vld [vmem:[#allocation7 + $0x18] sm:$0xff]  ;;  %v6015_v51 = vld [vmem:[#allocation7 + $0x10] sm:$0xff]  ;;  %v6019_v52 = vld [vmem:[#allocation7 + $0x8] sm:$0xff] }
  0x43   :  { %4444 = vmatprep.subr.mxu1 %v5658_v19  ;;  %4434 = vmatpush3.msra.mxu0 %v5656_v18  ;;  %v6023_v53 = vld [vmem:[#allocation7] sm:$0xff]  ;;  %v6029_v54 = vld [vmem:[#allocation7 + $0x178] sm:$0xff]  ;;  %v6033_v56 = vld [vmem:[#allocation7 + $0x170] sm:$0xff] }
  0x44   :  { %4435 = vmatprep.mubr.msk.f32.mxu0 %vm109_vm0, %v5665_v20  ;;  %4445 = vmatpush3.msra.mxu1 %v5658_v19  ;;  %v6031_v55 = vld [vmem:[#allocation7 + $0x1f8] sm:$0xff]  ;;  %v6040_v57 = vld [vmem:[#allocation7 + $0x168] sm:$0xff]  ;;  %v6044_v58 = vld [vmem:[#allocation7 + $0x160] sm:$0xff] }
  0x45   :  { %4436 = vmatmul.mubr.msk.f32.vlgmr.msra.gmra.mxu0 %vm109_vm0, %v5672_v21  ;;  %4446 = vmatprep.mubr.msk.f32.mxu1 %vm109_vm0, %v5608_v8  ;;  %6855 = vst [vmem:[#allocation17_spill] sm:$0xff] %v6044_v58  ;;  %v6048_v59 = vld [vmem:[#allocation7 + $0x158] sm:$0xff]  ;;  %v6051_v60 = vld [vmem:[#allocation7 + $0x150] sm:$0xff]  ;;  %v6056_v61 = vld [vmem:[#allocation7 + $0x148] sm:$0xff] }
  0x46   :  { %4449 = vmatprep.subr.mxu0 %v5676_v22  ;;  %4460 = vmatprep.subr.mxu1 %v5681_v23  ;;  %6856 = vst [vmem:[#allocation18_spill] sm:$0xff] %v6048_v59  ;;  %6857 = vst [vmem:[#allocation19_spill] sm:$0xff] %v6051_v60  ;;  %v6060_v62 = vld [vmem:[#allocation7 + $0x140] sm:$0xff]  ;;  %v6064_v63 = vld [vmem:[#allocation7 + $0x138] sm:$0xff] }
  0x47   :  { %4447 = vmatmul.mubr.msk.f32.vlgmr.msra.gmra.mxu1 %vm109_vm0, %v5622_v10  ;;  %4450 = vmatpush3.msra.mxu0 %v5676_v22  ;;  %6858 = vst [vmem:[#allocation20_spill] sm:$0xff] %v6056_v61  ;;  %6859 = vst [vmem:[#allocation21_spill] sm:$0xff] %v6060_v62 }
  0x48   :  { %4461 = vmatpush3.msra.mxu1 %v5681_v23  ;;  %4451 = vmatprep.subr.mxu0 %v5689_v24  ;;  %6860 = vst [vmem:[#allocation22_spill] sm:$0xff] %v6064_v63 }
  0x49   :  { %4462 = vmatprep.subr.mxu1 %v5691_v25  ;;  %4452 = vmatpush3.msra.mxu0 %v5689_v24 }
  0x4a   :  { %4463 = vmatpush3.msra.mxu1 %v5691_v25  ;;  %4453 = vmatprep.subr.mxu0 %v5698_v26 }
  0x4b   :  { %4464 = vmatprep.subr.mxu1 %v5700_v27  ;;  %4454 = vmatpush3.msra.mxu0 %v5698_v26 }
  0x4c   :  { %4465 = vmatpush3.msra.mxu1 %v5700_v27  ;;  %4455 = vmatprep.subr.mxu0 %v5706_v28 }
  0x4d   :  { %4466 = vmatprep.subr.mxu1 %v5708_v29  ;;  %4456 = vmatpush3.msra.mxu0 %v5706_v28 }
  0x4e   :  { %4457 = vmatprep.mubr.msk.f32.mxu0 %vm109_vm0, %v5615_v9  ;;  %4467 = vmatpush3.msra.mxu1 %v5708_v29 }
  0x4f   :  { %4458 = vmatmul.mubr.msk.f32.vlgmr.msra.gmra.mxu0 %vm109_vm0, %v96_v11  ;;  %4468 = vmatprep.mubr.msk.f32.mxu1 %vm109_vm0, %v5665_v20 }
  0x50   :  { %4471 = vmatprep.subr.mxu0 %v5579_v0  ;;  %4482 = vmatprep.subr.mxu1 %v5581_v1 }
  0x51   :  { %4469 = vmatmul.mubr.msk.f32.vlgmr.msra.gmra.mxu1 %vm109_vm0, %v5672_v21  ;;  %4472 = vmatpush3.msra.mxu0 %v5579_v0 }
  0x52   :  { %4483 = vmatpush3.msra.mxu1 %v5581_v1  ;;  %4473 = vmatprep.subr.mxu0 %v5583_v2 }
  0x53   :  { %4484 = vmatprep.subr.mxu1 %v5587_v3  ;;  %4474 = vmatpush3.msra.mxu0 %v5583_v2 }
  0x54   :  { %4485 = vmatpush3.msra.mxu1 %v5587_v3  ;;  %4475 = vmatprep.subr.mxu0 %v5591_v4 }
  0x55   :  { %4486 = vmatprep.subr.mxu1 %v5593_v5  ;;  %4476 = vmatpush3.msra.mxu0 %v5591_v4 }
  0x56   :  { %4487 = vmatpush3.msra.mxu1 %v5593_v5  ;;  %4477 = vmatprep.subr.mxu0 %v5599_v6 }
  0x57   :  { %4488 = vmatprep.subr.mxu1 %v5601_v7  ;;  %4478 = vmatpush3.msra.mxu0 %v5599_v6 }
  0x58   :  { %4479 = vmatprep.mubr.msk.f32.mxu0 %vm109_vm0, %v5665_v20  ;;  %4489 = vmatpush3.msra.mxu1 %v5601_v7 }
  0x59   :  { %4490 = vmatprep.mubr.msk.f32.mxu1 %vm109_vm0, %v5608_v8  ;;  %4480 = vmatmul.mubr.msk.f32.vlgmr.msra.gmra.mxu0 %vm109_vm0, %v5672_v21 }
  0x5a   :  { %4491 = vmatmul.mubr.msk.f32.vlgmr.msra.gmra.mxu1 %vm109_vm0, %v5622_v10  ;;  %4493 = vmatprep.subr.mxu0 %v5630_v12 }
  0x5b   :  { %4504 = vmatprep.subr.mxu1 %v5632_v13  ;;  %4494 = vmatpush3.msra.mxu0 %v5630_v12 }
  0x5c   :  { %4505 = vmatpush3.msra.mxu1 %v5632_v13  ;;  %4495 = vmatprep.subr.mxu0 %v5640_v14 }
  0x5d   :  { %4506 = vmatprep.subr.mxu1 %v5642_v15  ;;  %4496 = vmatpush3.msra.mxu0 %v5640_v14 }
  0x5e   :  { %4507 = vmatpush3.msra.mxu1 %v5642_v15  ;;  %4497 = vmatprep.subr.mxu0 %v5648_v16 }
  0x5f   :  { %4508 = vmatprep.subr.mxu1 %v5650_v17  ;;  %4498 = vmatpush3.msra.mxu0 %v5648_v16 }
  0x60   :  { %4509 = vmatpush3.msra.mxu1 %v5650_v17  ;;  %4499 = vmatprep.subr.mxu0 %v5656_v18 }
  0x61   :  { %4510 = vmatprep.subr.mxu1 %v5658_v19  ;;  %4500 = vmatpush3.msra.mxu0 %v5656_v18 }
  0x62   :  { %4501 = vmatprep.mubr.msk.f32.mxu0 %vm109_vm0, %v5762_v30  ;;  %4511 = vmatpush3.msra.mxu1 %v5658_v19 }
  0x63   :  { %4502 = vmatmul.mubr.msk.f32.vlgmr.msra.gmra.mxu0 %vm109_vm0, %v3865_v31  ;;  %4512 = vmatprep.mubr.msk.f32.mxu1 %vm109_vm0, %v5665_v20 }
  0x64   :  { %4515 = vmatprep.subr.mxu0 %v5676_v22  ;;  %4526 = vmatprep.subr.mxu1 %v5681_v23 }
  0x65   :  { %4513 = vmatmul.mubr.msk.f32.vlgmr.msra.gmra.mxu1 %vm109_vm0, %v5672_v21  ;;  %4516 = vmatpush3.msra.mxu0 %v5676_v22 }
  0x66   :  { %4527 = vmatpush3.msra.mxu1 %v5681_v23  ;;  %4517 = vmatprep.subr.mxu0 %v5689_v24 }
  0x67   :  { %4528 = vmatprep.subr.mxu1 %v5691_v25  ;;  %4518 = vmatpush3.msra.mxu0 %v5689_v24 }
  0x68   :  { %4529 = vmatpush3.msra.mxu1 %v5691_v25  ;;  %4519 = vmatprep.subr.mxu0 %v5698_v26 }
  0x69   :  { %4530 = vmatprep.subr.mxu1 %v5700_v27  ;;  %4520 = vmatpush3.msra.mxu0 %v5698_v26 }
  0x6a   :  { %4531 = vmatpush3.msra.mxu1 %v5700_v27  ;;  %4521 = vmatprep.subr.mxu0 %v5706_v28 }
  0x6b   :  { %4532 = vmatprep.subr.mxu1 %v5708_v29  ;;  %4522 = vmatpush3.msra.mxu0 %v5706_v28 }
  0x6c   :  { %4523 = vmatprep.mubr.msk.f32.mxu0 %vm109_vm0, %v5608_v8  ;;  %4533 = vmatpush3.msra.mxu1 %v5708_v29 }
  0x6d   :  { %4524 = vmatmul.mubr.msk.f32.vlgmr.msra.gmra.mxu0 %vm109_vm0, %v5622_v10  ;;  %4534 = vmatprep.mubr.msk.f32.mxu1 %vm109_vm0, %v5762_v30 }
  0x6e   :  { %4537 = vmatprep.subr.mxu0 %v5579_v0  ;;  %4548 = vmatprep.subr.mxu1 %v5581_v1 }
  0x6f   :  { %4535 = vmatmul.mubr.msk.f32.vlgmr.msra.gmra.mxu1 %vm109_vm0, %v3865_v31  ;;  %4538 = vmatpush3.msra.mxu0 %v5579_v0 }
  0x70   :  { %4549 = vmatpush3.msra.mxu1 %v5581_v1  ;;  %4539 = vmatprep.subr.mxu0 %v5583_v2 }
  0x71   :  { %4550 = vmatprep.subr.mxu1 %v5587_v3  ;;  %4540 = vmatpush3.msra.mxu0 %v5583_v2 }
  0x72   :  { %4551 = vmatpush3.msra.mxu1 %v5587_v3  ;;  %4541 = vmatprep.subr.mxu0 %v5591_v4 }
  0x73   :  { %4552 = vmatprep.subr.mxu1 %v5593_v5  ;;  %4542 = vmatpush3.msra.mxu0 %v5591_v4 }
  0x74   :  { %4553 = vmatpush3.msra.mxu1 %v5593_v5  ;;  %4543 = vmatprep.subr.mxu0 %v5599_v6 }
  0x75   :  { %4554 = vmatprep.subr.mxu1 %v5601_v7  ;;  %4544 = vmatpush3.msra.mxu0 %v5599_v6 }
  0x76   :  { %4545 = vmatprep.mubr.msk.f32.mxu0 %vm109_vm0, %v5762_v30  ;;  %4555 = vmatpush3.msra.mxu1 %v5601_v7 }
  0x77   :  { %4556 = vmatprep.mubr.msk.f32.mxu1 %vm109_vm0, %v5665_v20  ;;  %4546 = vmatmul.mubr.msk.f32.vlgmr.msra.gmra.mxu0 %vm109_vm0, %v5820_v32 }
  0x78   :  { %4557 = vmatmul.mubr.msk.f32.vlgmr.msra.gmra.mxu1 %vm109_vm0, %v3876_v33  ;;  %4559 = vmatprep.subr.mxu0 %v5630_v12 }
  0x79   :  { %4570 = vmatprep.subr.mxu1 %v5632_v13  ;;  %4560 = vmatpush3.msra.mxu0 %v5630_v12 }
  0x7a   :  { %4571 = vmatpush3.msra.mxu1 %v5632_v13  ;;  %4561 = vmatprep.subr.mxu0 %v5640_v14 }
  0x7b   :  { %4572 = vmatprep.subr.mxu1 %v5642_v15  ;;  %4562 = vmatpush3.msra.mxu0 %v5640_v14 }
  0x7c   :  { %4573 = vmatpush3.msra.mxu1 %v5642_v15  ;;  %4563 = vmatprep.subr.mxu0 %v5648_v16 }
  0x7d   :  { %4574 = vmatprep.subr.mxu1 %v5650_v17  ;;  %4564 = vmatpush3.msra.mxu0 %v5648_v16 }
  0x7e   :  { %4575 = vmatpush3.msra.mxu1 %v5650_v17  ;;  %4565 = vmatprep.subr.mxu0 %v5656_v18 }
  0x7f   :  { %4576 = vmatprep.subr.mxu1 %v5658_v19  ;;  %4566 = vmatpush3.msra.mxu0 %v5656_v18 }
  0x80   :  { %4567 = vmatprep.mubr.msk.f32.mxu0 %vm109_vm0, %v5847_v34  ;;  %4577 = vmatpush3.msra.mxu1 %v5658_v19 }
  0x81   :  { %4568 = vmatmul.mubr.msk.f32.vlgmr.msra.gmra.mxu0 %vm109_vm0, %v5854_v35  ;;  %4578 = vmatprep.mubr.msk.f32.mxu1 %vm109_vm0, %v5762_v30 }
  0x82   :  { %4581 = vmatprep.subr.mxu0 %v5676_v22  ;;  %4592 = vmatprep.subr.mxu1 %v5681_v23 }
  0x83   :  { %4579 = vmatmul.mubr.msk.f32.vlgmr.msra.gmra.mxu1 %vm109_vm0, %v5820_v32  ;;  %4582 = vmatpush3.msra.mxu0 %v5676_v22 }
  0x84   :  { %4593 = vmatpush3.msra.mxu1 %v5681_v23  ;;  %4583 = vmatprep.subr.mxu0 %v5689_v24 }
  0x85   :  { %4594 = vmatprep.subr.mxu1 %v5691_v25  ;;  %4584 = vmatpush3.msra.mxu0 %v5689_v24 }
  0x86   :  { %4595 = vmatpush3.msra.mxu1 %v5691_v25  ;;  %4585 = vmatprep.subr.mxu0 %v5698_v26 }
  0x87   :  { %4596 = vmatprep.subr.mxu1 %v5700_v27  ;;  %4586 = vmatpush3.msra.mxu0 %v5698_v26 }
  0x88   :  { %4597 = vmatpush3.msra.mxu1 %v5700_v27  ;;  %4587 = vmatprep.subr.mxu0 %v5706_v28 }
  0x89   :  { %4598 = vmatprep.subr.mxu1 %v5708_v29  ;;  %4588 = vmatpush3.msra.mxu0 %v5706_v28 }
  0x8a   :  { %4589 = vmatprep.mubr.msk.f32.mxu0 %vm109_vm0, %v5665_v20  ;;  %4599 = vmatpush3.msra.mxu1 %v5708_v29 }
  0x8b   :  { %4590 = vmatmul.mubr.msk.f32.vlgmr.msra.gmra.mxu0 %vm109_vm0, %v3876_v33  ;;  %4600 = vmatprep.mubr.msk.f32.mxu1 %vm109_vm0, %v5847_v34 }
  0x8c   :  { %4603 = vmatprep.subr.mxu0 %v5579_v0  ;;  %4614 = vmatprep.subr.mxu1 %v5581_v1 }
  0x8d   :  { %4601 = vmatmul.mubr.msk.f32.vlgmr.msra.gmra.mxu1 %vm109_vm0, %v5854_v35  ;;  %4604 = vmatpush3.msra.mxu0 %v5579_v0  ;;  %v6068_v0 = vld [vmem:[#allocation7 + $0x130] sm:$0xff] }
  0x8e   :  { %4615 = vmatpush3.msra.mxu1 %v5581_v1  ;;  %4605 = vmatprep.subr.mxu0 %v5583_v2  ;;  %6861 = vst [vmem:[#allocation23_spill] sm:$0xff] %v6068_v0  ;;  %v6072_v1 = vld [vmem:[#allocation7 + $0x128] sm:$0xff] }
  0x8f   :  { %4616 = vmatprep.subr.mxu1 %v5587_v3  ;;  %4606 = vmatpush3.msra.mxu0 %v5583_v2  ;;  %6862 = vst [vmem:[#allocation24_spill] sm:$0xff] %v6072_v1  ;;  %v6076_v2 = vld [vmem:[#allocation7 + $0x120] sm:$0xff] }
  0x90   :  { %4617 = vmatpush3.msra.mxu1 %v5587_v3  ;;  %4607 = vmatprep.subr.mxu0 %v5591_v4  ;;  %6863 = vst [vmem:[#allocation25_spill] sm:$0xff] %v6076_v2  ;;  %v6080_v3 = vld [vmem:[#allocation7 + $0x118] sm:$0xff] }
  0x91   :  { %4618 = vmatprep.subr.mxu1 %v5593_v5  ;;  %4608 = vmatpush3.msra.mxu0 %v5591_v4  ;;  %6864 = vst [vmem:[#allocation26_spill] sm:$0xff] %v6080_v3  ;;  %v6084_v4 = vld [vmem:[#allocation7 + $0x110] sm:$0xff] }
  0x92   :  { %4619 = vmatpush3.msra.mxu1 %v5593_v5  ;;  %4609 = vmatprep.subr.mxu0 %v5599_v6  ;;  %6865 = vst [vmem:[#allocation27_spill] sm:$0xff] %v6084_v4  ;;  %v6088_v5 = vld [vmem:[#allocation7 + $0x108] sm:$0xff] }
  0x93   :  { %4620 = vmatprep.subr.mxu1 %v5601_v7  ;;  %4610 = vmatpush3.msra.mxu0 %v5599_v6  ;;  %6866 = vst [vmem:[#allocation28_spill] sm:$0xff] %v6088_v5  ;;  %v6090_v6 = vld [vmem:[#allocation7 + $0x100] sm:$0xff] }
  0x94   :  { %4611 = vmatprep.mubr.msk.f32.mxu0 %vm109_vm0, %v5847_v34  ;;  %4621 = vmatpush3.msra.mxu1 %v5601_v7  ;;  %6867 = vst [vmem:[#allocation29_spill] sm:$0xff] %v6090_v6  ;;  %v6094_v7 = vld [vmem:[#allocation7 + $0x278] sm:$0xff] }
  0x95   :  { %4622 = vmatprep.mubr.msk.f32.mxu1 %vm109_vm0, %v5762_v30  ;;  %4612 = vmatmul.mubr.msk.f32.vlgmr.msra.gmra.mxu0 %vm109_vm0, %v5854_v35 }
  0x96   :  { %4623 = vmatmul.mubr.msk.f32.vlgmr.msra.gmra.mxu1 %vm109_vm0, %v5820_v32  ;;  %4625 = vmatprep.subr.mxu0 %v5630_v12 }
  0x97   :  { %4636 = vmatprep.subr.mxu1 %v5632_v13  ;;  %4626 = vmatpush3.msra.mxu0 %v5630_v12 }
  0x98   :  { %4637 = vmatpush3.msra.mxu1 %v5632_v13  ;;  %4627 = vmatprep.subr.mxu0 %v5640_v14 }
  0x99   :  { %4638 = vmatprep.subr.mxu1 %v5642_v15  ;;  %4628 = vmatpush3.msra.mxu0 %v5640_v14 }
  0x9a   :  { %4639 = vmatpush3.msra.mxu1 %v5642_v15  ;;  %4629 = vmatprep.subr.mxu0 %v5648_v16 }
  0x9b   :  { %4640 = vmatprep.subr.mxu1 %v5650_v17  ;;  %4630 = vmatpush3.msra.mxu0 %v5648_v16 }
  0x9c   :  { %4641 = vmatpush3.msra.mxu1 %v5650_v17  ;;  %4631 = vmatprep.subr.mxu0 %v5656_v18 }
  0x9d   :  { %4642 = vmatprep.subr.mxu1 %v5658_v19  ;;  %4632 = vmatpush3.msra.mxu0 %v5656_v18 }
  0x9e   :  { %4633 = vmatprep.mubr.msk.f32.mxu0 %vm109_vm0, %v3895_v36  ;;  %4643 = vmatpush3.msra.mxu1 %v5658_v19 }
  0x9f   :  { %4634 = vmatmul.mubr.msk.f32.vlgmr.msra.gmra.mxu0 %vm109_vm0, %v3896_v37  ;;  %4644 = vmatprep.mubr.msk.f32.mxu1 %vm109_vm0, %v5847_v34 }
  0xa0   :  { %4647 = vmatprep.subr.mxu0 %v5676_v22  ;;  %4658 = vmatprep.subr.mxu1 %v5681_v23 }
  0xa1   :  { %4645 = vmatmul.mubr.msk.f32.vlgmr.msra.gmra.mxu1 %vm109_vm0, %v5854_v35  ;;  %4648 = vmatpush3.msra.mxu0 %v5676_v22 }
  0xa2   :  { %4659 = vmatpush3.msra.mxu1 %v5681_v23  ;;  %4649 = vmatprep.subr.mxu0 %v5689_v24 }
  0xa3   :  { %4660 = vmatprep.subr.mxu1 %v5691_v25  ;;  %4650 = vmatpush3.msra.mxu0 %v5689_v24 }
  0xa4   :  { %4661 = vmatpush3.msra.mxu1 %v5691_v25  ;;  %4651 = vmatprep.subr.mxu0 %v5698_v26 }
  0xa5   :  { %4662 = vmatprep.subr.mxu1 %v5700_v27  ;;  %4652 = vmatpush3.msra.mxu0 %v5698_v26 }
  0xa6   :  { %4663 = vmatpush3.msra.mxu1 %v5700_v27  ;;  %4653 = vmatprep.subr.mxu0 %v5706_v28 }
  0xa7   :  { %4664 = vmatprep.subr.mxu1 %v5708_v29  ;;  %4654 = vmatpush3.msra.mxu0 %v5706_v28 }
  0xa8   :  { %4655 = vmatprep.mubr.msk.f32.mxu0 %vm109_vm0, %v5762_v30  ;;  %4665 = vmatpush3.msra.mxu1 %v5708_v29 }
  0xa9   :  { %4666 = vmatprep.mubr.msk.f32.mxu1 %vm109_vm0, %v3895_v36  ;;  %4656 = vmatmul.mubr.msk.f32.vlgmr.msra.gmra.mxu0 %vm109_vm0, %v5820_v32 }
  0xaa   :  { %4667 = vmatmul.mubr.msk.f32.vlgmr.msra.gmra.mxu1 %vm109_vm0, %v3896_v37  ;;  %4704 = vmatprep.subr.mxu1 %v5960_v38 }
  0xab   :  { %4705 = vmatpush3.msra.mxu1 %v5960_v38  ;;  %4669 = vmatprep.subr.mxu0 %v6029_v54 }
  0xac   :  { %4706 = vmatprep.subr.mxu1 %v5967_v39  ;;  %4670 = vmatpush3.msra.mxu0 %v6029_v54 }
  0xad   :  { %4707 = vmatpush3.msra.mxu1 %v5967_v39  ;;  %4671 = vmatprep.subr.mxu0 %v6033_v56 }
  0xae   :  { %4708 = vmatprep.subr.mxu1 %v5971_v40  ;;  %4672 = vmatpush3.msra.mxu0 %v6033_v56 }
  0xaf   :  { %4709 = vmatpush3.msra.mxu1 %v5971_v40  ;;  %4673 = vmatprep.subr.mxu0 %v6040_v57 }
  0xb0   :  { %4710 = vmatprep.subr.mxu1 %v5975_v41  ;;  %4674 = vmatpush3.msra.mxu0 %v6040_v57 }
  0xb1   :  { %4711 = vmatpush3.msra.mxu1 %v5975_v41  ;;  %4675 = vmatprep.subr.mxu0 %v6044_v58 }
  0xb2   :  { %4712 = vmatprep.subr.mxu1 %v5979_v42  ;;  %4676 = vmatpush3.msra.mxu0 %v6044_v58 }
  0xb3   :  { %4713 = vmatpush3.msra.mxu1 %v5979_v42  ;;  %4677 = vmatprep.subr.mxu0 %v6048_v59 }
  0xb4   :  { %4714 = vmatprep.subr.mxu1 %v5983_v43  ;;  %4678 = vmatpush3.msra.mxu0 %v6048_v59 }
  0xb5   :  { %4715 = vmatpush3.msra.mxu1 %v5983_v43  ;;  %4679 = vmatprep.subr.mxu0 %v6051_v60 }
  0xb6   :  { %4716 = vmatprep.subr.mxu1 %v5989_v44  ;;  %4680 = vmatpush3.msra.mxu0 %v6051_v60 }
  0xb7   :  { %4717 = vmatpush3.msra.mxu1 %v5989_v44  ;;  %4681 = vmatprep.subr.mxu0 %v6056_v61 }
  0xb8   :  { %4718 = vmatprep.subr.mxu1 %v5993_v45  ;;  %4682 = vmatpush3.msra.mxu0 %v6056_v61 }
  0xb9   :  { %4719 = vmatpush3.msra.mxu1 %v5993_v45  ;;  %4683 = vmatprep.subr.mxu0 %v6060_v62 }
  0xba   :  { %4720 = vmatprep.subr.mxu1 %v5995_v46  ;;  %4684 = vmatpush3.msra.mxu0 %v6060_v62 }
  0xbb   :  { %4721 = vmatpush3.msra.mxu1 %v5995_v46  ;;  %4685 = vmatprep.subr.mxu0 %v6064_v63 }
  0xbc   :  { %4722 = vmatprep.subr.mxu1 %v5999_v47  ;;  %4686 = vmatpush3.msra.mxu0 %v6064_v63 }
  0xbd   :  { %4723 = vmatpush3.msra.mxu1 %v5999_v47  ;;  %4687 = vmatprep.subr.mxu0 %v6068_v0 }
  0xbe   :  { %4724 = vmatprep.subr.mxu1 %v6003_v48  ;;  %4688 = vmatpush3.msra.mxu0 %v6068_v0 }
  0xbf   :  { %4725 = vmatpush3.msra.mxu1 %v6003_v48  ;;  %4689 = vmatprep.subr.mxu0 %v6072_v1 }
  0xc0   :  { %4726 = vmatprep.subr.mxu1 %v6007_v49  ;;  %4690 = vmatpush3.msra.mxu0 %v6072_v1 }
  0xc1   :  { %4727 = vmatpush3.msra.mxu1 %v6007_v49  ;;  %4691 = vmatprep.subr.mxu0 %v6076_v2 }
  0xc2   :  { %4728 = vmatprep.subr.mxu1 %v6011_v50  ;;  %4692 = vmatpush3.msra.mxu0 %v6076_v2 }
  0xc3   :  { %4729 = vmatpush3.msra.mxu1 %v6011_v50  ;;  %4693 = vmatprep.subr.mxu0 %v6080_v3 }
  0xc4   :  { %4730 = vmatprep.subr.mxu1 %v6015_v51  ;;  %4694 = vmatpush3.msra.mxu0 %v6080_v3 }
  0xc5   :  { %4731 = vmatpush3.msra.mxu1 %v6015_v51  ;;  %4695 = vmatprep.subr.mxu0 %v6084_v4 }
  0xc6   :  { %4732 = vmatprep.subr.mxu1 %v6019_v52  ;;  %4696 = vmatpush3.msra.mxu0 %v6084_v4 }
  0xc7   :  { %4733 = vmatpush3.msra.mxu1 %v6019_v52  ;;  %4697 = vmatprep.subr.mxu0 %v6088_v5 }
  0xc8   :  { %4734 = vmatprep.subr.mxu1 %v6023_v53  ;;  %4698 = vmatpush3.msra.mxu0 %v6088_v5 }
  0xc9   :  { %4735 = vmatpush3.msra.mxu1 %v6023_v53  ;;  %4699 = vmatprep.subr.mxu0 %v6090_v6 }
  0xca   :  { %4774 = vmatprep.subr.mxu1 %v6031_v55  ;;  %4700 = vmatpush3.msra.mxu0 %v6090_v6 }
  0xcb   :  { %4739 = vmatprep.subr.mxu0 %v6094_v7 }
  0xfb   :  { %v4415_v8 = vpop.f32.mrf.mxu0 }
  0xfc   :  { %v4426_v9 = vpop.f32.mrf.mxu1 }
  0xfd   :  { %v182_v10 = vpop.f32.mrf.mxu0  ;;  %v269_v28 = vadd.f32 %v4426_v9, %v4415_v8  ;;  %v6102_v9 = vld [vmem:[%s6793_s2] ss:$0 sm:$0xff] }
  0xfe   :  { %v263_v11 = vpop.f32.mrf.mxu1 }
  0xff   :  { %v264_v31 = vadd.f32 %v263_v11, %v182_v10 }
 0x105   :  { %v4437_v12 = vpop.f32.mrf.mxu0 }
 0x106   :  { %v362_v33 = vadd.f32 %v4437_v12, %v269_v28  ;;  %v6144_v28 = vld [vmem:[#allocation7 + $0x1b0] sm:$0xff] }
 0x107   :  { %v4448_v13 = vpop.f32.mrf.mxu1  ;;  %v352_v14 = vpop.f32.mrf.mxu0  ;;  %6874 = vst [vmem:[#allocation36_spill] sm:$0xff] %v6144_v28 }
 0x108   :  { %v361_v5 = vadd.f32 %v352_v14, %v264_v31  ;;  %v6148_v31 = vld [vmem:[#allocation7 + $0x1a8] sm:$0xff] }
 0x109   :  { %v439_v15 = vpop.f32.mrf.mxu1  ;;  %6875 = vst [vmem:[#allocation37_spill] sm:$0xff] %v6148_v31 }
 0x10f   :  { %v4459_v16 = vpop.f32.mrf.mxu0 }
 0x110   :  { %v520_v23 = vadd.f32 %v4459_v16, %v4448_v13 }
 0x111   :  { %v4470_v17 = vpop.f32.mrf.mxu1  ;;  %v514_v18 = vpop.f32.mrf.mxu0 }
 0x112   :  { %v515_v26 = vadd.f32 %v514_v18, %v439_v15  ;;  %v604_v29 = vadd.f32 %v4470_v17, %v520_v23  ;;  %v6132_v23 = vld [vmem:[#allocation7 + $0x1c8] sm:$0xff] }
 0x113   :  { %v594_v19 = vpop.f32.mrf.mxu1  ;;  %6871 = vst [vmem:[#allocation33_spill] sm:$0xff] %v6132_v23 }
 0x114   :  { %v603_v34 = vadd.f32 %v594_v19, %v515_v26  ;;  %v606_v4 = vmax.f32 %v362_v33, %v604_v29 }
 0x116   :  { %v605_v1 = vmax.f32 %v361_v5, %v603_v34  ;;  %v6152_v34 = vld [vmem:[#allocation7 + $0x1a0] sm:$0xff] }
 0x117   :  { %6876 = vst [vmem:[#allocation38_spill] sm:$0xff] %v6152_v34 }
 0x119   :  { %v4481_v20 = vpop.f32.mrf.mxu0 }
 0x11a   :  { %v4492_v21 = vpop.f32.mrf.mxu1 }
 0x11b   :  { %v673_v22 = vpop.f32.mrf.mxu0  ;;  %v754_v30 = vadd.f32 %v4492_v21, %v4481_v20  ;;  %v6124_v21 = vld [vmem:[#allocation7 + $0x1d8] sm:$0xff] }
 0x11c   :  { %v748_v24 = vpop.f32.mrf.mxu1  ;;  %6869 = vst [vmem:[#allocation31_spill] sm:$0xff] %v6124_v21 }
 0x11d   :  { %v749_v35 = vadd.f32 %v748_v24, %v673_v22  ;;  %v6128_v22 = vld [vmem:[#allocation7 + $0x1d0] sm:$0xff]  ;;  %v6136_v24 = vld [vmem:[#allocation7 + $0x1c0] sm:$0xff] }
 0x11e   :  { %6870 = vst [vmem:[#allocation32_spill] sm:$0xff] %v6128_v22  ;;  %6872 = vst [vmem:[#allocation34_spill] sm:$0xff] %v6136_v24 }
 0x123   :  { %v4503_v25 = vpop.f32.mrf.mxu0 }
 0x124   :  { %v842_v36 = vadd.f32 %v4503_v25, %v754_v30 }
 0x125   :  { %v4514_v27 = vpop.f32.mrf.mxu1  ;;  %v832_v32 = vpop.f32.mrf.mxu0 }
 0x126   :  { %v841_v3 = vadd.f32 %v832_v32, %v749_v35  ;;  %v844_v15 = vmax.f32 %v606_v4, %v842_v36  ;;  %v6112_v4 = vld [vmem:[#allocation7 + $0x1f0] sm:$0xff]  ;;  %v6156_v35 = vld [vmem:[#allocation7 + $0x198] sm:$0xff] }
 0x127   :  { %v911_v37 = vpop.f32.mrf.mxu1  ;;  %6877 = vst [vmem:[#allocation39_spill] sm:$0xff] %v6156_v35 }
 0x128   :  { %v843_v11 = vmax.f32 %v605_v1, %v841_v3  ;;  %v6116_v1 = vld [vmem:[#allocation7 + $0x1e8] sm:$0xff]  ;;  %v6120_v3 = vld [vmem:[#allocation7 + $0x1e0] sm:$0xff] }
 0x129   :  { %6868 = vst [vmem:[#allocation30_spill] sm:$0xff] %v6120_v3 }
 0x12d   :  { %v4525_v6 = vpop.f32.mrf.mxu0 }
 0x12e   :  { %v992_v2 = vadd.f32 %v4525_v6, %v4514_v27  ;;  %v6140_v27 = vld [vmem:[#allocation7 + $0x1b8] sm:$0xff] }
 0x12f   :  { %v4536_v13 = vpop.f32.mrf.mxu1  ;;  %v986_v16 = vpop.f32.mrf.mxu0  ;;  %6873 = vst [vmem:[#allocation35_spill] sm:$0xff] %v6140_v27 }
 0x130   :  { %v1071_v18 = vadd.f32 %v4536_v13, %v992_v2  ;;  %v987_v8 = vadd.f32 %v986_v16, %v911_v37  ;;  %v6160_v13 = vld [vmem:[#allocation7 + $0x190] sm:$0xff] }
 0x131   :  { %v1061_v10 = vpop.f32.mrf.mxu1  ;;  %6878 = vst [vmem:[#allocation40_spill] sm:$0xff] %v6160_v13 }
 0x132   :  { %v1073_v12 = vmax.f32 %v844_v15, %v1071_v18  ;;  %v1070_v17 = vadd.f32 %v1061_v10, %v987_v8  ;;  %v6164_v18 = vld [vmem:[#allocation7 + $0x188] sm:$0xff]  ;;  %v6168_v8 = vld [vmem:[#allocation7 + $0x180] sm:$0xff] }
 0x133   :  { %6879 = vst [vmem:[#allocation41_spill] sm:$0xff] %v6164_v18  ;;  %6880 = vst [vmem:[#allocation42_spill] sm:$0xff] %v6168_v8 }
 0x134   :  { %v1081_v14 = vadd.f32 %v6102_v9, %v1073_v12  ;;  %v1072_v19 = vmax.f32 %v843_v11, %v1070_v17  ;;  %v6172_v12 = vld [vmem:[#allocation7 + $0x2f8] sm:$0xff] }
 0x136   :  { %v1083_v20 = vmax.f32 %v1081_v14, 0.0  ;;  %v1080_v6 = vadd.f32 %v6102_v9, %v1072_v19 }
 0x137   :  { %v4547_v25 = vpop.f32.mrf.mxu0 }
 0x138   :  { %1085 = vst [vmem:[#allocation2 + $0x8] sm:$0xff] %v1083_v20  ;;  %v6106_v5 = vmax.f32 %v1080_v6, 0.0  ;;  %v4558_v26 = vpop.f32.mrf.mxu1 }
 0x139   :  { %v1170_v29 = vpop.f32.mrf.mxu0 }
 0x13a   :  { %1084 = vst [vmem:[#allocation2] sm:$0xff] %v6106_v5  ;;  %4736 = vmatprep.mubr.f32.mxu1 %v6106_v5  ;;  %v1251_v30 = vpop.f32.mrf.mxu1 }
 0x13f   :  { %v6110_v2 = vld [vmem:[#allocation2 + $0x8] sm:$0xf] }
 0x140   :  { %4737 = vmatmul.mubr.f32.vlgmr.msra.gmra.mxu1 %v6110_v2 }
 0x141   :  { %4775 = vmatpush3.msra.mxu1 %v6031_v55  ;;  %v4569_v32 = vpop.f32.mrf.mxu0 }
 0x142   :  { %4776 = vmatprep.subr.mxu1 %v6112_v4 }
 0x143   :  { %4777 = vmatpush3.msra.mxu1 %v6112_v4  ;;  %v4580_v33 = vpop.f32.mrf.mxu1  ;;  %v1338_v36 = vpop.f32.mrf.mxu0 }
 0x144   :  { %4778 = vmatprep.subr.mxu1 %v6116_v1 }
 0x145   :  { %4779 = vmatpush3.msra.mxu1 %v6116_v1  ;;  %v1423_v37 = vpop.f32.mrf.mxu1 }
 0x146   :  { %4780 = vmatprep.subr.mxu1 %v6120_v3 }
 0x147   :  { %4781 = vmatpush3.msra.mxu1 %v6120_v3 }
 0x148   :  { %4782 = vmatprep.subr.mxu1 %v6124_v21 }
 0x149   :  { %4783 = vmatpush3.msra.mxu1 %v6124_v21 }
 0x14a   :  { %4784 = vmatprep.subr.mxu1 %v6128_v22 }
 0x14b   :  { %4785 = vmatpush3.msra.mxu1 %v6128_v22  ;;  %v4591_v16 = vpop.f32.mrf.mxu0 }
 0x14c   :  { %4786 = vmatprep.subr.mxu1 %v6132_v23  ;;  %v1504_v6 = vadd.f32 %v4591_v16, %v4580_v33 }
 0x14d   :  { %4787 = vmatpush3.msra.mxu1 %v6132_v23  ;;  %v4602_v15 = vpop.f32.mrf.mxu1  ;;  %v1498_v10 = vpop.f32.mrf.mxu0 }
 0x14e   :  { %4788 = vmatprep.subr.mxu1 %v6136_v24 }
 0x14f   :  { %4789 = vmatpush3.msra.mxu1 %v6136_v24  ;;  %v1577_v11 = vpop.f32.mrf.mxu1 }
 0x150   :  { %4790 = vmatprep.subr.mxu1 %v6140_v27 }
 0x151   :  { %4791 = vmatpush3.msra.mxu1 %v6140_v27 }
 0x152   :  { %4792 = vmatprep.subr.mxu1 %v6144_v28 }
 0x153   :  { %4793 = vmatpush3.msra.mxu1 %v6144_v28  ;;  %v1587_v28 = vadd.f32 %v4602_v15, %v1504_v6  ;;  %v6278_v6 = vld [vmem:[#allocation7 + $0x218] sm:$0xff] }
 0x154   :  { %4794 = vmatprep.subr.mxu1 %v6148_v31 }
 0x155   :  { %4795 = vmatpush3.msra.mxu1 %v6148_v31  ;;  %v4613_v17 = vpop.f32.mrf.mxu0  ;;  %v1257_v31 = vadd.f32 %v4558_v26, %v4547_v25 }
 0x156   :  { %4796 = vmatprep.subr.mxu1 %v6152_v34  ;;  %v4624_v14 = vpop.f32.mrf.mxu1 }
 0x157   :  { %4797 = vmatpush3.msra.mxu1 %v6152_v34  ;;  %v1656_v19 = vpop.f32.mrf.mxu0  ;;  %v1499_v34 = vadd.f32 %v1498_v10, %v1423_v37  ;;  %v1737_v0 = vadd.f32 %v4624_v14, %v4613_v17  ;;  %v1348_v24 = vadd.f32 %v4569_v32, %v1257_v31  ;;  %v6254_v10 = vld [vmem:[#allocation7 + $0x230] sm:$0xff]  ;;  %v6262_v17 = vld [vmem:[#allocation7 + $0x228] sm:$0xff] }
 0x158   :  { %4798 = vmatprep.subr.mxu1 %v6156_v35  ;;  %v1731_v20 = vpop.f32.mrf.mxu1  ;;  %v6264_v14 = vld [vmem:[#allocation7 + $0x2a8] sm:$0xff] }
 0x159   :  { %4799 = vmatpush3.msra.mxu1 %v6156_v35  ;;  %v1586_v62 = vadd.f32 %v1577_v11, %v1499_v34  ;;  %v1732_v23 = vadd.f32 %v1731_v20, %v1656_v19  ;;  %v1589_v21 = vmax.f32 %v1348_v24, %v1587_v28  ;;  %v6224_v24 = vld [vmem:[#allocation7 + $0x2d0] sm:$0xff]  ;;  %v6232_v28 = vld [vmem:[#allocation7 + $0x2c8] sm:$0xff]  ;;  %v6270_v19 = vld [vmem:[#allocation7 + $0x220] sm:$0xff] }
 0x15a   :  { %4800 = vmatprep.subr.mxu1 %v6160_v13  ;;  %v6256_v11 = vld [vmem:[#allocation7 + $0x2b0] sm:$0xff]  ;;  %v6272_v20 = vld [vmem:[#allocation7 + $0x2a0] sm:$0xff] }
 0x15b   :  { %4801 = vmatpush3.msra.mxu1 %v6160_v13 }
 0x15c   :  { %4802 = vmatprep.subr.mxu1 %v6164_v18 }
 0x15d   :  { %4803 = vmatpush3.msra.mxu1 %v6164_v18  ;;  %v1252_v18 = vadd.f32 %v1251_v30, %v1170_v29 }
 0x15e   :  { %4804 = vmatprep.subr.mxu1 %v6168_v8 }
 0x15f   :  { %4805 = vmatpush3.msra.mxu1 %v6168_v8  ;;  %v4635_v13 = vpop.f32.mrf.mxu0  ;;  %v1347_v60 = vadd.f32 %v1338_v36, %v1252_v18  ;;  %v6246_v18 = vld [vmem:[#allocation7 + $0x238] sm:$0xff] }
 0x160   :  { %4844 = vmatprep.subr.mxu1 %v6172_v12  ;;  %v1824_v61 = vadd.f32 %v4635_v13, %v1737_v0  ;;  %v6240_v13 = vld [vmem:[#allocation7 + $0x2c0] sm:$0xff] }
 0x161   :  { %v4646_v35 = vpop.f32.mrf.mxu1  ;;  %v1814_v27 = vpop.f32.mrf.mxu0  ;;  %v1588_v16 = vmax.f32 %v1347_v60, %v1586_v62  ;;  %v6198_v62 = vld [vmem:[#allocation7 + $0x268] sm:$0xff] }
 0x162   :  { %v1823_v59 = vadd.f32 %v1814_v27, %v1732_v23  ;;  %v1826_v58 = vmax.f32 %v1589_v21, %v1824_v61  ;;  %v6194_v61 = vld [vmem:[#allocation2 + $0x2] sm:$0xff]  ;;  %v6230_v27 = vld [vmem:[#allocation7 + $0x248] sm:$0xff] }
 0x163   :  { %v1893_v63 = vpop.f32.mrf.mxu1  ;;  %v6214_v21 = vld [vmem:[#allocation7 + $0x258] sm:$0xff]  ;;  %v6222_v23 = vld [vmem:[#allocation7 + $0x250] sm:$0xff] }
 0x164   :  { %v1825_v15 = vmax.f32 %v1588_v16, %v1823_v59  ;;  %v6186_v59 = vld [vmem:[#allocation7 + $0x270] sm:$0xff] }
 0x165   :  { %v6286_v16 = vld [vmem:[#allocation7 + $0x210] sm:$0xff] }
 0x169   :  { %v4657_v22 = vpop.f32.mrf.mxu0 }
 0x16a   :  { %v4668_v8 = vpop.f32.mrf.mxu1  ;;  %v1974_v3 = vadd.f32 %v4657_v22, %v4646_v35  ;;  %v6216_v22 = vld [vmem:[#allocation7 + $0x2d8] sm:$0xff]  ;;  %v6238_v35 = vld [vmem:[#allocation7 + $0x240] sm:$0xff] }
 0x16b   :  { %v1968_v33 = vpop.f32.mrf.mxu0 }
 0x16c   :  { %v2053_v37 = vadd.f32 %v4668_v8, %v1974_v3  ;;  %v1969_v25 = vadd.f32 %v1968_v33, %v1893_v63  ;;  %v2043_v26 = vpop.f32.mrf.mxu1  ;;  %v6200_v63 = vld [vmem:[#allocation7 + $0x2e8] sm:$0xff]  ;;  %v6208_v3 = vld [vmem:[#allocation7 + $0x2e0] sm:$0xff]  ;;  %v6248_v8 = vld [vmem:[#allocation7 + $0x2b8] sm:$0xff] }
 0x16d   :  { %v6280_v33 = vld [vmem:[#allocation7 + $0x298] sm:$0xff] }
 0x16e   :  { %v2055_v29 = vmax.f32 %v1826_v58, %v2053_v37  ;;  %v2052_v30 = vadd.f32 %v2043_v26, %v1969_v25  ;;  %v6190_v58 = vld [vmem:[#allocation7 + $0x2f0] sm:$0xff]  ;;  %v6294_v25 = vld [vmem:[#allocation7 + $0x208] sm:$0xff] }
 0x16f   :  { %v6288_v37 = vld [vmem:[#allocation7 + $0x290] sm:$0xff]  ;;  %v6296_v26 = vld [vmem:[#allocation7 + $0x288] sm:$0xff] }
 0x170   :  { %v2057_v31 = vadd.f32 %v6102_v9, %v2055_v29  ;;  %v2054_v32 = vmax.f32 %v1825_v15, %v2052_v30  ;;  %v6302_v15 = vld [vmem:[#allocation7 + $0x200] sm:$0xff]  ;;  %v6310_v30 = vld [vmem:[#allocation7 + $0xf8] sm:$0xff] }
 0x171   :  { %v6304_v29 = vld [vmem:[#allocation7 + $0x280] sm:$0xff] }
 0x172   :  { %v2059_v34 = vmax.f32 %v2057_v31, 0.0  ;;  %v2056_v0 = vadd.f32 %v6102_v9, %v2054_v32  ;;  %v6206_v9 = vld [vmem:[#allocation7 + $0x260] sm:$0xff]  ;;  %v6316_v31 = vld [vmem:[#allocation2 + $0xa] sm:$0xf]  ;;  %v6322_v32 = vld [vmem:[#allocation7 + $0xf0] sm:$0xff] }
 0x174   :  { %2062 = vst [vmem:[#allocation2 + $0x18] sm:$0x3f] %v2059_v34  ;;  %v6179_v36 = vmax.f32 %v2056_v0, 0.0  ;;  %v6328_v34 = vld [vmem:[#allocation7 + $0xe8] sm:$0xff]  ;;  %v6334_v0 = vld [vmem:[#allocation7 + $0xe0] sm:$0xff] }
 0x176   :  { %2061 = vst [vmem:[#allocation2 + $0x10] sm:$0xff] %v6179_v36  ;;  %4701 = vmatprep.mubr.f32.mxu0 %v6179_v36  ;;  %4806 = vmatprep.mubr.f32.mxu1 %v6179_v36 }
 0x17b   :  { %v6184_v60 = vld [vmem:[#allocation2 + $0x18] sm:$0xf] }
 0x17c   :  { %4702 = vmatmul.mubr.f32.vlgmr.msra.gmra.mxu0 %v6184_v60  ;;  %4807 = vmatmul.mubr.f32.vlgmr.msra.gmra.mxu1 %v6184_v60 }
 0x17d   :  { %4740 = vmatpush3.msra.mxu0 %v6094_v7  ;;  %4845 = vmatpush3.msra.mxu1 %v6172_v12 }
 0x17e   :  { %4741 = vmatprep.subr.mxu0 %v6186_v59  ;;  %4771 = vmatprep.mubr.f32.mxu0 %v6194_v61 }
 0x17f   :  { %4846 = vmatprep.subr.mxu1 %v6190_v58  ;;  %4876 = vmatprep.mubr.f32.mxu1 %v6194_v61 }
 0x180   :  { %4742 = vmatpush3.msra.mxu0 %v6186_v59  ;;  %4847 = vmatpush3.msra.mxu1 %v6190_v58 }
 0x181   :  { %4743 = vmatprep.subr.mxu0 %v6198_v62  ;;  %4848 = vmatprep.subr.mxu1 %v6200_v63 }
 0x182   :  { %4744 = vmatpush3.msra.mxu0 %v6198_v62  ;;  %4849 = vmatpush3.msra.mxu1 %v6200_v63 }
 0x183   :  { %4745 = vmatprep.subr.mxu0 %v6206_v9  ;;  %4850 = vmatprep.subr.mxu1 %v6208_v3 }
 0x184   :  { %4746 = vmatpush3.msra.mxu0 %v6206_v9  ;;  %4851 = vmatpush3.msra.mxu1 %v6208_v3 }
 0x185   :  { %4747 = vmatprep.subr.mxu0 %v6214_v21  ;;  %4852 = vmatprep.subr.mxu1 %v6216_v22 }
 0x186   :  { %4748 = vmatpush3.msra.mxu0 %v6214_v21  ;;  %4853 = vmatpush3.msra.mxu1 %v6216_v22 }
 0x187   :  { %4749 = vmatprep.subr.mxu0 %v6222_v23  ;;  %4854 = vmatprep.subr.mxu1 %v6224_v24 }
 0x188   :  { %4750 = vmatpush3.msra.mxu0 %v6222_v23  ;;  %4855 = vmatpush3.msra.mxu1 %v6224_v24 }
 0x189   :  { %4751 = vmatprep.subr.mxu0 %v6230_v27  ;;  %4856 = vmatprep.subr.mxu1 %v6232_v28 }
 0x18a   :  { %4752 = vmatpush3.msra.mxu0 %v6230_v27  ;;  %4857 = vmatpush3.msra.mxu1 %v6232_v28 }
 0x18b   :  { %4753 = vmatprep.subr.mxu0 %v6238_v35  ;;  %4858 = vmatprep.subr.mxu1 %v6240_v13 }
 0x18c   :  { %4754 = vmatpush3.msra.mxu0 %v6238_v35  ;;  %4859 = vmatpush3.msra.mxu1 %v6240_v13 }
 0x18d   :  { %4755 = vmatprep.subr.mxu0 %v6246_v18  ;;  %4860 = vmatprep.subr.mxu1 %v6248_v8 }
 0x18e   :  { %4756 = vmatpush3.msra.mxu0 %v6246_v18  ;;  %4861 = vmatpush3.msra.mxu1 %v6248_v8 }
 0x18f   :  { %4757 = vmatprep.subr.mxu0 %v6254_v10  ;;  %4862 = vmatprep.subr.mxu1 %v6256_v11 }
 0x190   :  { %4758 = vmatpush3.msra.mxu0 %v6254_v10  ;;  %4863 = vmatpush3.msra.mxu1 %v6256_v11 }
 0x191   :  { %4759 = vmatprep.subr.mxu0 %v6262_v17  ;;  %4864 = vmatprep.subr.mxu1 %v6264_v14 }
 0x192   :  { %4760 = vmatpush3.msra.mxu0 %v6262_v17  ;;  %4865 = vmatpush3.msra.mxu1 %v6264_v14 }
 0x193   :  { %4761 = vmatprep.subr.mxu0 %v6270_v19  ;;  %4866 = vmatprep.subr.mxu1 %v6272_v20 }
 0x194   :  { %4762 = vmatpush3.msra.mxu0 %v6270_v19  ;;  %4867 = vmatpush3.msra.mxu1 %v6272_v20 }
 0x195   :  { %4763 = vmatprep.subr.mxu0 %v6278_v6  ;;  %4868 = vmatprep.subr.mxu1 %v6280_v33 }
 0x196   :  { %4764 = vmatpush3.msra.mxu0 %v6278_v6  ;;  %4869 = vmatpush3.msra.mxu1 %v6280_v33 }
 0x197   :  { %4765 = vmatprep.subr.mxu0 %v6286_v16  ;;  %4870 = vmatprep.subr.mxu1 %v6288_v37 }
 0x198   :  { %4766 = vmatpush3.msra.mxu0 %v6286_v16  ;;  %4871 = vmatpush3.msra.mxu1 %v6288_v37 }
 0x199   :  { %4767 = vmatprep.subr.mxu0 %v6294_v25  ;;  %4872 = vmatprep.subr.mxu1 %v6296_v26 }
 0x19a   :  { %4768 = vmatpush3.msra.mxu0 %v6294_v25  ;;  %4873 = vmatpush3.msra.mxu1 %v6296_v26 }
 0x19b   :  { %4769 = vmatprep.subr.mxu0 %v6302_v15  ;;  %4874 = vmatprep.subr.mxu1 %v6304_v29 }
 0x19c   :  { %4770 = vmatpush3.msra.mxu0 %v6302_v15  ;;  %4875 = vmatpush3.msra.mxu1 %v6304_v29 }
 0x19d   :  { %4772 = vmatmul.mubr.f32.vlgmr.msra.gmra.mxu0 %v6316_v31  ;;  %4809 = vmatprep.subr.mxu0 %v6310_v30 }
 0x19e   :  { %4877 = vmatmul.mubr.f32.vlgmr.msra.gmra.mxu1 %v6316_v31  ;;  %4914 = vmatprep.subr.mxu1 %v5960_v38 }
 0x19f   :  { %4810 = vmatpush3.msra.mxu0 %v6310_v30  ;;  %4841 = vmatprep.mubr.f32.mxu0 %v6106_v5  ;;  %v6889_v5 = vld [vmem:[#allocation21_spill] sm:$0xff] }
 0x1a0   :  { %4915 = vmatpush3.msra.mxu1 %v5960_v38  ;;  %4946 = vmatprep.mubr.f32.mxu1 %v6179_v36  ;;  %v6340_v38 = vld [vmem:[#allocation7 + $0xd8] sm:$0xff] }
 0x1a1   :  { %4811 = vmatprep.subr.mxu0 %v6322_v32  ;;  %4916 = vmatprep.subr.mxu1 %v5967_v39 }
 0x1a2   :  { %4812 = vmatpush3.msra.mxu0 %v6322_v32  ;;  %4917 = vmatpush3.msra.mxu1 %v5967_v39  ;;  %v6346_v39 = vld [vmem:[#allocation7 + $0xd0] sm:$0xff] }
 0x1a3   :  { %4813 = vmatprep.subr.mxu0 %v6328_v34  ;;  %4918 = vmatprep.subr.mxu1 %v5971_v40 }
 0x1a4   :  { %4814 = vmatpush3.msra.mxu0 %v6328_v34  ;;  %4919 = vmatpush3.msra.mxu1 %v5971_v40  ;;  %v6352_v40 = vld [vmem:[#allocation7 + $0xc8] sm:$0xff] }
 0x1a5   :  { %4815 = vmatprep.subr.mxu0 %v6334_v0  ;;  %4920 = vmatprep.subr.mxu1 %v5975_v41 }
 0x1a6   :  { %4816 = vmatpush3.msra.mxu0 %v6334_v0  ;;  %4921 = vmatpush3.msra.mxu1 %v5975_v41  ;;  %v6358_v41 = vld [vmem:[#allocation7 + $0xc0] sm:$0xff] }
 0x1a7   :  { %4817 = vmatprep.subr.mxu0 %v6340_v38  ;;  %4922 = vmatprep.subr.mxu1 %v5979_v42 }
 0x1a8   :  { %4818 = vmatpush3.msra.mxu0 %v6340_v38  ;;  %4923 = vmatpush3.msra.mxu1 %v5979_v42  ;;  %v6364_v42 = vld [vmem:[#allocation7 + $0xb8] sm:$0xff] }
 0x1a9   :  { %4819 = vmatprep.subr.mxu0 %v6346_v39  ;;  %4924 = vmatprep.subr.mxu1 %v5983_v43 }
 0x1aa   :  { %4820 = vmatpush3.msra.mxu0 %v6346_v39  ;;  %4925 = vmatpush3.msra.mxu1 %v5983_v43  ;;  %v6370_v43 = vld [vmem:[#allocation7 + $0xb0] sm:$0xff] }
 0x1ab   :  { %4821 = vmatprep.subr.mxu0 %v6352_v40  ;;  %4926 = vmatprep.subr.mxu1 %v5989_v44 }
 0x1ac   :  { %4822 = vmatpush3.msra.mxu0 %v6352_v40  ;;  %4927 = vmatpush3.msra.mxu1 %v5989_v44  ;;  %v6376_v44 = vld [vmem:[#allocation7 + $0xa8] sm:$0xff] }
 0x1ad   :  { %4823 = vmatprep.subr.mxu0 %v6358_v41  ;;  %4928 = vmatprep.subr.mxu1 %v5993_v45 }
 0x1ae   :  { %4824 = vmatpush3.msra.mxu0 %v6358_v41  ;;  %4929 = vmatpush3.msra.mxu1 %v5993_v45  ;;  %v6382_v45 = vld [vmem:[#allocation7 + $0xa0] sm:$0xff] }
 0x1af   :  { %4825 = vmatprep.subr.mxu0 %v6364_v42  ;;  %4930 = vmatprep.subr.mxu1 %v5995_v46 }
 0x1b0   :  { %4826 = vmatpush3.msra.mxu0 %v6364_v42  ;;  %4931 = vmatpush3.msra.mxu1 %v5995_v46  ;;  %v6388_v46 = vld [vmem:[#allocation7 + $0x98] sm:$0xff] }
 0x1b1   :  { %4827 = vmatprep.subr.mxu0 %v6370_v43  ;;  %4932 = vmatprep.subr.mxu1 %v5999_v47 }
 0x1b2   :  { %4828 = vmatpush3.msra.mxu0 %v6370_v43  ;;  %4933 = vmatpush3.msra.mxu1 %v5999_v47  ;;  %v6394_v47 = vld [vmem:[#allocation7 + $0x90] sm:$0xff] }
 0x1b3   :  { %4829 = vmatprep.subr.mxu0 %v6376_v44  ;;  %4934 = vmatprep.subr.mxu1 %v6003_v48 }
 0x1b4   :  { %4830 = vmatpush3.msra.mxu0 %v6376_v44  ;;  %4935 = vmatpush3.msra.mxu1 %v6003_v48  ;;  %v6400_v48 = vld [vmem:[#allocation7 + $0x88] sm:$0xff] }
 0x1b5   :  { %4831 = vmatprep.subr.mxu0 %v6382_v45  ;;  %4936 = vmatprep.subr.mxu1 %v6007_v49 }
 0x1b6   :  { %4832 = vmatpush3.msra.mxu0 %v6382_v45  ;;  %4937 = vmatpush3.msra.mxu1 %v6007_v49  ;;  %v6406_v49 = vld [vmem:[#allocation7 + $0x80] sm:$0xff] }
 0x1b7   :  { %4833 = vmatprep.subr.mxu0 %v6388_v46  ;;  %4938 = vmatprep.subr.mxu1 %v6011_v50 }
 0x1b8   :  { %4834 = vmatpush3.msra.mxu0 %v6388_v46  ;;  %4939 = vmatpush3.msra.mxu1 %v6011_v50  ;;  %v6881_v50 = vld [vmem:[#allocation17_spill] sm:$0xff] }
 0x1b9   :  { %4835 = vmatprep.subr.mxu0 %v6394_v47  ;;  %4940 = vmatprep.subr.mxu1 %v6015_v51 }
 0x1ba   :  { %4836 = vmatpush3.msra.mxu0 %v6394_v47  ;;  %4941 = vmatpush3.msra.mxu1 %v6015_v51  ;;  %v6882_v51 = vld [vmem:[#allocation30_spill] sm:$0xff] }
 0x1bb   :  { %4837 = vmatprep.subr.mxu0 %v6400_v48  ;;  %4942 = vmatprep.subr.mxu1 %v6019_v52 }
 0x1bc   :  { %4838 = vmatpush3.msra.mxu0 %v6400_v48  ;;  %4943 = vmatpush3.msra.mxu1 %v6019_v52  ;;  %v6883_v52 = vld [vmem:[#allocation18_spill] sm:$0xff] }
 0x1bd   :  { %4839 = vmatprep.subr.mxu0 %v6406_v49  ;;  %4944 = vmatprep.subr.mxu1 %v6023_v53 }
 0x1be   :  { %4840 = vmatpush3.msra.mxu0 %v6406_v49  ;;  %4945 = vmatpush3.msra.mxu1 %v6023_v53  ;;  %v6884_v53 = vld [vmem:[#allocation31_spill] sm:$0xff] }
 0x1bf   :  { %4842 = vmatmul.mubr.f32.vlgmr.msra.gmra.mxu0 %v6110_v2  ;;  %4879 = vmatprep.subr.mxu0 %v6029_v54  ;;  %v6890_v2 = vld [vmem:[#allocation34_spill] sm:$0xff] }
 0x1c0   :  { %4947 = vmatmul.mubr.f32.vlgmr.msra.gmra.mxu1 %v6184_v60  ;;  %4984 = vmatprep.subr.mxu1 %v6031_v55 }
 0x1c1   :  { %4880 = vmatpush3.msra.mxu0 %v6029_v54  ;;  %4911 = vmatprep.mubr.f32.mxu0 %v6194_v61  ;;  %v6885_v54 = vld [vmem:[#allocation19_spill] sm:$0xff] }
 0x1c2   :  { %4985 = vmatpush3.msra.mxu1 %v6031_v55  ;;  %5016 = vmatprep.mubr.f32.mxu1 %v6194_v61  ;;  %v6886_v55 = vld [vmem:[#allocation32_spill] sm:$0xff]  ;;  %v6893_v61 = vld [vmem:[#allocation23_spill] sm:$0xff] }
 0x1c3   :  { %4881 = vmatprep.subr.mxu0 %v6033_v56  ;;  %4986 = vmatprep.subr.mxu1 %v6112_v4 }
 0x1c4   :  { %4882 = vmatpush3.msra.mxu0 %v6033_v56  ;;  %4987 = vmatpush3.msra.mxu1 %v6112_v4  ;;  %v6887_v56 = vld [vmem:[#allocation20_spill] sm:$0xff]  ;;  %v6891_v4 = vld [vmem:[#allocation22_spill] sm:$0xff] }
 0x1c5   :  { %4883 = vmatprep.subr.mxu0 %v6040_v57  ;;  %4988 = vmatprep.subr.mxu1 %v6116_v1 }
 0x1c6   :  { %4884 = vmatpush3.msra.mxu0 %v6040_v57  ;;  %4989 = vmatpush3.msra.mxu1 %v6116_v1  ;;  %v6888_v57 = vld [vmem:[#allocation33_spill] sm:$0xff]  ;;  %v6892_v1 = vld [vmem:[#allocation35_spill] sm:$0xff] }
 0x1c7   :  { %4885 = vmatprep.subr.mxu0 %v6881_v50  ;;  %4990 = vmatprep.subr.mxu1 %v6882_v51 }
 0x1c8   :  { %4886 = vmatpush3.msra.mxu0 %v6881_v50  ;;  %4991 = vmatpush3.msra.mxu1 %v6882_v51  ;;  %v6894_v50 = vld [vmem:[#allocation36_spill] sm:$0xff] }
 0x1c9   :  { %4887 = vmatprep.subr.mxu0 %v6883_v52  ;;  %4992 = vmatprep.subr.mxu1 %v6884_v53  ;;  %v6895_v51 = vld [vmem:[#allocation24_spill] sm:$0xff] }
 0x1ca   :  { %4888 = vmatpush3.msra.mxu0 %v6883_v52  ;;  %4993 = vmatpush3.msra.mxu1 %v6884_v53  ;;  %v6896_v52 = vld [vmem:[#allocation37_spill] sm:$0xff] }
 0x1cb   :  { %4889 = vmatprep.subr.mxu0 %v6885_v54  ;;  %4994 = vmatprep.subr.mxu1 %v6886_v55  ;;  %v6897_v53 = vld [vmem:[#allocation25_spill] sm:$0xff] }
 0x1cc   :  { %4890 = vmatpush3.msra.mxu0 %v6885_v54  ;;  %4995 = vmatpush3.msra.mxu1 %v6886_v55  ;;  %v6898_v54 = vld [vmem:[#allocation38_spill] sm:$0xff] }
 0x1cd   :  { %4891 = vmatprep.subr.mxu0 %v6887_v56  ;;  %4996 = vmatprep.subr.mxu1 %v6888_v57  ;;  %v6899_v55 = vld [vmem:[#allocation26_spill] sm:$0xff] }
 0x1ce   :  { %4892 = vmatpush3.msra.mxu0 %v6887_v56  ;;  %4997 = vmatpush3.msra.mxu1 %v6888_v57  ;;  %v6900_v56 = vld [vmem:[#allocation39_spill] sm:$0xff] }
 0x1cf   :  { %4893 = vmatprep.subr.mxu0 %v6889_v5  ;;  %4998 = vmatprep.subr.mxu1 %v6890_v2  ;;  %v6901_v57 = vld [vmem:[#allocation27_spill] sm:$0xff] }
 0x1d0   :  { %4894 = vmatpush3.msra.mxu0 %v6889_v5  ;;  %4999 = vmatpush3.msra.mxu1 %v6890_v2  ;;  %v6902_v5 = vld [vmem:[#allocation40_spill] sm:$0xff] }
 0x1d1   :  { %4895 = vmatprep.subr.mxu0 %v6891_v4  ;;  %5000 = vmatprep.subr.mxu1 %v6892_v1  ;;  %v6903_v2 = vld [vmem:[#allocation28_spill] sm:$0xff] }
 0x1d2   :  { %4896 = vmatpush3.msra.mxu0 %v6891_v4  ;;  %5001 = vmatpush3.msra.mxu1 %v6892_v1  ;;  %v6904_v4 = vld [vmem:[#allocation41_spill] sm:$0xff] }
 0x1d3   :  { %4897 = vmatprep.subr.mxu0 %v6893_v61  ;;  %5002 = vmatprep.subr.mxu1 %v6894_v50  ;;  %v6905_v1 = vld [vmem:[#allocation29_spill] sm:$0xff] }
 0x1d4   :  { %4898 = vmatpush3.msra.mxu0 %v6893_v61  ;;  %5003 = vmatpush3.msra.mxu1 %v6894_v50  ;;  %v6906_v61 = vld [vmem:[#allocation42_spill] sm:$0xff]  ;;  %v2777_v50 = vld [vmem:[#allocation2 + $0x12] sm:$0xff] }
 0x1d5   :  { %4899 = vmatprep.subr.mxu0 %v6895_v51  ;;  %5004 = vmatprep.subr.mxu1 %v6896_v52 }
 0x1d6   :  { %4900 = vmatpush3.msra.mxu0 %v6895_v51  ;;  %5005 = vmatpush3.msra.mxu1 %v6896_v52 }
 0x1d7   :  { %4901 = vmatprep.subr.mxu0 %v6897_v53  ;;  %5006 = vmatprep.subr.mxu1 %v6898_v54 }
 0x1d8   :  { %4902 = vmatpush3.msra.mxu0 %v6897_v53  ;;  %5007 = vmatpush3.msra.mxu1 %v6898_v54 }
 0x1d9   :  { %4903 = vmatprep.subr.mxu0 %v6899_v55  ;;  %5008 = vmatprep.subr.mxu1 %v6900_v56 }
 0x1da   :  { %4904 = vmatpush3.msra.mxu0 %v6899_v55  ;;  %5009 = vmatpush3.msra.mxu1 %v6900_v56 }
 0x1db   :  { %4905 = vmatprep.subr.mxu0 %v6901_v57  ;;  %5010 = vmatprep.subr.mxu1 %v6902_v5 }
 0x1dc   :  { %4906 = vmatpush3.msra.mxu0 %v6901_v57  ;;  %5011 = vmatpush3.msra.mxu1 %v6902_v5 }
 0x1dd   :  { %4907 = vmatprep.subr.mxu0 %v6903_v2  ;;  %5012 = vmatprep.subr.mxu1 %v6904_v4 }
 0x1de   :  { %4908 = vmatpush3.msra.mxu0 %v6903_v2  ;;  %5013 = vmatpush3.msra.mxu1 %v6904_v4 }
 0x1df   :  { %4909 = vmatprep.subr.mxu0 %v6905_v1  ;;  %5014 = vmatprep.subr.mxu1 %v6906_v61 }
 0x1e0   :  { %4910 = vmatpush3.msra.mxu0 %v6905_v1  ;;  %5015 = vmatpush3.msra.mxu1 %v6906_v61 }
 0x1e1   :  { %4912 = vmatmul.mubr.f32.vlgmr.msra.gmra.mxu0 %v6316_v31  ;;  %4949 = vmatprep.subr.mxu0 %v6094_v7 }
 0x1e2   :  { %5017 = vmatmul.mubr.f32.vlgmr.msra.gmra.mxu1 %v6316_v31  ;;  %5054 = vmatprep.subr.mxu1 %v6172_v12 }
 0x1e3   :  { %4950 = vmatpush3.msra.mxu0 %v6094_v7  ;;  %4981 = vmatprep.mubr.f32.mxu0 %v2777_v50  ;;  %v2778_v7 = vld [vmem:[#allocation2 + $0x1a] sm:$0xf] }
 0x1e4   :  { %5055 = vmatpush3.msra.mxu1 %v6172_v12  ;;  %5086 = vmatprep.mubr.f32.mxu1 %v2777_v50  ;;  %v3133_v12 = vld [vmem:[#allocation9 + $0xf8] sm:$0xff] }
 0x1e5   :  { %4951 = vmatprep.subr.mxu0 %v6186_v59  ;;  %5056 = vmatprep.subr.mxu1 %v6190_v58 }
 0x1e6   :  { %4952 = vmatpush3.msra.mxu0 %v6186_v59  ;;  %5057 = vmatpush3.msra.mxu1 %v6190_v58  ;;  %v5492_v59 = vmov 0.0   ;;  %v3132_v58 = vld [vmem:[#allocation9 + $0xf0] sm:$0xff] }
 0x1e7   :  { %4953 = vmatprep.subr.mxu0 %v6198_v62  ;;  %5058 = vmatprep.subr.mxu1 %v6200_v63 }
 0x1e8   :  { %4954 = vmatpush3.msra.mxu0 %v6198_v62  ;;  %5059 = vmatpush3.msra.mxu1 %v6200_v63  ;;  %v3114_v62 = vld [vmem:[#allocation9 + $0x70] sm:$0xff]  ;;  %v3131_v63 = vld [vmem:[#allocation9 + $0xe8] sm:$0xff] }
 0x1e9   :  { %4955 = vmatprep.subr.mxu0 %v6206_v9  ;;  %5060 = vmatprep.subr.mxu1 %v6208_v3 }
 0x1ea   :  { %4956 = vmatpush3.msra.mxu0 %v6206_v9  ;;  %5061 = vmatpush3.msra.mxu1 %v6208_v3  ;;  %v3113_v9 = vld [vmem:[#allocation9 + $0x68] sm:$0xff]  ;;  %v3112_v3 = vld [vmem:[#allocation9 + $0x60] sm:$0xff] }
 0x1eb   :  { %4957 = vmatprep.subr.mxu0 %v6214_v21  ;;  %5062 = vmatprep.subr.mxu1 %v6216_v22 }
 0x1ec   :  { %4958 = vmatpush3.msra.mxu0 %v6214_v21  ;;  %5063 = vmatpush3.msra.mxu1 %v6216_v22  ;;  %v3129_v21 = vld [vmem:[#allocation9 + $0xd8] sm:$0xff] }
 0x1ed   :  { %4959 = vmatprep.subr.mxu0 %v6222_v23  ;;  %5064 = vmatprep.subr.mxu1 %v6224_v24  ;;  %v3111_v22 = vld [vmem:[#allocation9 + $0x58] sm:$0xff] }
 0x1ee   :  { %4960 = vmatpush3.msra.mxu0 %v6222_v23  ;;  %5065 = vmatpush3.msra.mxu1 %v6224_v24  ;;  %v3128_v23 = vld [vmem:[#allocation9 + $0xd0] sm:$0xff] }
 0x1ef   :  { %4961 = vmatprep.subr.mxu0 %v6230_v27  ;;  %5066 = vmatprep.subr.mxu1 %v6232_v28  ;;  %v3110_v24 = vld [vmem:[#allocation9 + $0x50] sm:$0xff] }
 0x1f0   :  { %4962 = vmatpush3.msra.mxu0 %v6230_v27  ;;  %5067 = vmatpush3.msra.mxu1 %v6232_v28  ;;  %v3127_v27 = vld [vmem:[#allocation9 + $0xc8] sm:$0xff] }
 0x1f1   :  { %4963 = vmatprep.subr.mxu0 %v6238_v35  ;;  %5068 = vmatprep.subr.mxu1 %v6240_v13  ;;  %v3109_v28 = vld [vmem:[#allocation9 + $0x48] sm:$0xff] }
 0x1f2   :  { %4964 = vmatpush3.msra.mxu0 %v6238_v35  ;;  %5069 = vmatpush3.msra.mxu1 %v6240_v13  ;;  %v3126_v35 = vld [vmem:[#allocation9 + $0xc0] sm:$0xff] }
 0x1f3   :  { %4965 = vmatprep.subr.mxu0 %v6246_v18  ;;  %5070 = vmatprep.subr.mxu1 %v6248_v8  ;;  %v3108_v13 = vld [vmem:[#allocation9 + $0x40] sm:$0xff] }
 0x1f4   :  { %4966 = vmatpush3.msra.mxu0 %v6246_v18  ;;  %5071 = vmatpush3.msra.mxu1 %v6248_v8  ;;  %v3125_v18 = vld [vmem:[#allocation9 + $0xb8] sm:$0xff] }
 0x1f5   :  { %4967 = vmatprep.subr.mxu0 %v6254_v10  ;;  %5072 = vmatprep.subr.mxu1 %v6256_v11  ;;  %v3107_v8 = vld [vmem:[#allocation9 + $0x38] sm:$0xff] }
 0x1f6   :  { %4968 = vmatpush3.msra.mxu0 %v6254_v10  ;;  %5073 = vmatpush3.msra.mxu1 %v6256_v11  ;;  %v3124_v10 = vld [vmem:[#allocation9 + $0xb0] sm:$0xff] }
 0x1f7   :  { %4969 = vmatprep.subr.mxu0 %v6262_v17  ;;  %5074 = vmatprep.subr.mxu1 %v6264_v14  ;;  %v3106_v11 = vld [vmem:[#allocation9 + $0x30] sm:$0xff] }
 0x1f8   :  { %4970 = vmatpush3.msra.mxu0 %v6262_v17  ;;  %5075 = vmatpush3.msra.mxu1 %v6264_v14  ;;  %v3123_v17 = vld [vmem:[#allocation9 + $0xa8] sm:$0xff] }
 0x1f9   :  { %4971 = vmatprep.subr.mxu0 %v6270_v19  ;;  %5076 = vmatprep.subr.mxu1 %v6272_v20  ;;  %v3105_v14 = vld [vmem:[#allocation9 + $0x28] sm:$0xff] }
 0x1fa   :  { %4972 = vmatpush3.msra.mxu0 %v6270_v19  ;;  %5077 = vmatpush3.msra.mxu1 %v6272_v20  ;;  %v3122_v19 = vld [vmem:[#allocation9 + $0xa0] sm:$0xff] }
 0x1fb   :  { %4973 = vmatprep.subr.mxu0 %v6278_v6  ;;  %5078 = vmatprep.subr.mxu1 %v6280_v33  ;;  %v3104_v20 = vld [vmem:[#allocation9 + $0x20] sm:$0xff] }
 0x1fc   :  { %4974 = vmatpush3.msra.mxu0 %v6278_v6  ;;  %5079 = vmatpush3.msra.mxu1 %v6280_v33  ;;  %v3121_v6 = vld [vmem:[#allocation9 + $0x98] sm:$0xff] }
 0x1fd   :  { %4975 = vmatprep.subr.mxu0 %v6286_v16  ;;  %5080 = vmatprep.subr.mxu1 %v6288_v37  ;;  %v3103_v33 = vld [vmem:[#allocation9 + $0x18] sm:$0xff] }
 0x1fe   :  { %4976 = vmatpush3.msra.mxu0 %v6286_v16  ;;  %5081 = vmatpush3.msra.mxu1 %v6288_v37  ;;  %v3120_v16 = vld [vmem:[#allocation9 + $0x90] sm:$0xff] }
 0x1ff   :  { %4977 = vmatprep.subr.mxu0 %v6294_v25  ;;  %5082 = vmatprep.subr.mxu1 %v6296_v26  ;;  %v3102_v37 = vld [vmem:[#allocation9 + $0x10] sm:$0xff] }
 0x200   :  { %4978 = vmatpush3.msra.mxu0 %v6294_v25  ;;  %5083 = vmatpush3.msra.mxu1 %v6296_v26  ;;  %v3119_v25 = vld [vmem:[#allocation9 + $0x88] sm:$0xff] }
 0x201   :  { %4979 = vmatprep.subr.mxu0 %v6302_v15  ;;  %5084 = vmatprep.subr.mxu1 %v6304_v29  ;;  %v3101_v26 = vld [vmem:[#allocation9 + $0x8] sm:$0xff] }
 0x202   :  { %4980 = vmatpush3.msra.mxu0 %v6302_v15  ;;  %5085 = vmatpush3.msra.mxu1 %v6304_v29  ;;  %v3118_v15 = vld [vmem:[#allocation9 + $0x80] sm:$0xff] }
 0x203   :  { %4982 = vmatmul.mubr.f32.vlgmr.msra.gmra.mxu0 %v2778_v7  ;;  %5019 = vmatprep.subr.mxu0 %v6310_v30  ;;  %v3100_v29 = vld [vmem:[#allocation9] sm:$0xff] }
 0x204   :  { %5087 = vmatmul.mubr.f32.vlgmr.msra.gmra.mxu1 %v2778_v7  ;;  %5020 = vmatpush3.msra.mxu0 %v6310_v30  ;;  %v4738_v30 = vpop.f32.mrf.mxu1 }
 0x205   :  { %5051 = vmatprep.mubr.f32.mxu0 %v6179_v36  ;;  %5021 = vmatprep.subr.mxu0 %v6322_v32  ;;  %v3115_v36 = vld [vmem:[#allocation9 + $0x78] sm:$0xff] }
 0x206   :  { %5022 = vmatpush3.msra.mxu0 %v6322_v32  ;;  %5124 = vmatprep.subr.mxu1 %v5492_v59  ;;  %v2242_v32 = vpop.f32.mrf.mxu1 }
 0x207   :  { %5023 = vmatprep.subr.mxu0 %v6328_v34  ;;  %5125 = vmatpush3.msra.mxu1 %v3115_v36 }
 0x208   :  { %5024 = vmatpush3.msra.mxu0 %v6328_v34  ;;  %5126 = vmatprep.subr.mxu1 %v5492_v59 }
 0x209   :  { %5025 = vmatprep.subr.mxu0 %v6334_v0  ;;  %5127 = vmatpush3.msra.mxu1 %v3114_v62 }
 0x20a   :  { %5026 = vmatpush3.msra.mxu0 %v6334_v0  ;;  %5128 = vmatprep.subr.mxu1 %v5492_v59 }
 0x20b   :  { %5027 = vmatprep.subr.mxu0 %v6340_v38  ;;  %5129 = vmatpush3.msra.mxu1 %v3113_v9 }
 0x20c   :  { %5028 = vmatpush3.msra.mxu0 %v6340_v38  ;;  %5130 = vmatprep.subr.mxu1 %v5492_v59 }
 0x20d   :  { %5029 = vmatprep.subr.mxu0 %v6346_v39  ;;  %5131 = vmatpush3.msra.mxu1 %v3112_v3 }
 0x20e   :  { %5030 = vmatpush3.msra.mxu0 %v6346_v39  ;;  %5132 = vmatprep.subr.mxu1 %v5492_v59 }
 0x20f   :  { %5031 = vmatprep.subr.mxu0 %v6352_v40  ;;  %5133 = vmatpush3.msra.mxu1 %v3111_v22 }
 0x210   :  { %5032 = vmatpush3.msra.mxu0 %v6352_v40  ;;  %5134 = vmatprep.subr.mxu1 %v5492_v59 }
 0x211   :  { %5033 = vmatprep.subr.mxu0 %v6358_v41  ;;  %5135 = vmatpush3.msra.mxu1 %v3110_v24  ;;  %v3905_v24 = vld [vmem:[%s6795_s4] ss:$0 sm:$0xff] }
 0x212   :  { %5034 = vmatpush3.msra.mxu0 %v6358_v41  ;;  %5136 = vmatprep.subr.mxu1 %v5492_v59 }
 0x213   :  { %5035 = vmatprep.subr.mxu0 %v6364_v42  ;;  %5137 = vmatpush3.msra.mxu1 %v3109_v28 }
 0x214   :  { %5036 = vmatpush3.msra.mxu0 %v6364_v42  ;;  %5138 = vmatprep.subr.mxu1 %v5492_v59 }
 0x215   :  { %5037 = vmatprep.subr.mxu0 %v6370_v43  ;;  %5139 = vmatpush3.msra.mxu1 %v3108_v13 }
 0x216   :  { %5038 = vmatpush3.msra.mxu0 %v6370_v43  ;;  %5140 = vmatprep.subr.mxu1 %v5492_v59 }
 0x217   :  { %5039 = vmatprep.subr.mxu0 %v6376_v44  ;;  %5141 = vmatpush3.msra.mxu1 %v3107_v8 }
 0x218   :  { %5040 = vmatpush3.msra.mxu0 %v6376_v44  ;;  %5142 = vmatprep.subr.mxu1 %v5492_v59 }
 0x219   :  { %5041 = vmatprep.subr.mxu0 %v6382_v45  ;;  %5143 = vmatpush3.msra.mxu1 %v3106_v11 }
 0x21a   :  { %5042 = vmatpush3.msra.mxu0 %v6382_v45  ;;  %5144 = vmatprep.subr.mxu1 %v5492_v59 }
 0x21b   :  { %5043 = vmatprep.subr.mxu0 %v6388_v46  ;;  %5145 = vmatpush3.msra.mxu1 %v3105_v14  ;;  %v3380_v14 = vld [vmem:[#allocation9 + $0x1f8] sm:$0xff] }
 0x21c   :  { %5044 = vmatpush3.msra.mxu0 %v6388_v46  ;;  %5146 = vmatprep.subr.mxu1 %v5492_v59 }
 0x21d   :  { %5045 = vmatprep.subr.mxu0 %v6394_v47  ;;  %5147 = vmatpush3.msra.mxu1 %v3104_v20 }
 0x21e   :  { %5046 = vmatpush3.msra.mxu0 %v6394_v47  ;;  %5148 = vmatprep.subr.mxu1 %v5492_v59 }
 0x21f   :  { %5047 = vmatprep.subr.mxu0 %v6400_v48  ;;  %5149 = vmatpush3.msra.mxu1 %v3103_v33  ;;  %v3379_v33 = vld [vmem:[#allocation9 + $0x1f0] sm:$0xff] }
 0x220   :  { %5048 = vmatpush3.msra.mxu0 %v6400_v48  ;;  %5150 = vmatprep.subr.mxu1 %v5492_v59 }
 0x221   :  { %5049 = vmatprep.subr.mxu0 %v6406_v49  ;;  %5151 = vmatpush3.msra.mxu1 %v3102_v37  ;;  %v3378_v37 = vld [vmem:[#allocation9 + $0x1e8] sm:$0xff] }
 0x222   :  { %5050 = vmatpush3.msra.mxu0 %v6406_v49  ;;  %5152 = vmatprep.subr.mxu1 %v5492_v59 }
 0x223   :  { %5052 = vmatmul.mubr.f32.vlgmr.msra.gmra.mxu0 %v6184_v60  ;;  %5089 = vmatprep.subr.mxu0 %v5492_v59  ;;  %v3130_v60 = vld [vmem:[#allocation9 + $0xe0] sm:$0xff] }
 0x224   :  { %5090 = vmatpush3.msra.mxu0 %v3133_v12  ;;  %5153 = vmatpush3.msra.mxu1 %v3101_v26  ;;  %v3377_v26 = vld [vmem:[#allocation9 + $0x1e0] sm:$0xff] }
 0x225   :  { %5091 = vmatprep.subr.mxu0 %v5492_v59  ;;  %5154 = vmatprep.subr.mxu1 %v5492_v59 }
 0x226   :  { %5092 = vmatpush3.msra.mxu0 %v3132_v58  ;;  %5155 = vmatpush3.msra.mxu1 %v3100_v29  ;;  %v3376_v29 = vld [vmem:[#allocation9 + $0x1d8] sm:$0xff] }
 0x227   :  { %5093 = vmatprep.subr.mxu0 %v5492_v59  ;;  %5121 = vmatprep.mubr.msk.f32.mxu0 %vm5493_vm1, %v5492_v59 }
 0x228   :  { %5094 = vmatpush3.msra.mxu0 %v3131_v63  ;;  %5156 = vmatprep.mubr.msk.f32.mxu1 %vm5493_vm1, %v5492_v59 }
 0x229   :  { %5095 = vmatprep.subr.mxu0 %v5492_v59  ;;  %5194 = vmatprep.subr.mxu1 %v5492_v59 }
 0x22a   :  { %5096 = vmatpush3.msra.mxu0 %v3130_v60 }
 0x22b   :  { %5097 = vmatprep.subr.mxu0 %v5492_v59 }
 0x22c   :  { %5098 = vmatpush3.msra.mxu0 %v3129_v21 }
 0x22d   :  { %5099 = vmatprep.subr.mxu0 %v5492_v59 }
 0x22e   :  { %5100 = vmatpush3.msra.mxu0 %v3128_v23 }
 0x22f   :  { %5101 = vmatprep.subr.mxu0 %v5492_v59 }
 0x230   :  { %5102 = vmatpush3.msra.mxu0 %v3127_v27 }
 0x231   :  { %5103 = vmatprep.subr.mxu0 %v5492_v59 }
 0x232   :  { %5104 = vmatpush3.msra.mxu0 %v3126_v35 }
 0x233   :  { %5105 = vmatprep.subr.mxu0 %v5492_v59 }
 0x234   :  { %5106 = vmatpush3.msra.mxu0 %v3125_v18 }
 0x235   :  { %5107 = vmatprep.subr.mxu0 %v5492_v59 }
 0x236   :  { %5108 = vmatpush3.msra.mxu0 %v3124_v10 }
 0x237   :  { %5109 = vmatprep.subr.mxu0 %v5492_v59 }
 0x238   :  { %5110 = vmatpush3.msra.mxu0 %v3123_v17  ;;  %v3291_v17 = vld [vmem:[#allocation9 + $0x178] sm:$0xff] }
 0x239   :  { %5111 = vmatprep.subr.mxu0 %v5492_v59 }
 0x23a   :  { %5112 = vmatpush3.msra.mxu0 %v3122_v19 }
 0x23b   :  { %5113 = vmatprep.subr.mxu0 %v5492_v59 }
 0x23c   :  { %5114 = vmatpush3.msra.mxu0 %v3121_v6  ;;  %v4703_v31 = vpop.f32.mrf.mxu0  ;;  %v4808_v0 = vpop.f32.mrf.mxu1  ;;  %v3290_v6 = vld [vmem:[#allocation9 + $0x170] sm:$0xff] }
 0x23d   :  { %5115 = vmatprep.subr.mxu0 %v5492_v59  ;;  %v2248_v54 = vadd.f32 %v4738_v30, %v4703_v31  ;;  %v3286_v30 = vld [vmem:[#allocation9 + $0x150] sm:$0xff] }
 0x23e   :  { %5116 = vmatpush3.msra.mxu0 %v3120_v16  ;;  %v2167_v34 = vpop.f32.mrf.mxu0  ;;  %v2447_v39 = vpop.f32.mrf.mxu1  ;;  %v3289_v16 = vld [vmem:[#allocation9 + $0x168] sm:$0xff]  ;;  %v3375_v31 = vld [vmem:[#allocation9 + $0x1d0] sm:$0xff] }
 0x23f   :  { %5117 = vmatprep.subr.mxu0 %v5492_v59  ;;  %v2243_v57 = vadd.f32 %v2242_v32, %v2167_v34  ;;  %v3285_v32 = vld [vmem:[#allocation9 + $0x148] sm:$0xff] }
 0x240   :  { %5118 = vmatpush3.msra.mxu0 %v3119_v25  ;;  %v3288_v25 = vld [vmem:[#allocation9 + $0x160] sm:$0xff]  ;;  %v3374_v34 = vld [vmem:[#allocation9 + $0x1c8] sm:$0xff] }
 0x241   :  { %5119 = vmatprep.subr.mxu0 %v5492_v59 }
 0x242   :  { %5120 = vmatpush3.msra.mxu0 %v3118_v15  ;;  %v3287_v15 = vld [vmem:[#allocation9 + $0x158] sm:$0xff] }
 0x243   :  { %5159 = vmatprep.subr.mxu0 %v5492_v59 }
 0x25d   :  { %v4773_v38 = vpop.f32.mrf.mxu0 }
 0x25e   :  { %v4878_v41 = vpop.f32.mrf.mxu1  ;;  %v2346_v4 = vadd.f32 %v4773_v38, %v2248_v54  ;;  %v3373_v38 = vld [vmem:[#allocation9 + $0x1c0] sm:$0xff] }
 0x25f   :  { %v2336_v40 = vpop.f32.mrf.mxu0  ;;  %v3276_v54 = vld [vmem:[#allocation9 + $0x100] sm:$0xff] }
 0x260   :  { %v2614_v43 = vpop.f32.mrf.mxu1  ;;  %v2345_v36 = vadd.f32 %v2336_v40, %v2243_v57  ;;  %v3372_v40 = vld [vmem:[#allocation9 + $0x1b8] sm:$0xff] }
 0x27f   :  { %v4843_v42 = vpop.f32.mrf.mxu0 }
 0x280   :  { %v4948_v45 = vpop.f32.mrf.mxu1  ;;  %v2528_v49 = vadd.f32 %v4843_v42, %v4808_v0  ;;  %v3284_v0 = vld [vmem:[#allocation9 + $0x140] sm:$0xff]  ;;  %v3371_v42 = vld [vmem:[#allocation9 + $0x1b0] sm:$0xff] }
 0x281   :  { %v2522_v44 = vpop.f32.mrf.mxu0 }
 0x282   :  { %v2768_v47 = vpop.f32.mrf.mxu1  ;;  %v2523_v53 = vadd.f32 %v2522_v44, %v2447_v39  ;;  %v2624_v55 = vadd.f32 %v4878_v41, %v2528_v49  ;;  %v3283_v39 = vld [vmem:[#allocation9 + $0x138] sm:$0xff]  ;;  %v3282_v41 = vld [vmem:[#allocation9 + $0x130] sm:$0xff]  ;;  %v3370_v44 = vld [vmem:[#allocation9 + $0x1a8] sm:$0xff] }
 0x283   :  { %v3278_v49 = vld [vmem:[#allocation9 + $0x110] sm:$0xff] }
 0x284   :  { %v2623_v1 = vadd.f32 %v2614_v43, %v2523_v53  ;;  %v2626_v58 = vmax.f32 %v2346_v4, %v2624_v55  ;;  %v3281_v43 = vld [vmem:[#allocation9 + $0x128] sm:$0xff]  ;;  %v3365_v55 = vld [vmem:[#allocation9 + $0x180] sm:$0xff]  ;;  %v3468_v4 = vld [vmem:[#allocation9 + $0x270] sm:$0xff] }
 0x285   :  { %v3366_v53 = vld [vmem:[#allocation9 + $0x188] sm:$0xff] }
 0x286   :  { %v2625_v3 = vmax.f32 %v2345_v36, %v2623_v1  ;;  %v3557_v1 = vld [vmem:[#allocation9 + $0x2f0] sm:$0xff]  ;;  %v3465_v36 = vld [vmem:[#allocation9 + $0x258] sm:$0xff] }
 0x2a1   :  { %v4913_v46 = vpop.f32.mrf.mxu0 }
 0x2a2   :  { %v5018_v51 = vpop.f32.mrf.mxu1  ;;  %v2774_v56 = vadd.f32 %v4948_v45, %v4913_v46  ;;  %v3280_v45 = vld [vmem:[#allocation9 + $0x120] sm:$0xff] }
 0x2a3   :  { %v2693_v48 = vpop.f32.mrf.mxu0  ;;  %v3369_v46 = vld [vmem:[#allocation9 + $0x1a0] sm:$0xff] }
 0x2a4   :  { %v2924_v5 = vpop.f32.mrf.mxu1  ;;  %v2769_v61 = vadd.f32 %v2768_v47, %v2693_v48  ;;  %v3279_v47 = vld [vmem:[#allocation9 + $0x118] sm:$0xff] }
 0x2a5   :  { %v3368_v48 = vld [vmem:[#allocation9 + $0x198] sm:$0xff] }
 0x2c3   :  { %v4983_v52 = vpop.f32.mrf.mxu0 }
 0x2c4   :  { %v2855_v50 = vadd.f32 %v4983_v52, %v2774_v56  ;;  %v5088_v7 = vpop.f32.mrf.mxu1  ;;  %v3277_v52 = vld [vmem:[#allocation9 + $0x108] sm:$0xff]  ;;  %v3469_v56 = vld [vmem:[#allocation9 + $0x278] sm:$0xff] }
 0x2c5   :  { %v2845_v2 = vpop.f32.mrf.mxu0 }
 0x2c6   :  { %v2854_v62 = vadd.f32 %v2845_v2, %v2769_v61  ;;  %v2857_v60 = vmax.f32 %v2626_v58, %v2855_v50  ;;  %v3074_v23 = vpop.f32.mrf.mxu1  ;;  %v3558_v2 = vld [vmem:[#allocation9 + $0x2f8] sm:$0xff]  ;;  %v3467_v61 = vld [vmem:[#allocation9 + $0x268] sm:$0xff] }
 0x2c7   :  { %v3556_v50 = vld [vmem:[#allocation9 + $0x2e8] sm:$0xff]  ;;  %v3554_v58 = vld [vmem:[#allocation9 + $0x2d8] sm:$0xff] }
 0x2c8   :  { %v2856_v27 = vmax.f32 %v2625_v3, %v2854_v62  ;;  %v3464_v62 = vld [vmem:[#allocation9 + $0x250] sm:$0xff]  ;;  %v3462_v3 = vld [vmem:[#allocation9 + $0x240] sm:$0xff] }
 0x2e3   :  { %v5053_v12 = vpop.f32.mrf.mxu0 }
 0x2e4   :  { %v3005_v63 = vadd.f32 %v5053_v12, %v5018_v51  ;;  %v3367_v51 = vld [vmem:[#allocation9 + $0x190] sm:$0xff]  ;;  %v3555_v12 = vld [vmem:[#allocation9 + $0x2e0] sm:$0xff] }
 0x2e5   :  { %v2999_v9 = vpop.f32.mrf.mxu0 }
 0x2e6   :  { %v3084_v21 = vadd.f32 %v5088_v7, %v3005_v63  ;;  %v3000_v22 = vadd.f32 %v2999_v9, %v2924_v5  ;;  %v3466_v7 = vld [vmem:[#allocation9 + $0x260] sm:$0xff]  ;;  %v3553_v63 = vld [vmem:[#allocation9 + $0x2d0] sm:$0xff]  ;;  %v3463_v9 = vld [vmem:[#allocation9 + $0x248] sm:$0xff] }
 0x2e8   :  { %v3086_v28 = vmax.f32 %v2857_v60, %v3084_v21  ;;  %v3083_v35 = vadd.f32 %v3074_v23, %v3000_v22  ;;  %v3552_v60 = vld [vmem:[#allocation9 + $0x2c8] sm:$0xff]  ;;  %v3551_v21 = vld [vmem:[#allocation9 + $0x2c0] sm:$0xff]  ;;  %v3461_v22 = vld [vmem:[#allocation9 + $0x238] sm:$0xff] }
 0x2e9   :  { %v3550_v23 = vld [vmem:[#allocation9 + $0x2b8] sm:$0xff] }
 0x2ea   :  { %v3094_v13 = vadd.f32 %v3905_v24, %v3086_v28  ;;  %v3085_v18 = vmax.f32 %v2856_v27, %v3083_v35  ;;  %v3549_v27 = vld [vmem:[#allocation9 + $0x2b0] sm:$0xff]  ;;  %v3459_v28 = vld [vmem:[#allocation9 + $0x228] sm:$0xff] }
 0x2eb   :  { %v3548_v35 = vld [vmem:[#allocation9 + $0x2a8] sm:$0xff] }
 0x2ec   :  { %v3096_v8 = vmax.f32 %v3094_v13, 0.0  ;;  %v3093_v10 = vadd.f32 %v3905_v24, %v3085_v18  ;;  %v3460_v24 = vld [vmem:[#allocation9 + $0x230] sm:$0xff]  ;;  %v3458_v13 = vld [vmem:[#allocation9 + $0x220] sm:$0xff] }
 0x2ed   :  { %v3547_v18 = vld [vmem:[#allocation9 + $0x2a0] sm:$0xff] }
 0x2ee   :  { %3098 = vst [vmem:[#allocation3 + $0x8] sm:$0xf] %v3096_v8  ;;  %v3095_v11 = vmax.f32 %v3093_v10, 0.0  ;;  %v3457_v8 = vld [vmem:[#allocation9 + $0x218] sm:$0xff] }
 0x2ef   :  { %v3546_v10 = vld [vmem:[#allocation9 + $0x298] sm:$0xff] }
 0x2f0   :  { %3097 = vst [vmem:[#allocation3] sm:$0xff] %v3095_v11  ;;  %v3456_v11 = vld [vmem:[#allocation9 + $0x210] sm:$0xff] }
 0x2f7   :  { %v3116_v19 = vld [vmem:[#allocation3 + $0x2] sm:$0x3]  ;;  %v3099_v20 = vld [vmem:[#allocation3] sm:$0x3]  ;;  %v3274_v57 = vld [vmem:[#allocation3 + $0x4] sm:$0x3] }
 0x2f8   :  { %5122 = vmatmul.mubr.f32.vlgmr.msra.gmra.mxu0 %v3116_v19  ;;  %5157 = vmatmul.mubr.f32.vlgmr.msra.gmra.mxu1 %v3099_v20  ;;  %v3363_v5 = vld [vmem:[#allocation3 + $0x6] sm:$0x3]  ;;  %v3544_v19 = vld [vmem:[#allocation9 + $0x288] sm:$0xff]  ;;  %v3454_v20 = vld [vmem:[#allocation9 + $0x200] sm:$0xff] }
 0x2f9   :  { %5160 = vmatpush3.msra.mxu0 %v3291_v17  ;;  %5195 = vmatpush3.msra.mxu1 %v3380_v14  ;;  %v3545_v17 = vld [vmem:[#allocation9 + $0x290] sm:$0xff]  ;;  %v3455_v14 = vld [vmem:[#allocation9 + $0x208] sm:$0xff] }
 0x2fa   :  { %5161 = vmatprep.subr.mxu0 %v5492_v59  ;;  %5196 = vmatprep.subr.mxu1 %v5492_v59 }
 0x2fb   :  { %5162 = vmatpush3.msra.mxu0 %v3290_v6  ;;  %5197 = vmatpush3.msra.mxu1 %v3379_v33  ;;  %v3543_v6 = vld [vmem:[#allocation9 + $0x280] sm:$0xff]  ;;  %v3452_v33 = vld [vmem:[#allocation3 + $0x8] sm:$0x3] }
 0x2fc   :  { %5163 = vmatprep.subr.mxu0 %v5492_v59  ;;  %5198 = vmatprep.subr.mxu1 %v5492_v59 }
 0x2fd   :  { %5164 = vmatpush3.msra.mxu0 %v3289_v16  ;;  %5199 = vmatpush3.msra.mxu1 %v3378_v37  ;;  %v3541_v16 = vld [vmem:[#allocation3 + $0xa] sm:$0x3]  ;;  %v3654_v37 = vld [vmem:[%s6798_s7 + $0x78] sm:$0xff] }
 0x2fe   :  { %5165 = vmatprep.subr.mxu0 %v5492_v59  ;;  %5200 = vmatprep.subr.mxu1 %v5492_v59 }
 0x2ff   :  { %5166 = vmatpush3.msra.mxu0 %v3288_v25  ;;  %5201 = vmatpush3.msra.mxu1 %v3377_v26  ;;  %v3653_v25 = vld [vmem:[%s6798_s7 + $0x70] sm:$0xff]  ;;  %v3652_v26 = vld [vmem:[%s6798_s7 + $0x68] sm:$0xff] }
 0x300   :  { %5167 = vmatprep.subr.mxu0 %v5492_v59  ;;  %5202 = vmatprep.subr.mxu1 %v5492_v59 }
 0x301   :  { %5168 = vmatpush3.msra.mxu0 %v3287_v15  ;;  %5203 = vmatpush3.msra.mxu1 %v3376_v29  ;;  %v3651_v15 = vld [vmem:[%s6798_s7 + $0x60] sm:$0xff]  ;;  %v3650_v29 = vld [vmem:[%s6798_s7 + $0x58] sm:$0xff] }
 0x302   :  { %5169 = vmatprep.subr.mxu0 %v5492_v59  ;;  %5204 = vmatprep.subr.mxu1 %v5492_v59 }
 0x303   :  { %5170 = vmatpush3.msra.mxu0 %v3286_v30  ;;  %5205 = vmatpush3.msra.mxu1 %v3375_v31  ;;  %v3649_v30 = vld [vmem:[%s6798_s7 + $0x50] sm:$0xff]  ;;  %v3648_v31 = vld [vmem:[%s6798_s7 + $0x48] sm:$0xff] }
 0x304   :  { %5171 = vmatprep.subr.mxu0 %v5492_v59  ;;  %5206 = vmatprep.subr.mxu1 %v5492_v59 }
 0x305   :  { %5172 = vmatpush3.msra.mxu0 %v3285_v32  ;;  %5207 = vmatpush3.msra.mxu1 %v3374_v34  ;;  %v3647_v32 = vld [vmem:[%s6798_s7 + $0x40] sm:$0xff]  ;;  %v3646_v34 = vld [vmem:[%s6798_s7 + $0x38] sm:$0xff] }
 0x306   :  { %5173 = vmatprep.subr.mxu0 %v5492_v59  ;;  %5208 = vmatprep.subr.mxu1 %v5492_v59 }
 0x307   :  { %5174 = vmatpush3.msra.mxu0 %v3284_v0  ;;  %5209 = vmatpush3.msra.mxu1 %v3373_v38  ;;  %v3645_v0 = vld [vmem:[%s6798_s7 + $0x30] sm:$0xff]  ;;  %v3644_v38 = vld [vmem:[%s6798_s7 + $0x28] sm:$0xff] }
 0x308   :  { %5175 = vmatprep.subr.mxu0 %v5492_v59  ;;  %5210 = vmatprep.subr.mxu1 %v5492_v59 }
 0x309   :  { %5176 = vmatpush3.msra.mxu0 %v3283_v39  ;;  %5211 = vmatpush3.msra.mxu1 %v3372_v40  ;;  %v3643_v39 = vld [vmem:[%s6798_s7 + $0x20] sm:$0xff]  ;;  %v3642_v40 = vld [vmem:[%s6798_s7 + $0x18] sm:$0xff] }
 0x30a   :  { %5177 = vmatprep.subr.mxu0 %v5492_v59  ;;  %5212 = vmatprep.subr.mxu1 %v5492_v59 }
 0x30b   :  { %5178 = vmatpush3.msra.mxu0 %v3282_v41  ;;  %5213 = vmatpush3.msra.mxu1 %v3371_v42  ;;  %v3641_v41 = vld [vmem:[%s6798_s7 + $0x10] sm:$0xff]  ;;  %v3640_v42 = vld [vmem:[%s6798_s7 + $0x8] sm:$0xff] }
 0x30c   :  { %5179 = vmatprep.subr.mxu0 %v5492_v59  ;;  %5214 = vmatprep.subr.mxu1 %v5492_v59 }
 0x30d   :  { %5180 = vmatpush3.msra.mxu0 %v3281_v43  ;;  %5215 = vmatpush3.msra.mxu1 %v3370_v44  ;;  %v3639_v43 = vld [vmem:[%s6798_s7] sm:$0xff]  ;;  %v3748_v44 = vld [vmem:[#allocation10 + $0x78] sm:$0xff] }
 0x30e   :  { %5181 = vmatprep.subr.mxu0 %v5492_v59  ;;  %5216 = vmatprep.subr.mxu1 %v5492_v59 }
 0x30f   :  { %5182 = vmatpush3.msra.mxu0 %v3280_v45  ;;  %5217 = vmatpush3.msra.mxu1 %v3369_v46  ;;  %v3747_v45 = vld [vmem:[#allocation10 + $0x70] sm:$0xff]  ;;  %v3746_v46 = vld [vmem:[#allocation10 + $0x68] sm:$0xff] }
 0x310   :  { %5183 = vmatprep.subr.mxu0 %v5492_v59  ;;  %5218 = vmatprep.subr.mxu1 %v5492_v59 }
 0x311   :  { %5184 = vmatpush3.msra.mxu0 %v3279_v47  ;;  %5219 = vmatpush3.msra.mxu1 %v3368_v48  ;;  %v3745_v47 = vld [vmem:[#allocation10 + $0x60] sm:$0xff]  ;;  %v3744_v48 = vld [vmem:[#allocation10 + $0x58] sm:$0xff] }
 0x312   :  { %5185 = vmatprep.subr.mxu0 %v5492_v59  ;;  %5220 = vmatprep.subr.mxu1 %v5492_v59 }
 0x313   :  { %5186 = vmatpush3.msra.mxu0 %v3278_v49  ;;  %5221 = vmatpush3.msra.mxu1 %v3367_v51  ;;  %v3743_v49 = vld [vmem:[#allocation10 + $0x50] sm:$0xff]  ;;  %v3742_v51 = vld [vmem:[#allocation10 + $0x48] sm:$0xff] }
 0x314   :  { %5187 = vmatprep.subr.mxu0 %v5492_v59  ;;  %5222 = vmatprep.subr.mxu1 %v5492_v59 }
 0x315   :  { %5188 = vmatpush3.msra.mxu0 %v3277_v52  ;;  %5223 = vmatpush3.msra.mxu1 %v3366_v53  ;;  %v3741_v52 = vld [vmem:[#allocation10 + $0x40] sm:$0xff]  ;;  %v3740_v53 = vld [vmem:[#allocation10 + $0x38] sm:$0xff] }
 0x316   :  { %5189 = vmatprep.subr.mxu0 %v5492_v59  ;;  %5224 = vmatprep.subr.mxu1 %v5492_v59 }
 0x317   :  { %5190 = vmatpush3.msra.mxu0 %v3276_v54  ;;  %5191 = vmatprep.mubr.msk.f32.mxu0 %vm5493_vm1, %v5492_v59  ;;  %v3739_v54 = vld [vmem:[#allocation10 + $0x30] sm:$0xff] }
 0x318   :  { %5225 = vmatpush3.msra.mxu1 %v3365_v55  ;;  %5226 = vmatprep.mubr.msk.f32.mxu1 %vm5493_vm1, %v5492_v59  ;;  %v3738_v55 = vld [vmem:[#allocation10 + $0x28] sm:$0xff] }
 0x319   :  { %5192 = vmatmul.mubr.f32.vlgmr.msra.gmra.mxu0 %v3274_v57  ;;  %5227 = vmatmul.mubr.f32.vlgmr.msra.gmra.mxu1 %v3363_v5  ;;  %v3736_v57 = vld [vmem:[#allocation10 + $0x18] sm:$0xff] }
 0x31a   :  { %5229 = vmatprep.subr.mxu0 %v5492_v59  ;;  %5264 = vmatprep.subr.mxu1 %v5492_v59 }
 0x31b   :  { %5230 = vmatpush3.msra.mxu0 %v3469_v56  ;;  %5265 = vmatpush3.msra.mxu1 %v3558_v2  ;;  %v3737_v56 = vld [vmem:[#allocation10 + $0x20] sm:$0xff] }
 0x31c   :  { %5231 = vmatprep.subr.mxu0 %v5492_v59  ;;  %5266 = vmatprep.subr.mxu1 %v5492_v59 }
 0x31d   :  { %5232 = vmatpush3.msra.mxu0 %v3468_v4  ;;  %5267 = vmatpush3.msra.mxu1 %v3557_v1 }
 0x31e   :  { %5233 = vmatprep.subr.mxu0 %v5492_v59  ;;  %5268 = vmatprep.subr.mxu1 %v5492_v59 }
 0x31f   :  { %5234 = vmatpush3.msra.mxu0 %v3467_v61  ;;  %5269 = vmatpush3.msra.mxu1 %v3556_v50 }
 0x320   :  { %5235 = vmatprep.subr.mxu0 %v5492_v59  ;;  %5270 = vmatprep.subr.mxu1 %v5492_v59 }
 0x321   :  { %5236 = vmatpush3.msra.mxu0 %v3466_v7  ;;  %5271 = vmatpush3.msra.mxu1 %v3555_v12 }
 0x322   :  { %5237 = vmatprep.subr.mxu0 %v5492_v59  ;;  %5272 = vmatprep.subr.mxu1 %v5492_v59 }
 0x323   :  { %5238 = vmatpush3.msra.mxu0 %v3465_v36  ;;  %5273 = vmatpush3.msra.mxu1 %v3554_v58 }
 0x324   :  { %5239 = vmatprep.subr.mxu0 %v5492_v59  ;;  %5274 = vmatprep.subr.mxu1 %v5492_v59 }
 0x325   :  { %5240 = vmatpush3.msra.mxu0 %v3464_v62  ;;  %5275 = vmatpush3.msra.mxu1 %v3553_v63 }
 0x326   :  { %5241 = vmatprep.subr.mxu0 %v5492_v59  ;;  %5276 = vmatprep.subr.mxu1 %v5492_v59 }
 0x327   :  { %5242 = vmatpush3.msra.mxu0 %v3463_v9  ;;  %5277 = vmatpush3.msra.mxu1 %v3552_v60 }
 0x328   :  { %5243 = vmatprep.subr.mxu0 %v5492_v59  ;;  %5278 = vmatprep.subr.mxu1 %v5492_v59 }
 0x329   :  { %5244 = vmatpush3.msra.mxu0 %v3462_v3  ;;  %5279 = vmatpush3.msra.mxu1 %v3551_v21  ;;  %v3906_v3 = vld [vmem:[%s6797_s6] ss:$0 sm:$0xff] }
 0x32a   :  { %5245 = vmatprep.subr.mxu0 %v5492_v59  ;;  %5280 = vmatprep.subr.mxu1 %v5492_v59 }
 0x32b   :  { %5246 = vmatpush3.msra.mxu0 %v3461_v22  ;;  %5281 = vmatpush3.msra.mxu1 %v3550_v23 }
 0x32c   :  { %5247 = vmatprep.subr.mxu0 %v5492_v59  ;;  %5282 = vmatprep.subr.mxu1 %v5492_v59 }
 0x32d   :  { %5248 = vmatpush3.msra.mxu0 %v3460_v24  ;;  %5283 = vmatpush3.msra.mxu1 %v3549_v27 }
 0x32e   :  { %5249 = vmatprep.subr.mxu0 %v5492_v59  ;;  %5284 = vmatprep.subr.mxu1 %v5492_v59 }
 0x32f   :  { %5250 = vmatpush3.msra.mxu0 %v3459_v28  ;;  %5285 = vmatpush3.msra.mxu1 %v3548_v35  ;;  %v3735_v28 = vld [vmem:[#allocation10 + $0x10] sm:$0xff]  ;;  %v3734_v35 = vld [vmem:[#allocation10 + $0x8] sm:$0xff] }
 0x330   :  { %5251 = vmatprep.subr.mxu0 %v5492_v59  ;;  %5286 = vmatprep.subr.mxu1 %v5492_v59 }
 0x331   :  { %5252 = vmatpush3.msra.mxu0 %v3458_v13  ;;  %5287 = vmatpush3.msra.mxu1 %v3547_v18  ;;  %v3733_v13 = vld [vmem:[#allocation10] sm:$0xff]  ;;  %v3907_v18 = vld [vmem:[%s6799_s8] ss:$0 sm:$0xff] }
 0x332   :  { %5253 = vmatprep.subr.mxu0 %v5492_v59  ;;  %5288 = vmatprep.subr.mxu1 %v5492_v59 }
 0x333   :  { %5254 = vmatpush3.msra.mxu0 %v3457_v8  ;;  %5289 = vmatpush3.msra.mxu1 %v3546_v10 }
 0x334   :  { %5255 = vmatprep.subr.mxu0 %v5492_v59  ;;  %5290 = vmatprep.subr.mxu1 %v5492_v59 }
 0x335   :  { %5256 = vmatpush3.msra.mxu0 %v3456_v11  ;;  %5291 = vmatpush3.msra.mxu1 %v3545_v17 }
 0x336   :  { %5257 = vmatprep.subr.mxu0 %v5492_v59  ;;  %5292 = vmatprep.subr.mxu1 %v5492_v59 }
 0x337   :  { %5258 = vmatpush3.msra.mxu0 %v3455_v14  ;;  %5293 = vmatpush3.msra.mxu1 %v3544_v19  ;;  %v3908_v14 = vld [vmem:[%s6801_s10] ss:$0 sm:$0xff] }
 0x338   :  { %5259 = vmatprep.subr.mxu0 %v5492_v59  ;;  %5294 = vmatprep.subr.mxu1 %v5492_v59 }
 0x339   :  { %5260 = vmatpush3.msra.mxu0 %v3454_v20  ;;  %5261 = vmatprep.mubr.msk.f32.mxu0 %vm5493_vm1, %v5492_v59 }
 0x33a   :  { %5295 = vmatpush3.msra.mxu1 %v3543_v6  ;;  %5296 = vmatprep.mubr.msk.f32.mxu1 %vm5493_vm1, %v5492_v59 }
 0x33b   :  { %5262 = vmatmul.mubr.f32.vlgmr.msra.gmra.mxu0 %v3452_v33  ;;  %5297 = vmatmul.mubr.f32.vlgmr.msra.gmra.mxu1 %v3541_v16 }
 0x33c   :  { %5299 = vmatprep.subr.mxu0 %v5492_v59  ;;  %5331 = vmatprep.mubr.msk.f32.mxu0 %vm5493_vm1, %v5492_v59 }
 0x33d   :  { %5334 = vmatprep.subr.mxu1 %v5492_v59  ;;  %5366 = vmatprep.mubr.msk.f32.mxu1 %vm5493_vm1, %v5492_v59 }
 0x33e   :  { %5300 = vmatpush3.msra.mxu0 %v3654_v37  ;;  %5335 = vmatpush3.msra.mxu1 %v3748_v44 }
 0x33f   :  { %5301 = vmatprep.subr.mxu0 %v5492_v59  ;;  %5336 = vmatprep.subr.mxu1 %v5492_v59 }
 0x340   :  { %5302 = vmatpush3.msra.mxu0 %v3653_v25  ;;  %5337 = vmatpush3.msra.mxu1 %v3747_v45 }
 0x341   :  { %5303 = vmatprep.subr.mxu0 %v5492_v59  ;;  %5338 = vmatprep.subr.mxu1 %v5492_v59 }
 0x342   :  { %5304 = vmatpush3.msra.mxu0 %v3652_v26  ;;  %5339 = vmatpush3.msra.mxu1 %v3746_v46 }
 0x343   :  { %5305 = vmatprep.subr.mxu0 %v5492_v59  ;;  %5340 = vmatprep.subr.mxu1 %v5492_v59 }
 0x344   :  { %5306 = vmatpush3.msra.mxu0 %v3651_v15  ;;  %5341 = vmatpush3.msra.mxu1 %v3745_v47 }
 0x345   :  { %5307 = vmatprep.subr.mxu0 %v5492_v59  ;;  %5342 = vmatprep.subr.mxu1 %v5492_v59 }
 0x346   :  { %5308 = vmatpush3.msra.mxu0 %v3650_v29  ;;  %5343 = vmatpush3.msra.mxu1 %v3744_v48 }
 0x347   :  { %5309 = vmatprep.subr.mxu0 %v5492_v59  ;;  %5344 = vmatprep.subr.mxu1 %v5492_v59 }
 0x348   :  { %5310 = vmatpush3.msra.mxu0 %v3649_v30  ;;  %5345 = vmatpush3.msra.mxu1 %v3743_v49 }
 0x349   :  { %5311 = vmatprep.subr.mxu0 %v5492_v59  ;;  %5346 = vmatprep.subr.mxu1 %v5492_v59 }
 0x34a   :  { %5312 = vmatpush3.msra.mxu0 %v3648_v31  ;;  %5347 = vmatpush3.msra.mxu1 %v3742_v51 }
 0x34b   :  { %5313 = vmatprep.subr.mxu0 %v5492_v59  ;;  %5348 = vmatprep.subr.mxu1 %v5492_v59 }
 0x34c   :  { %5314 = vmatpush3.msra.mxu0 %v3647_v32  ;;  %5349 = vmatpush3.msra.mxu1 %v3741_v52 }
 0x34d   :  { %5315 = vmatprep.subr.mxu0 %v5492_v59  ;;  %5350 = vmatprep.subr.mxu1 %v5492_v59 }
 0x34e   :  { %5316 = vmatpush3.msra.mxu0 %v3646_v34  ;;  %5351 = vmatpush3.msra.mxu1 %v3740_v53 }
 0x34f   :  { %5317 = vmatprep.subr.mxu0 %v5492_v59  ;;  %5352 = vmatprep.subr.mxu1 %v5492_v59 }
 0x350   :  { %5318 = vmatpush3.msra.mxu0 %v3645_v0  ;;  %5353 = vmatpush3.msra.mxu1 %v3739_v54 }
 0x351   :  { %5319 = vmatprep.subr.mxu0 %v5492_v59  ;;  %5354 = vmatprep.subr.mxu1 %v5492_v59 }
 0x352   :  { %5320 = vmatpush3.msra.mxu0 %v3644_v38  ;;  %5355 = vmatpush3.msra.mxu1 %v3738_v55 }
 0x353   :  { %5321 = vmatprep.subr.mxu0 %v5492_v59  ;;  %5356 = vmatprep.subr.mxu1 %v5492_v59 }
 0x354   :  { %5322 = vmatpush3.msra.mxu0 %v3643_v39  ;;  %5357 = vmatpush3.msra.mxu1 %v3737_v56 }
 0x355   :  { %5323 = vmatprep.subr.mxu0 %v5492_v59  ;;  %5358 = vmatprep.subr.mxu1 %v5492_v59 }
 0x356   :  { %5324 = vmatpush3.msra.mxu0 %v3642_v40  ;;  %5359 = vmatpush3.msra.mxu1 %v3736_v57 }
 0x357   :  { %5325 = vmatprep.subr.mxu0 %v5492_v59  ;;  %5360 = vmatprep.subr.mxu1 %v5492_v59 }
 0x358   :  { %5326 = vmatpush3.msra.mxu0 %v3641_v41  ;;  %5361 = vmatpush3.msra.mxu1 %v3735_v28 }
 0x359   :  { %5327 = vmatprep.subr.mxu0 %v5492_v59  ;;  %5362 = vmatprep.subr.mxu1 %v5492_v59 }
 0x35a   :  { %5328 = vmatpush3.msra.mxu0 %v3640_v42  ;;  %5363 = vmatpush3.msra.mxu1 %v3734_v35 }
 0x35b   :  { %5329 = vmatprep.subr.mxu0 %v5492_v59  ;;  %5364 = vmatprep.subr.mxu1 %v5492_v59 }
 0x35c   :  { %5330 = vmatpush3.msra.mxu0 %v3639_v43  ;;  %5365 = vmatpush3.msra.mxu1 %v3733_v13 }
 0x3b8   :  { %v3200_v5 = vpop.f32.mrf.mxu0  ;;  %v3270_v2 = vpop.f32.mrf.mxu1 }
 0x3b9   :  { %v3271_v36 = vadd.f32 %v3270_v2, %v3200_v5 }
 0x3ba   :  { %v5123_v4 = vpop.f32.mrf.mxu0  ;;  %v5158_v1 = vpop.f32.mrf.mxu1 }
 0x3d9   :  { %v3358_v61 = vpop.f32.mrf.mxu0  ;;  %v3447_v50 = vpop.f32.mrf.mxu1 }
 0x3da   :  { %v3362_v58 = vadd.f32 %v3358_v61, %v3271_v36 }
 0x3db   :  { %v5193_v7 = vpop.f32.mrf.mxu0  ;;  %v5228_v12 = vpop.f32.mrf.mxu1 }
 0x3dc   :  { %v3451_v62 = vadd.f32 %v3447_v50, %v3362_v58 }
 0x3fb   :  { %v3536_v63 = vpop.f32.mrf.mxu0  ;;  %v3625_v9 = vpop.f32.mrf.mxu1 }
 0x3fc   :  { %v3540_v60 = vadd.f32 %v3536_v63, %v3451_v62 }
 0x3fd   :  { %v5263_v21 = vpop.f32.mrf.mxu0  ;;  %v5298_v22 = vpop.f32.mrf.mxu1 }
 0x3fe   :  { %v3629_v23 = vadd.f32 %v3625_v9, %v3540_v60 }
 0x400   :  { %v3637_v24 = vadd.f32 %v3906_v3, %v3629_v23 }
 0x402   :  { %v3638_v27 = vmax.f32 %v3637_v24, 0.0 }
 0x404   :  { %5332 = vmatmul.mubr.f32.vlgmr.msra.gmra.mxu0 %v3638_v27 }
 0x4c4   :  { %v3728_v8 = vpop.f32.mrf.mxu0 }
 0x4c5   :  { %v3729_v10 = vadd.f32 %v3907_v18, %v3728_v8 }
 0x4c6   :  { %v5333_v11 = vpop.f32.mrf.mxu0 }
 0x4c7   :  { %v3732_v17 = vmax.f32 %v3729_v10, 0.0 }
 0x4c9   :  { %5367 = vmatmul.mubr.f32.vlgmr.msra.gmra.mxu1 %v3732_v17 }
 0x589   :  { %v3822_v19 = vpop.f32.mrf.mxu1 }
 0x58a   :  { %v3823_v20 = vadd.f32 %v3908_v14, %v3822_v19 }
 0x58b   :  { %v5368_v59 = vpop.f32.mrf.mxu1 }
 0x58c   :  { %3826 = vst [vmem:[#allocation12] sm:$0x3] %v3823_v20 }
 0x58d   :  { %5469 = shalt.err (!%p5466_p10)
}
 0x58e   :  { %3836 = dma.vmem_to_hbm [thread:$0]  %s3834_s3, 32, %s6802_s11, [#allocation6]  }
 0x58f   :  { %5484 = dma.done.wait [#allocation6], 32  }
 0x590   :  { %5485 = vsyncadd [#allocation6], 4294967264 }
 0x591   :  { %3840 = vsyncpa [#allocation5], 1 }
 0x592   :  { %3841 = vsyncpa [#allocation8], 1 }
 0x593   :  { %3842 = vsyncpa [#allocation11], 1 }
 0x594   :  { %3843 = vsyncpa [#allocation6], 1 }

</bundles_post_ra>
